<compile_context>
chip_gen: v6e
topology: v6e:2x2x1
jax: 0.10.0
libtpu: 0.0.40
codegen_flags: <defaults>
</compile_context>

<pallas_src>
import jax
import jax.numpy as jnp
from jax.experimental import pallas as pl
from jax.experimental.pallas import tpu as pltpu


def _make_gcn_kernel(BN, Fout, L, off_out, off_loop, off_gate):
    def kernel(x_ref, w_ref, b_ref, adj_ref, o_ref, hp_ref, hg_ref):
        f32 = jnp.float32

        # One wide MXU matmul: all 2L per-label projections, the self-loop
        # projection, and all 2L+1 gate logits; biases via VPU broadcast add.
        hp_ref[...] = (
            jnp.dot(x_ref[...], w_ref[...], preferred_element_type=f32)
            + b_ref[...])

        gates = jax.nn.sigmoid(hp_ref[:, off_gate:off_gate + 2 * L + 1])  # (BN, 2L+1)

        # Self-loop term.
        act = hp_ref[:, off_loop:off_loop + Fout] * gates[:, 2 * L:2 * L + 1]

        # Gate + relayout per-label projections from (node, (label, f)) rows/cols
        # into ((dir, label, node), f) rows so the adjacency contraction below is
        # one long-K 2-D matmul.  Static slices only (robust Mosaic lowering).
        for l in range(L):
            hg_ref[l * BN:(l + 1) * BN, :] = (
                hp_ref[:, l * Fout:(l + 1) * Fout] * gates[:, l:l + 1])
            hg_ref[(L + l) * BN:(L + l + 1) * BN, :] = (
                hp_ref[:, off_out + l * Fout:off_out + (l + 1) * Fout]
                * gates[:, L + l:L + l + 1])

        # Fused adjacency contraction over k = (direction, label, source node).
        nbr = jnp.dot(adj_ref[...], hg_ref[...], preferred_element_type=f32)
        o_ref[...] = jnp.maximum(act + nbr, 0.0).astype(o_ref.dtype)

    return kernel


def graph_convolution(gcn_inp, adj_mat, params):
    """gcn_inp: (B, N, Fin) f32, adj_mat: (L, B, N, N) f32."""
    B, N, Fin = gcn_inp.shape
    L = adj_mat.shape[0]
    Fout = params['w_loop'].shape[1]
    BN = B * N
    dtype = jnp.float32

    x2 = gcn_inp.reshape(BN, Fin).astype(dtype)

    # ---- weight-side stacking (no input replication) ----
    w_in_stack = jnp.transpose(params['w_in'], (1, 0, 2)).reshape(Fin, L * Fout)
    w_out_stack = jnp.transpose(params['w_out'], (1, 0, 2)).reshape(Fin, L * Fout)
    wg_in_stack = jnp.transpose(params['wg_in'][:, :, 0], (1, 0))    # (Fin, L)
    wg_out_stack = jnp.transpose(params['wg_out'][:, :, 0], (1, 0))  # (Fin, L)

    off_out = L * Fout
    off_loop = 2 * L * Fout
    off_gate = off_loop + Fout
    ncols = off_gate + 2 * L + 1
    ncols_pad = ((ncols + 127) // 128) * 128

    w_all = jnp.concatenate(
        [w_in_stack, w_out_stack, params['w_loop'].astype(dtype),
         wg_in_stack, wg_out_stack, params['wg_loop'].astype(dtype)], axis=1)
    w_all = jnp.pad(w_all, ((0, 0), (0, ncols_pad - ncols))).astype(dtype)

    b_all = jnp.concatenate(
        [params['b_in'].reshape(L * Fout), params['b_out'].reshape(L * Fout),
         params['b_loop'], params['bg_in'][:, 0], params['bg_out'][:, 0],
         params['bg_loop']], axis=0)
    b_all = jnp.pad(b_all, (0, ncols_pad - ncols)).reshape(1, ncols_pad).astype(dtype)

    # ---- adjacency pre-arranged: rows (b,m); cols (dir, l, b', n) with the batch
    #      block-diagonal folded in so batch rides the matmul M dimension ----
    eyeB = jnp.eye(B, dtype=dtype)
    adj_in = jnp.einsum('lbnm,bc->bmlcn', adj_mat, eyeB).reshape(BN, L * BN)
    adj_out = jnp.einsum('lbmn,bc->bmlcn', adj_mat, eyeB).reshape(BN, L * BN)
    adj_cat = jnp.concatenate([adj_in, adj_out], axis=1)        # (BN, 2*L*BN)

    kernel = _make_gcn_kernel(BN, Fout, L, off_out, off_loop, off_gate)

    grid_spec = pltpu.PrefetchScalarGridSpec(
        num_scalar_prefetch=0,
        grid=(1,),
        in_specs=[
            pl.BlockSpec((BN, Fin), lambda i: (0, 0)),           # x
            pl.BlockSpec((Fin, ncols_pad), lambda i: (0, 0)),    # W_all
            pl.BlockSpec((1, ncols_pad), lambda i: (0, 0)),      # b_all
            pl.BlockSpec((BN, 2 * L * BN), lambda i: (0, 0)),    # adj_cat
        ],
        out_specs=pl.BlockSpec((BN, Fout), lambda i: (0, 0)),
        scratch_shapes=[
            pltpu.VMEM((BN, ncols_pad), jnp.float32),            # hp (all projections/gates)
            pltpu.VMEM((2 * L * BN, Fout), jnp.float32),         # gated, relayouted activations
        ],
    )

    out = pl.pallas_call(
        kernel,
        out_shape=jax.ShapeDtypeStruct((BN, Fout), jnp.float32),
        grid_spec=grid_spec,
        compiler_params=pltpu.CompilerParams(
            dimension_semantics=("arbitrary",)),
    )(x2, w_all, b_all, adj_cat)

    return out.reshape(B, N, Fout)


def graph_convolution_ref(gcn_inp, adj_mat, params):
    """Pure-JAX reference mirroring the PyTorch forward (dropout = eval identity)."""
    h = gcn_inp @ params['w_loop'] + params['b_loop']
    gate = jax.nn.sigmoid(gcn_inp @ params['wg_loop'] + params['bg_loop'])
    act = h * gate
    L = adj_mat.shape[0]
    for lbl in range(L):
        inp_in = gcn_inp @ params['w_in'][lbl] + params['b_in'][lbl]
        inp_in = inp_in * jax.nn.sigmoid(gcn_inp @ params['wg_in'][lbl] + params['bg_in'][lbl])
        in_act = jnp.einsum('bnm,bnf->bmf', adj_mat[lbl], inp_in)   # adj.permute(0,2,1) @ inp
        inp_out = gcn_inp @ params['w_out'][lbl] + params['b_out'][lbl]
        inp_out = inp_out * jax.nn.sigmoid(gcn_inp @ params['wg_out'][lbl] + params['bg_out'][lbl])
        out_act = jnp.einsum('bmn,bnf->bmf', adj_mat[lbl], inp_out)  # adj @ inp
        act = act + in_act + out_act
    return jax.nn.relu(act)


def init_params(key, in_features, out_features, num_labels):
    ks = jax.random.split(key, 12)
    s = 0.1
    return {
        'w_loop': jax.random.normal(ks[0], (in_features, out_features), jnp.float32) * s,
        'b_loop': jax.random.normal(ks[1], (out_features,), jnp.float32) * s,
        'wg_loop': jax.random.normal(ks[2], (in_features, 1), jnp.float32) * s,
        'bg_loop': jax.random.normal(ks[3], (1,), jnp.float32) * s,
        'w_in': jax.random.normal(ks[4], (num_labels, in_features, out_features), jnp.float32) * s,
        'b_in': jax.random.normal(ks[5], (num_labels, out_features), jnp.float32) * s,
        'wg_in': jax.random.normal(ks[6], (num_labels, in_features, 1), jnp.float32) * s,
        'bg_in': jax.random.normal(ks[7], (num_labels, 1), jnp.float32) * s,
        'w_out': jax.random.normal(ks[8], (num_labels, in_features, out_features), jnp.float32) * s,
        'b_out': jax.random.normal(ks[9], (num_labels, out_features), jnp.float32) * s,
        'wg_out': jax.random.normal(ks[10], (num_labels, in_features, 1), jnp.float32) * s,
        'bg_out': jax.random.normal(ks[11], (num_labels, 1), jnp.float32) * s,
    }


if __name__ == "__main__":
    B, N, Fin, Fout, L = 2, 8, 16, 32, 44   # num_labels=44 as in the module default

    key = jax.random.PRNGKey(0)
    k_x, k_adj, k_p = jax.random.split(key, 3)
    gcn_inp = jax.random.normal(k_x, (B, N, Fin), jnp.float32)
    adj_mat = (jax.random.uniform(k_adj, (L, B, N, N), jnp.float32) < 0.2).astype(jnp.float32)
    params = init_params(k_p, Fin, Fout, L)

    gcn = jax.jit(graph_convolution)
    out = jax.block_until_ready(gcn(gcn_inp, adj_mat, params))

    ref = jax.block_until_ready(graph_convolution_ref(gcn_inp, adj_mat, params))
    assert out.shape == (B, N, Fout)
    assert jnp.allclose(out, ref, atol=2e-3, rtol=2e-3), "mismatch vs JAX reference"

    print("KERNEL_OK")
</pallas_src>

<mosaic_0001>
module attributes {stable_mosaic.version = 11 : i64} {
  func.func @kernel(%arg0: i32, %arg1: memref<16x16xf32, #tpu.memory_space<vmem>>, %arg2: memref<16x2944xf32, #tpu.memory_space<vmem>>, %arg3: memref<1x2944xf32, #tpu.memory_space<vmem>>, %arg4: memref<16x1408xf32, #tpu.memory_space<vmem>>, %arg5: memref<16x32xf32, #tpu.memory_space<vmem>>, %arg6: memref<16x2944xf32, #tpu.memory_space<vmem>>, %arg7: memref<1408x32xf32, #tpu.memory_space<vmem>>) attributes {dimension_semantics = [#tpu.dimension_semantics<arbitrary>], iteration_bounds = array<i64: 1>, scalar_prefetch = 0 : i64, scratch_operands = 2 : i64, tpu.core_type = #tpu.core_type<tc>, window_params = [{pipeline_mode = #tpu.pipeline_mode<synchronous>, transform_indices = @transform_0, window_bounds = array<i64: 16, 16>}, {pipeline_mode = #tpu.pipeline_mode<synchronous>, transform_indices = @transform_1, window_bounds = array<i64: 16, 2944>}, {pipeline_mode = #tpu.pipeline_mode<synchronous>, transform_indices = @transform_2, window_bounds = array<i64: 1, 2944>}, {pipeline_mode = #tpu.pipeline_mode<synchronous>, transform_indices = @transform_3, window_bounds = array<i64: 16, 1408>}, {pipeline_mode = #tpu.pipeline_mode<synchronous>, transform_indices = @transform_4, window_bounds = array<i64: 16, 32>}]} {
    %c0 = arith.constant 0 : index
    %c0_0 = arith.constant 0 : index
    %0 = vector.load %arg1[%c0, %c0_0] : memref<16x16xf32, #tpu.memory_space<vmem>>, vector<16x16xf32>
    %c0_1 = arith.constant 0 : index
    %c0_2 = arith.constant 0 : index
    %1 = vector.load %arg2[%c0_1, %c0_2] : memref<16x2944xf32, #tpu.memory_space<vmem>>, vector<16x2944xf32>
    %cst = arith.constant dense<0.000000e+00> : vector<16x2944xf32>
    %2 = tpu.matmul %0, %1, %cst {dimension_numbers = #tpu.dot_dimension_numbers<[1], [0], [0], [1], [0, 0, 1, 1], [], []>} : vector<16x16xf32>, vector<16x2944xf32>, vector<16x2944xf32> -> vector<16x2944xf32>
    %c0_3 = arith.constant 0 : index
    %c0_4 = arith.constant 0 : index
    %3 = vector.load %arg3[%c0_3, %c0_4] : memref<1x2944xf32, #tpu.memory_space<vmem>>, vector<1x2944xf32>
    %4 = vector.broadcast %3 : vector<1x2944xf32> to vector<16x2944xf32>
    %5 = arith.addf %2, %4 : vector<16x2944xf32>
    %c0_5 = arith.constant 0 : index
    %c0_6 = arith.constant 0 : index
    %6 = vector.load %arg6[%c0_5, %c0_6] : memref<16x2944xf32, #tpu.memory_space<vmem>>, vector<16x2944xf32>
    tpu.vector_store %arg6[%c0_5, %c0_6], %5 {strides = array<i32>} : memref<16x2944xf32, #tpu.memory_space<vmem>>, vector<16x2944xf32>,
    %c0_7 = arith.constant 0 : index
    %c2848 = arith.constant 2848 : index
    %7 = vector.load %arg6[%c0_7, %c2848] : memref<16x2944xf32, #tpu.memory_space<vmem>>, vector<16x89xf32>
    %8 = arith.negf %7 : vector<16x89xf32>
    %9 = math.exp %8 : vector<16x89xf32>
    %cst_8 = arith.constant 1.000000e+00 : f32
    %10 = vector.broadcast %cst_8 : f32 to vector<16x89xf32>
    %11 = arith.addf %10, %9 : vector<16x89xf32>
    %12 = arith.divf %10, %11 : vector<16x89xf32>
    %c0_9 = arith.constant 0 : index
    %c2816 = arith.constant 2816 : index
    %13 = vector.load %arg6[%c0_9, %c2816] : memref<16x2944xf32, #tpu.memory_space<vmem>>, vector<16x32xf32>
    %14 = vector.extract_strided_slice %12 {offsets = [0, 88], sizes = [16, 1], strides = [1, 1]} : vector<16x89xf32> to vector<16x1xf32>
    %15 = vector.broadcast %14 : vector<16x1xf32> to vector<16x32xf32>
    %16 = arith.mulf %13, %15 : vector<16x32xf32>
    %c0_10 = arith.constant 0 : index
    %c0_11 = arith.constant 0 : index
    %17 = vector.load %arg6[%c0_10, %c0_11] : memref<16x2944xf32, #tpu.memory_space<vmem>>, vector<16x32xf32>
    %18 = vector.extract_strided_slice %12 {offsets = [0, 0], sizes = [16, 1], strides = [1, 1]} : vector<16x89xf32> to vector<16x1xf32>
    %19 = vector.broadcast %18 : vector<16x1xf32> to vector<16x32xf32>
    %20 = arith.mulf %17, %19 : vector<16x32xf32>
    %c0_12 = arith.constant 0 : index
    %c0_13 = arith.constant 0 : index
    %21 = vector.load %arg7[%c0_12, %c0_13] : memref<1408x32xf32, #tpu.memory_space<vmem>>, vector<16x32xf32>
    tpu.vector_store %arg7[%c0_12, %c0_13], %20 {strides = array<i32>} : memref<1408x32xf32, #tpu.memory_space<vmem>>, vector<16x32xf32>,
    %c0_14 = arith.constant 0 : index
    %c1408 = arith.constant 1408 : index
    %22 = vector.load %arg6[%c0_14, %c1408] : memref<16x2944xf32, #tpu.memory_space<vmem>>, vector<16x32xf32>
    %23 = vector.extract_strided_slice %12 {offsets = [0, 44], sizes = [16, 1], strides = [1, 1]} : vector<16x89xf32> to vector<16x1xf32>
    %24 = vector.broadcast %23 : vector<16x1xf32> to vector<16x32xf32>
    %25 = arith.mulf %22, %24 : vector<16x32xf32>
    %c704 = arith.constant 704 : index
    %c0_15 = arith.constant 0 : index
    %26 = vector.load %arg7[%c704, %c0_15] : memref<1408x32xf32, #tpu.memory_space<vmem>>, vector<16x32xf32>
    tpu.vector_store %arg7[%c704, %c0_15], %25 {strides = array<i32>} : memref<1408x32xf32, #tpu.memory_space<vmem>>, vector<16x32xf32>,
    %c0_16 = arith.constant 0 : index
    %c32 = arith.constant 32 : index
    %27 = vector.load %arg6[%c0_16, %c32] : memref<16x2944xf32, #tpu.memory_space<vmem>>, vector<16x32xf32>
    %28 = vector.extract_strided_slice %12 {offsets = [0, 1], sizes = [16, 1], strides = [1, 1]} : vector<16x89xf32> to vector<16x1xf32>
    %29 = vector.broadcast %28 : vector<16x1xf32> to vector<16x32xf32>
    %30 = arith.mulf %27, %29 : vector<16x32xf32>
    %c16 = arith.constant 16 : index
    %c0_17 = arith.constant 0 : index
    %31 = vector.load %arg7[%c16, %c0_17] : memref<1408x32xf32, #tpu.memory_space<vmem>>, vector<16x32xf32>
    tpu.vector_store %arg7[%c16, %c0_17], %30 {strides = array<i32>} : memref<1408x32xf32, #tpu.memory_space<vmem>>, vector<16x32xf32>,
    %c0_18 = arith.constant 0 : index
    %c1440 = arith.constant 1440 : index
    %32 = vector.load %arg6[%c0_18, %c1440] : memref<16x2944xf32, #tpu.memory_space<vmem>>, vector<16x32xf32>
    %33 = vector.extract_strided_slice %12 {offsets = [0, 45], sizes = [16, 1], strides = [1, 1]} : vector<16x89xf32> to vector<16x1xf32>
    %34 = vector.broadcast %33 : vector<16x1xf32> to vector<16x32xf32>
    %35 = arith.mulf %32, %34 : vector<16x32xf32>
    %c720 = arith.constant 720 : index
    %c0_19 = arith.constant 0 : index
    %36 = vector.load %arg7[%c720, %c0_19] : memref<1408x32xf32, #tpu.memory_space<vmem>>, vector<16x32xf32>
    tpu.vector_store %arg7[%c720, %c0_19], %35 {strides = array<i32>} : memref<1408x32xf32, #tpu.memory_space<vmem>>, vector<16x32xf32>,
    %c0_20 = arith.constant 0 : index
    %c64 = arith.constant 64 : index
    %37 = vector.load %arg6[%c0_20, %c64] : memref<16x2944xf32, #tpu.memory_space<vmem>>, vector<16x32xf32>
    %38 = vector.extract_strided_slice %12 {offsets = [0, 2], sizes = [16, 1], strides = [1, 1]} : vector<16x89xf32> to vector<16x1xf32>
    %39 = vector.broadcast %38 : vector<16x1xf32> to vector<16x32xf32>
    %40 = arith.mulf %37, %39 : vector<16x32xf32>
    %c32_21 = arith.constant 32 : index
    %c0_22 = arith.constant 0 : index
    %41 = vector.load %arg7[%c32_21, %c0_22] : memref<1408x32xf32, #tpu.memory_space<vmem>>, vector<16x32xf32>
    tpu.vector_store %arg7[%c32_21, %c0_22], %40 {strides = array<i32>} : memref<1408x32xf32, #tpu.memory_space<vmem>>, vector<16x32xf32>,
    %c0_23 = arith.constant 0 : index
    %c1472 = arith.constant 1472 : index
    %42 = vector.load %arg6[%c0_23, %c1472] : memref<16x2944xf32, #tpu.memory_space<vmem>>, vector<16x32xf32>
    %43 = vector.extract_strided_slice %12 {offsets = [0, 46], sizes = [16, 1], strides = [1, 1]} : vector<16x89xf32> to vector<16x1xf32>
    %44 = vector.broadcast %43 : vector<16x1xf32> to vector<16x32xf32>
    %45 = arith.mulf %42, %44 : vector<16x32xf32>
    %c736 = arith.constant 736 : index
    %c0_24 = arith.constant 0 : index
    %46 = vector.load %arg7[%c736, %c0_24] : memref<1408x32xf32, #tpu.memory_space<vmem>>, vector<16x32xf32>
    tpu.vector_store %arg7[%c736, %c0_24], %45 {strides = array<i32>} : memref<1408x32xf32, #tpu.memory_space<vmem>>, vector<16x32xf32>,
    %c0_25 = arith.constant 0 : index
    %c96 = arith.constant 96 : index
    %47 = vector.load %arg6[%c0_25, %c96] : memref<16x2944xf32, #tpu.memory_space<vmem>>, vector<16x32xf32>
    %48 = vector.extract_strided_slice %12 {offsets = [0, 3], sizes = [16, 1], strides = [1, 1]} : vector<16x89xf32> to vector<16x1xf32>
    %49 = vector.broadcast %48 : vector<16x1xf32> to vector<16x32xf32>
    %50 = arith.mulf %47, %49 : vector<16x32xf32>
    %c48 = arith.constant 48 : index
    %c0_26 = arith.constant 0 : index
    %51 = vector.load %arg7[%c48, %c0_26] : memref<1408x32xf32, #tpu.memory_space<vmem>>, vector<16x32xf32>
    tpu.vector_store %arg7[%c48, %c0_26], %50 {strides = array<i32>} : memref<1408x32xf32, #tpu.memory_space<vmem>>, vector<16x32xf32>,
    %c0_27 = arith.constant 0 : index
    %c1504 = arith.constant 1504 : index
    %52 = vector.load %arg6[%c0_27, %c1504] : memref<16x2944xf32, #tpu.memory_space<vmem>>, vector<16x32xf32>
    %53 = vector.extract_strided_slice %12 {offsets = [0, 47], sizes = [16, 1], strides = [1, 1]} : vector<16x89xf32> to vector<16x1xf32>
    %54 = vector.broadcast %53 : vector<16x1xf32> to vector<16x32xf32>
    %55 = arith.mulf %52, %54 : vector<16x32xf32>
    %c752 = arith.constant 752 : index
    %c0_28 = arith.constant 0 : index
    %56 = vector.load %arg7[%c752, %c0_28] : memref<1408x32xf32, #tpu.memory_space<vmem>>, vector<16x32xf32>
    tpu.vector_store %arg7[%c752, %c0_28], %55 {strides = array<i32>} : memref<1408x32xf32, #tpu.memory_space<vmem>>, vector<16x32xf32>,
    %c0_29 = arith.constant 0 : index
    %c128 = arith.constant 128 : index
    %57 = vector.load %arg6[%c0_29, %c128] : memref<16x2944xf32, #tpu.memory_space<vmem>>, vector<16x32xf32>
    %58 = vector.extract_strided_slice %12 {offsets = [0, 4], sizes = [16, 1], strides = [1, 1]} : vector<16x89xf32> to vector<16x1xf32>
    %59 = vector.broadcast %58 : vector<16x1xf32> to vector<16x32xf32>
    %60 = arith.mulf %57, %59 : vector<16x32xf32>
    %c64_30 = arith.constant 64 : index
    %c0_31 = arith.constant 0 : index
    %61 = vector.load %arg7[%c64_30, %c0_31] : memref<1408x32xf32, #tpu.memory_space<vmem>>, vector<16x32xf32>
    tpu.vector_store %arg7[%c64_30, %c0_31], %60 {strides = array<i32>} : memref<1408x32xf32, #tpu.memory_space<vmem>>, vector<16x32xf32>,
    %c0_32 = arith.constant 0 : index
    %c1536 = arith.constant 1536 : index
    %62 = vector.load %arg6[%c0_32, %c1536] : memref<16x2944xf32, #tpu.memory_space<vmem>>, vector<16x32xf32>
    %63 = vector.extract_strided_slice %12 {offsets = [0, 48], sizes = [16, 1], strides = [1, 1]} : vector<16x89xf32> to vector<16x1xf32>
    %64 = vector.broadcast %63 : vector<16x1xf32> to vector<16x32xf32>
    %65 = arith.mulf %62, %64 : vector<16x32xf32>
    %c768 = arith.constant 768 : index
    %c0_33 = arith.constant 0 : index
    %66 = vector.load %arg7[%c768, %c0_33] : memref<1408x32xf32, #tpu.memory_space<vmem>>, vector<16x32xf32>
    tpu.vector_store %arg7[%c768, %c0_33], %65 {strides = array<i32>} : memref<1408x32xf32, #tpu.memory_space<vmem>>, vector<16x32xf32>,
    %c0_34 = arith.constant 0 : index
    %c160 = arith.constant 160 : index
    %67 = vector.load %arg6[%c0_34, %c160] : memref<16x2944xf32, #tpu.memory_space<vmem>>, vector<16x32xf32>
    %68 = vector.extract_strided_slice %12 {offsets = [0, 5], sizes = [16, 1], strides = [1, 1]} : vector<16x89xf32> to vector<16x1xf32>
    %69 = vector.broadcast %68 : vector<16x1xf32> to vector<16x32xf32>
    %70 = arith.mulf %67, %69 : vector<16x32xf32>
    %c80 = arith.constant 80 : index
    %c0_35 = arith.constant 0 : index
    %71 = vector.load %arg7[%c80, %c0_35] : memref<1408x32xf32, #tpu.memory_space<vmem>>, vector<16x32xf32>
    tpu.vector_store %arg7[%c80, %c0_35], %70 {strides = array<i32>} : memref<1408x32xf32, #tpu.memory_space<vmem>>, vector<16x32xf32>,
    %c0_36 = arith.constant 0 : index
    %c1568 = arith.constant 1568 : index
    %72 = vector.load %arg6[%c0_36, %c1568] : memref<16x2944xf32, #tpu.memory_space<vmem>>, vector<16x32xf32>
    %73 = vector.extract_strided_slice %12 {offsets = [0, 49], sizes = [16, 1], strides = [1, 1]} : vector<16x89xf32> to vector<16x1xf32>
    %74 = vector.broadcast %73 : vector<16x1xf32> to vector<16x32xf32>
    %75 = arith.mulf %72, %74 : vector<16x32xf32>
    %c784 = arith.constant 784 : index
    %c0_37 = arith.constant 0 : index
    %76 = vector.load %arg7[%c784, %c0_37] : memref<1408x32xf32, #tpu.memory_space<vmem>>, vector<16x32xf32>
    tpu.vector_store %arg7[%c784, %c0_37], %75 {strides = array<i32>} : memref<1408x32xf32, #tpu.memory_space<vmem>>, vector<16x32xf32>,
    %c0_38 = arith.constant 0 : index
    %c192 = arith.constant 192 : index
    %77 = vector.load %arg6[%c0_38, %c192] : memref<16x2944xf32, #tpu.memory_space<vmem>>, vector<16x32xf32>
    %78 = vector.extract_strided_slice %12 {offsets = [0, 6], sizes = [16, 1], strides = [1, 1]} : vector<16x89xf32> to vector<16x1xf32>
    %79 = vector.broadcast %78 : vector<16x1xf32> to vector<16x32xf32>
    %80 = arith.mulf %77, %79 : vector<16x32xf32>
    %c96_39 = arith.constant 96 : index
    %c0_40 = arith.constant 0 : index
    %81 = vector.load %arg7[%c96_39, %c0_40] : memref<1408x32xf32, #tpu.memory_space<vmem>>, vector<16x32xf32>
    tpu.vector_store %arg7[%c96_39, %c0_40], %80 {strides = array<i32>} : memref<1408x32xf32, #tpu.memory_space<vmem>>, vector<16x32xf32>,
    %c0_41 = arith.constant 0 : index
    %c1600 = arith.constant 1600 : index
    %82 = vector.load %arg6[%c0_41, %c1600] : memref<16x2944xf32, #tpu.memory_space<vmem>>, vector<16x32xf32>
    %83 = vector.extract_strided_slice %12 {offsets = [0, 50], sizes = [16, 1], strides = [1, 1]} : vector<16x89xf32> to vector<16x1xf32>
    %84 = vector.broadcast %83 : vector<16x1xf32> to vector<16x32xf32>
    %85 = arith.mulf %82, %84 : vector<16x32xf32>
    %c800 = arith.constant 800 : index
    %c0_42 = arith.constant 0 : index
    %86 = vector.load %arg7[%c800, %c0_42] : memref<1408x32xf32, #tpu.memory_space<vmem>>, vector<16x32xf32>
    tpu.vector_store %arg7[%c800, %c0_42], %85 {strides = array<i32>} : memref<1408x32xf32, #tpu.memory_space<vmem>>, vector<16x32xf32>,
    %c0_43 = arith.constant 0 : index
    %c224 = arith.constant 224 : index
    %87 = vector.load %arg6[%c0_43, %c224] : memref<16x2944xf32, #tpu.memory_space<vmem>>, vector<16x32xf32>
    %88 = vector.extract_strided_slice %12 {offsets = [0, 7], sizes = [16, 1], strides = [1, 1]} : vector<16x89xf32> to vector<16x1xf32>
    %89 = vector.broadcast %88 : vector<16x1xf32> to vector<16x32xf32>
    %90 = arith.mulf %87, %89 : vector<16x32xf32>
    %c112 = arith.constant 112 : index
    %c0_44 = arith.constant 0 : index
    %91 = vector.load %arg7[%c112, %c0_44] : memref<1408x32xf32, #tpu.memory_space<vmem>>, vector<16x32xf32>
    tpu.vector_store %arg7[%c112, %c0_44], %90 {strides = array<i32>} : memref<1408x32xf32, #tpu.memory_space<vmem>>, vector<16x32xf32>,
    %c0_45 = arith.constant 0 : index
    %c1632 = arith.constant 1632 : index
    %92 = vector.load %arg6[%c0_45, %c1632] : memref<16x2944xf32, #tpu.memory_space<vmem>>, vector<16x32xf32>
    %93 = vector.extract_strided_slice %12 {offsets = [0, 51], sizes = [16, 1], strides = [1, 1]} : vector<16x89xf32> to vector<16x1xf32>
    %94 = vector.broadcast %93 : vector<16x1xf32> to vector<16x32xf32>
    %95 = arith.mulf %92, %94 : vector<16x32xf32>
    %c816 = arith.constant 816 : index
    %c0_46 = arith.constant 0 : index
    %96 = vector.load %arg7[%c816, %c0_46] : memref<1408x32xf32, #tpu.memory_space<vmem>>, vector<16x32xf32>
    tpu.vector_store %arg7[%c816, %c0_46], %95 {strides = array<i32>} : memref<1408x32xf32, #tpu.memory_space<vmem>>, vector<16x32xf32>,
    %c0_47 = arith.constant 0 : index
    %c256 = arith.constant 256 : index
    %97 = vector.load %arg6[%c0_47, %c256] : memref<16x2944xf32, #tpu.memory_space<vmem>>, vector<16x32xf32>
    %98 = vector.extract_strided_slice %12 {offsets = [0, 8], sizes = [16, 1], strides = [1, 1]} : vector<16x89xf32> to vector<16x1xf32>
    %99 = vector.broadcast %98 : vector<16x1xf32> to vector<16x32xf32>
    %100 = arith.mulf %97, %99 : vector<16x32xf32>
    %c128_48 = arith.constant 128 : index
    %c0_49 = arith.constant 0 : index
    %101 = vector.load %arg7[%c128_48, %c0_49] : memref<1408x32xf32, #tpu.memory_space<vmem>>, vector<16x32xf32>
    tpu.vector_store %arg7[%c128_48, %c0_49], %100 {strides = array<i32>} : memref<1408x32xf32, #tpu.memory_space<vmem>>, vector<16x32xf32>,
    %c0_50 = arith.constant 0 : index
    %c1664 = arith.constant 1664 : index
    %102 = vector.load %arg6[%c0_50, %c1664] : memref<16x2944xf32, #tpu.memory_space<vmem>>, vector<16x32xf32>
    %103 = vector.extract_strided_slice %12 {offsets = [0, 52], sizes = [16, 1], strides = [1, 1]} : vector<16x89xf32> to vector<16x1xf32>
    %104 = vector.broadcast %103 : vector<16x1xf32> to vector<16x32xf32>
    %105 = arith.mulf %102, %104 : vector<16x32xf32>
    %c832 = arith.constant 832 : index
    %c0_51 = arith.constant 0 : index
    %106 = vector.load %arg7[%c832, %c0_51] : memref<1408x32xf32, #tpu.memory_space<vmem>>, vector<16x32xf32>
    tpu.vector_store %arg7[%c832, %c0_51], %105 {strides = array<i32>} : memref<1408x32xf32, #tpu.memory_space<vmem>>, vector<16x32xf32>,
    %c0_52 = arith.constant 0 : index
    %c288 = arith.constant 288 : index
    %107 = vector.load %arg6[%c0_52, %c288] : memref<16x2944xf32, #tpu.memory_space<vmem>>, vector<16x32xf32>
    %108 = vector.extract_strided_slice %12 {offsets = [0, 9], sizes = [16, 1], strides = [1, 1]} : vector<16x89xf32> to vector<16x1xf32>
    %109 = vector.broadcast %108 : vector<16x1xf32> to vector<16x32xf32>
    %110 = arith.mulf %107, %109 : vector<16x32xf32>
    %c144 = arith.constant 144 : index
    %c0_53 = arith.constant 0 : index
    %111 = vector.load %arg7[%c144, %c0_53] : memref<1408x32xf32, #tpu.memory_space<vmem>>, vector<16x32xf32>
    tpu.vector_store %arg7[%c144, %c0_53], %110 {strides = array<i32>} : memref<1408x32xf32, #tpu.memory_space<vmem>>, vector<16x32xf32>,
    %c0_54 = arith.constant 0 : index
    %c1696 = arith.constant 1696 : index
    %112 = vector.load %arg6[%c0_54, %c1696] : memref<16x2944xf32, #tpu.memory_space<vmem>>, vector<16x32xf32>
    %113 = vector.extract_strided_slice %12 {offsets = [0, 53], sizes = [16, 1], strides = [1, 1]} : vector<16x89xf32> to vector<16x1xf32>
    %114 = vector.broadcast %113 : vector<16x1xf32> to vector<16x32xf32>
    %115 = arith.mulf %112, %114 : vector<16x32xf32>
    %c848 = arith.constant 848 : index
    %c0_55 = arith.constant 0 : index
    %116 = vector.load %arg7[%c848, %c0_55] : memref<1408x32xf32, #tpu.memory_space<vmem>>, vector<16x32xf32>
    tpu.vector_store %arg7[%c848, %c0_55], %115 {strides = array<i32>} : memref<1408x32xf32, #tpu.memory_space<vmem>>, vector<16x32xf32>,
    %c0_56 = arith.constant 0 : index
    %c320 = arith.constant 320 : index
    %117 = vector.load %arg6[%c0_56, %c320] : memref<16x2944xf32, #tpu.memory_space<vmem>>, vector<16x32xf32>
    %118 = vector.extract_strided_slice %12 {offsets = [0, 10], sizes = [16, 1], strides = [1, 1]} : vector<16x89xf32> to vector<16x1xf32>
    %119 = vector.broadcast %118 : vector<16x1xf32> to vector<16x32xf32>
    %120 = arith.mulf %117, %119 : vector<16x32xf32>
    %c160_57 = arith.constant 160 : index
    %c0_58 = arith.constant 0 : index
    %121 = vector.load %arg7[%c160_57, %c0_58] : memref<1408x32xf32, #tpu.memory_space<vmem>>, vector<16x32xf32>
    tpu.vector_store %arg7[%c160_57, %c0_58], %120 {strides = array<i32>} : memref<1408x32xf32, #tpu.memory_space<vmem>>, vector<16x32xf32>,
    %c0_59 = arith.constant 0 : index
    %c1728 = arith.constant 1728 : index
    %122 = vector.load %arg6[%c0_59, %c1728] : memref<16x2944xf32, #tpu.memory_space<vmem>>, vector<16x32xf32>
    %123 = vector.extract_strided_slice %12 {offsets = [0, 54], sizes = [16, 1], strides = [1, 1]} : vector<16x89xf32> to vector<16x1xf32>
    %124 = vector.broadcast %123 : vector<16x1xf32> to vector<16x32xf32>
    %125 = arith.mulf %122, %124 : vector<16x32xf32>
    %c864 = arith.constant 864 : index
    %c0_60 = arith.constant 0 : index
    %126 = vector.load %arg7[%c864, %c0_60] : memref<1408x32xf32, #tpu.memory_space<vmem>>, vector<16x32xf32>
    tpu.vector_store %arg7[%c864, %c0_60], %125 {strides = array<i32>} : memref<1408x32xf32, #tpu.memory_space<vmem>>, vector<16x32xf32>,
    %c0_61 = arith.constant 0 : index
    %c352 = arith.constant 352 : index
    %127 = vector.load %arg6[%c0_61, %c352] : memref<16x2944xf32, #tpu.memory_space<vmem>>, vector<16x32xf32>
    %128 = vector.extract_strided_slice %12 {offsets = [0, 11], sizes = [16, 1], strides = [1, 1]} : vector<16x89xf32> to vector<16x1xf32>
    %129 = vector.broadcast %128 : vector<16x1xf32> to vector<16x32xf32>
    %130 = arith.mulf %127, %129 : vector<16x32xf32>
    %c176 = arith.constant 176 : index
    %c0_62 = arith.constant 0 : index
    %131 = vector.load %arg7[%c176, %c0_62] : memref<1408x32xf32, #tpu.memory_space<vmem>>, vector<16x32xf32>
    tpu.vector_store %arg7[%c176, %c0_62], %130 {strides = array<i32>} : memref<1408x32xf32, #tpu.memory_space<vmem>>, vector<16x32xf32>,
    %c0_63 = arith.constant 0 : index
    %c1760 = arith.constant 1760 : index
    %132 = vector.load %arg6[%c0_63, %c1760] : memref<16x2944xf32, #tpu.memory_space<vmem>>, vector<16x32xf32>
    %133 = vector.extract_strided_slice %12 {offsets = [0, 55], sizes = [16, 1], strides = [1, 1]} : vector<16x89xf32> to vector<16x1xf32>
    %134 = vector.broadcast %133 : vector<16x1xf32> to vector<16x32xf32>
    %135 = arith.mulf %132, %134 : vector<16x32xf32>
    %c880 = arith.constant 880 : index
    %c0_64 = arith.constant 0 : index
    %136 = vector.load %arg7[%c880, %c0_64] : memref<1408x32xf32, #tpu.memory_space<vmem>>, vector<16x32xf32>
    tpu.vector_store %arg7[%c880, %c0_64], %135 {strides = array<i32>} : memref<1408x32xf32, #tpu.memory_space<vmem>>, vector<16x32xf32>,
    %c0_65 = arith.constant 0 : index
    %c384 = arith.constant 384 : index
    %137 = vector.load %arg6[%c0_65, %c384] : memref<16x2944xf32, #tpu.memory_space<vmem>>, vector<16x32xf32>
    %138 = vector.extract_strided_slice %12 {offsets = [0, 12], sizes = [16, 1], strides = [1, 1]} : vector<16x89xf32> to vector<16x1xf32>
    %139 = vector.broadcast %138 : vector<16x1xf32> to vector<16x32xf32>
    %140 = arith.mulf %137, %139 : vector<16x32xf32>
    %c192_66 = arith.constant 192 : index
    %c0_67 = arith.constant 0 : index
    %141 = vector.load %arg7[%c192_66, %c0_67] : memref<1408x32xf32, #tpu.memory_space<vmem>>, vector<16x32xf32>
    tpu.vector_store %arg7[%c192_66, %c0_67], %140 {strides = array<i32>} : memref<1408x32xf32, #tpu.memory_space<vmem>>, vector<16x32xf32>,
    %c0_68 = arith.constant 0 : index
    %c1792 = arith.constant 1792 : index
    %142 = vector.load %arg6[%c0_68, %c1792] : memref<16x2944xf32, #tpu.memory_space<vmem>>, vector<16x32xf32>
    %143 = vector.extract_strided_slice %12 {offsets = [0, 56], sizes = [16, 1], strides = [1, 1]} : vector<16x89xf32> to vector<16x1xf32>
    %144 = vector.broadcast %143 : vector<16x1xf32> to vector<16x32xf32>
    %145 = arith.mulf %142, %144 : vector<16x32xf32>
    %c896 = arith.constant 896 : index
    %c0_69 = arith.constant 0 : index
    %146 = vector.load %arg7[%c896, %c0_69] : memref<1408x32xf32, #tpu.memory_space<vmem>>, vector<16x32xf32>
    tpu.vector_store %arg7[%c896, %c0_69], %145 {strides = array<i32>} : memref<1408x32xf32, #tpu.memory_space<vmem>>, vector<16x32xf32>,
    %c0_70 = arith.constant 0 : index
    %c416 = arith.constant 416 : index
    %147 = vector.load %arg6[%c0_70, %c416] : memref<16x2944xf32, #tpu.memory_space<vmem>>, vector<16x32xf32>
    %148 = vector.extract_strided_slice %12 {offsets = [0, 13], sizes = [16, 1], strides = [1, 1]} : vector<16x89xf32> to vector<16x1xf32>
    %149 = vector.broadcast %148 : vector<16x1xf32> to vector<16x32xf32>
    %150 = arith.mulf %147, %149 : vector<16x32xf32>
    %c208 = arith.constant 208 : index
    %c0_71 = arith.constant 0 : index
    %151 = vector.load %arg7[%c208, %c0_71] : memref<1408x32xf32, #tpu.memory_space<vmem>>, vector<16x32xf32>
    tpu.vector_store %arg7[%c208, %c0_71], %150 {strides = array<i32>} : memref<1408x32xf32, #tpu.memory_space<vmem>>, vector<16x32xf32>,
    %c0_72 = arith.constant 0 : index
    %c1824 = arith.constant 1824 : index
    %152 = vector.load %arg6[%c0_72, %c1824] : memref<16x2944xf32, #tpu.memory_space<vmem>>, vector<16x32xf32>
    %153 = vector.extract_strided_slice %12 {offsets = [0, 57], sizes = [16, 1], strides = [1, 1]} : vector<16x89xf32> to vector<16x1xf32>
    %154 = vector.broadcast %153 : vector<16x1xf32> to vector<16x32xf32>
    %155 = arith.mulf %152, %154 : vector<16x32xf32>
    %c912 = arith.constant 912 : index
    %c0_73 = arith.constant 0 : index
    %156 = vector.load %arg7[%c912, %c0_73] : memref<1408x32xf32, #tpu.memory_space<vmem>>, vector<16x32xf32>
    tpu.vector_store %arg7[%c912, %c0_73], %155 {strides = array<i32>} : memref<1408x32xf32, #tpu.memory_space<vmem>>, vector<16x32xf32>,
    %c0_74 = arith.constant 0 : index
    %c448 = arith.constant 448 : index
    %157 = vector.load %arg6[%c0_74, %c448] : memref<16x2944xf32, #tpu.memory_space<vmem>>, vector<16x32xf32>
    %158 = vector.extract_strided_slice %12 {offsets = [0, 14], sizes = [16, 1], strides = [1, 1]} : vector<16x89xf32> to vector<16x1xf32>
    %159 = vector.broadcast %158 : vector<16x1xf32> to vector<16x32xf32>
    %160 = arith.mulf %157, %159 : vector<16x32xf32>
    %c224_75 = arith.constant 224 : index
    %c0_76 = arith.constant 0 : index
    %161 = vector.load %arg7[%c224_75, %c0_76] : memref<1408x32xf32, #tpu.memory_space<vmem>>, vector<16x32xf32>
    tpu.vector_store %arg7[%c224_75, %c0_76], %160 {strides = array<i32>} : memref<1408x32xf32, #tpu.memory_space<vmem>>, vector<16x32xf32>,
    %c0_77 = arith.constant 0 : index
    %c1856 = arith.constant 1856 : index
    %162 = vector.load %arg6[%c0_77, %c1856] : memref<16x2944xf32, #tpu.memory_space<vmem>>, vector<16x32xf32>
    %163 = vector.extract_strided_slice %12 {offsets = [0, 58], sizes = [16, 1], strides = [1, 1]} : vector<16x89xf32> to vector<16x1xf32>
    %164 = vector.broadcast %163 : vector<16x1xf32> to vector<16x32xf32>
    %165 = arith.mulf %162, %164 : vector<16x32xf32>
    %c928 = arith.constant 928 : index
    %c0_78 = arith.constant 0 : index
    %166 = vector.load %arg7[%c928, %c0_78] : memref<1408x32xf32, #tpu.memory_space<vmem>>, vector<16x32xf32>
    tpu.vector_store %arg7[%c928, %c0_78], %165 {strides = array<i32>} : memref<1408x32xf32, #tpu.memory_space<vmem>>, vector<16x32xf32>,
    %c0_79 = arith.constant 0 : index
    %c480 = arith.constant 480 : index
    %167 = vector.load %arg6[%c0_79, %c480] : memref<16x2944xf32, #tpu.memory_space<vmem>>, vector<16x32xf32>
    %168 = vector.extract_strided_slice %12 {offsets = [0, 15], sizes = [16, 1], strides = [1, 1]} : vector<16x89xf32> to vector<16x1xf32>
    %169 = vector.broadcast %168 : vector<16x1xf32> to vector<16x32xf32>
    %170 = arith.mulf %167, %169 : vector<16x32xf32>
    %c240 = arith.constant 240 : index
    %c0_80 = arith.constant 0 : index
    %171 = vector.load %arg7[%c240, %c0_80] : memref<1408x32xf32, #tpu.memory_space<vmem>>, vector<16x32xf32>
    tpu.vector_store %arg7[%c240, %c0_80], %170 {strides = array<i32>} : memref<1408x32xf32, #tpu.memory_space<vmem>>, vector<16x32xf32>,
    %c0_81 = arith.constant 0 : index
    %c1888 = arith.constant 1888 : index
    %172 = vector.load %arg6[%c0_81, %c1888] : memref<16x2944xf32, #tpu.memory_space<vmem>>, vector<16x32xf32>
    %173 = vector.extract_strided_slice %12 {offsets = [0, 59], sizes = [16, 1], strides = [1, 1]} : vector<16x89xf32> to vector<16x1xf32>
    %174 = vector.broadcast %173 : vector<16x1xf32> to vector<16x32xf32>
    %175 = arith.mulf %172, %174 : vector<16x32xf32>
    %c944 = arith.constant 944 : index
    %c0_82 = arith.constant 0 : index
    %176 = vector.load %arg7[%c944, %c0_82] : memref<1408x32xf32, #tpu.memory_space<vmem>>, vector<16x32xf32>
    tpu.vector_store %arg7[%c944, %c0_82], %175 {strides = array<i32>} : memref<1408x32xf32, #tpu.memory_space<vmem>>, vector<16x32xf32>,
    %c0_83 = arith.constant 0 : index
    %c512 = arith.constant 512 : index
    %177 = vector.load %arg6[%c0_83, %c512] : memref<16x2944xf32, #tpu.memory_space<vmem>>, vector<16x32xf32>
    %178 = vector.extract_strided_slice %12 {offsets = [0, 16], sizes = [16, 1], strides = [1, 1]} : vector<16x89xf32> to vector<16x1xf32>
    %179 = vector.broadcast %178 : vector<16x1xf32> to vector<16x32xf32>
    %180 = arith.mulf %177, %179 : vector<16x32xf32>
    %c256_84 = arith.constant 256 : index
    %c0_85 = arith.constant 0 : index
    %181 = vector.load %arg7[%c256_84, %c0_85] : memref<1408x32xf32, #tpu.memory_space<vmem>>, vector<16x32xf32>
    tpu.vector_store %arg7[%c256_84, %c0_85], %180 {strides = array<i32>} : memref<1408x32xf32, #tpu.memory_space<vmem>>, vector<16x32xf32>,
    %c0_86 = arith.constant 0 : index
    %c1920 = arith.constant 1920 : index
    %182 = vector.load %arg6[%c0_86, %c1920] : memref<16x2944xf32, #tpu.memory_space<vmem>>, vector<16x32xf32>
    %183 = vector.extract_strided_slice %12 {offsets = [0, 60], sizes = [16, 1], strides = [1, 1]} : vector<16x89xf32> to vector<16x1xf32>
    %184 = vector.broadcast %183 : vector<16x1xf32> to vector<16x32xf32>
    %185 = arith.mulf %182, %184 : vector<16x32xf32>
    %c960 = arith.constant 960 : index
    %c0_87 = arith.constant 0 : index
    %186 = vector.load %arg7[%c960, %c0_87] : memref<1408x32xf32, #tpu.memory_space<vmem>>, vector<16x32xf32>
    tpu.vector_store %arg7[%c960, %c0_87], %185 {strides = array<i32>} : memref<1408x32xf32, #tpu.memory_space<vmem>>, vector<16x32xf32>,
    %c0_88 = arith.constant 0 : index
    %c544 = arith.constant 544 : index
    %187 = vector.load %arg6[%c0_88, %c544] : memref<16x2944xf32, #tpu.memory_space<vmem>>, vector<16x32xf32>
    %188 = vector.extract_strided_slice %12 {offsets = [0, 17], sizes = [16, 1], strides = [1, 1]} : vector<16x89xf32> to vector<16x1xf32>
    %189 = vector.broadcast %188 : vector<16x1xf32> to vector<16x32xf32>
    %190 = arith.mulf %187, %189 : vector<16x32xf32>
    %c272 = arith.constant 272 : index
    %c0_89 = arith.constant 0 : index
    %191 = vector.load %arg7[%c272, %c0_89] : memref<1408x32xf32, #tpu.memory_space<vmem>>, vector<16x32xf32>
    tpu.vector_store %arg7[%c272, %c0_89], %190 {strides = array<i32>} : memref<1408x32xf32, #tpu.memory_space<vmem>>, vector<16x32xf32>,
    %c0_90 = arith.constant 0 : index
    %c1952 = arith.constant 1952 : index
    %192 = vector.load %arg6[%c0_90, %c1952] : memref<16x2944xf32, #tpu.memory_space<vmem>>, vector<16x32xf32>
    %193 = vector.extract_strided_slice %12 {offsets = [0, 61], sizes = [16, 1], strides = [1, 1]} : vector<16x89xf32> to vector<16x1xf32>
    %194 = vector.broadcast %193 : vector<16x1xf32> to vector<16x32xf32>
    %195 = arith.mulf %192, %194 : vector<16x32xf32>
    %c976 = arith.constant 976 : index
    %c0_91 = arith.constant 0 : index
    %196 = vector.load %arg7[%c976, %c0_91] : memref<1408x32xf32, #tpu.memory_space<vmem>>, vector<16x32xf32>
    tpu.vector_store %arg7[%c976, %c0_91], %195 {strides = array<i32>} : memref<1408x32xf32, #tpu.memory_space<vmem>>, vector<16x32xf32>,
    %c0_92 = arith.constant 0 : index
    %c576 = arith.constant 576 : index
    %197 = vector.load %arg6[%c0_92, %c576] : memref<16x2944xf32, #tpu.memory_space<vmem>>, vector<16x32xf32>
    %198 = vector.extract_strided_slice %12 {offsets = [0, 18], sizes = [16, 1], strides = [1, 1]} : vector<16x89xf32> to vector<16x1xf32>
    %199 = vector.broadcast %198 : vector<16x1xf32> to vector<16x32xf32>
    %200 = arith.mulf %197, %199 : vector<16x32xf32>
    %c288_93 = arith.constant 288 : index
    %c0_94 = arith.constant 0 : index
    %201 = vector.load %arg7[%c288_93, %c0_94] : memref<1408x32xf32, #tpu.memory_space<vmem>>, vector<16x32xf32>
    tpu.vector_store %arg7[%c288_93, %c0_94], %200 {strides = array<i32>} : memref<1408x32xf32, #tpu.memory_space<vmem>>, vector<16x32xf32>,
    %c0_95 = arith.constant 0 : index
    %c1984 = arith.constant 1984 : index
    %202 = vector.load %arg6[%c0_95, %c1984] : memref<16x2944xf32, #tpu.memory_space<vmem>>, vector<16x32xf32>
    %203 = vector.extract_strided_slice %12 {offsets = [0, 62], sizes = [16, 1], strides = [1, 1]} : vector<16x89xf32> to vector<16x1xf32>
    %204 = vector.broadcast %203 : vector<16x1xf32> to vector<16x32xf32>
    %205 = arith.mulf %202, %204 : vector<16x32xf32>
    %c992 = arith.constant 992 : index
    %c0_96 = arith.constant 0 : index
    %206 = vector.load %arg7[%c992, %c0_96] : memref<1408x32xf32, #tpu.memory_space<vmem>>, vector<16x32xf32>
    tpu.vector_store %arg7[%c992, %c0_96], %205 {strides = array<i32>} : memref<1408x32xf32, #tpu.memory_space<vmem>>, vector<16x32xf32>,
    %c0_97 = arith.constant 0 : index
    %c608 = arith.constant 608 : index
    %207 = vector.load %arg6[%c0_97, %c608] : memref<16x2944xf32, #tpu.memory_space<vmem>>, vector<16x32xf32>
    %208 = vector.extract_strided_slice %12 {offsets = [0, 19], sizes = [16, 1], strides = [1, 1]} : vector<16x89xf32> to vector<16x1xf32>
    %209 = vector.broadcast %208 : vector<16x1xf32> to vector<16x32xf32>
    %210 = arith.mulf %207, %209 : vector<16x32xf32>
    %c304 = arith.constant 304 : index
    %c0_98 = arith.constant 0 : index
    %211 = vector.load %arg7[%c304, %c0_98] : memref<1408x32xf32, #tpu.memory_space<vmem>>, vector<16x32xf32>
    tpu.vector_store %arg7[%c304, %c0_98], %210 {strides = array<i32>} : memref<1408x32xf32, #tpu.memory_space<vmem>>, vector<16x32xf32>,
    %c0_99 = arith.constant 0 : index
    %c2016 = arith.constant 2016 : index
    %212 = vector.load %arg6[%c0_99, %c2016] : memref<16x2944xf32, #tpu.memory_space<vmem>>, vector<16x32xf32>
    %213 = vector.extract_strided_slice %12 {offsets = [0, 63], sizes = [16, 1], strides = [1, 1]} : vector<16x89xf32> to vector<16x1xf32>
    %214 = vector.broadcast %213 : vector<16x1xf32> to vector<16x32xf32>
    %215 = arith.mulf %212, %214 : vector<16x32xf32>
    %c1008 = arith.constant 1008 : index
    %c0_100 = arith.constant 0 : index
    %216 = vector.load %arg7[%c1008, %c0_100] : memref<1408x32xf32, #tpu.memory_space<vmem>>, vector<16x32xf32>
    tpu.vector_store %arg7[%c1008, %c0_100], %215 {strides = array<i32>} : memref<1408x32xf32, #tpu.memory_space<vmem>>, vector<16x32xf32>,
    %c0_101 = arith.constant 0 : index
    %c640 = arith.constant 640 : index
    %217 = vector.load %arg6[%c0_101, %c640] : memref<16x2944xf32, #tpu.memory_space<vmem>>, vector<16x32xf32>
    %218 = vector.extract_strided_slice %12 {offsets = [0, 20], sizes = [16, 1], strides = [1, 1]} : vector<16x89xf32> to vector<16x1xf32>
    %219 = vector.broadcast %218 : vector<16x1xf32> to vector<16x32xf32>
    %220 = arith.mulf %217, %219 : vector<16x32xf32>
    %c320_102 = arith.constant 320 : index
    %c0_103 = arith.constant 0 : index
    %221 = vector.load %arg7[%c320_102, %c0_103] : memref<1408x32xf32, #tpu.memory_space<vmem>>, vector<16x32xf32>
    tpu.vector_store %arg7[%c320_102, %c0_103], %220 {strides = array<i32>} : memref<1408x32xf32, #tpu.memory_space<vmem>>, vector<16x32xf32>,
    %c0_104 = arith.constant 0 : index
    %c2048 = arith.constant 2048 : index
    %222 = vector.load %arg6[%c0_104, %c2048] : memref<16x2944xf32, #tpu.memory_space<vmem>>, vector<16x32xf32>
    %223 = vector.extract_strided_slice %12 {offsets = [0, 64], sizes = [16, 1], strides = [1, 1]} : vector<16x89xf32> to vector<16x1xf32>
    %224 = vector.broadcast %223 : vector<16x1xf32> to vector<16x32xf32>
    %225 = arith.mulf %222, %224 : vector<16x32xf32>
    %c1024 = arith.constant 1024 : index
    %c0_105 = arith.constant 0 : index
    %226 = vector.load %arg7[%c1024, %c0_105] : memref<1408x32xf32, #tpu.memory_space<vmem>>, vector<16x32xf32>
    tpu.vector_store %arg7[%c1024, %c0_105], %225 {strides = array<i32>} : memref<1408x32xf32, #tpu.memory_space<vmem>>, vector<16x32xf32>,
    %c0_106 = arith.constant 0 : index
    %c672 = arith.constant 672 : index
    %227 = vector.load %arg6[%c0_106, %c672] : memref<16x2944xf32, #tpu.memory_space<vmem>>, vector<16x32xf32>
    %228 = vector.extract_strided_slice %12 {offsets = [0, 21], sizes = [16, 1], strides = [1, 1]} : vector<16x89xf32> to vector<16x1xf32>
    %229 = vector.broadcast %228 : vector<16x1xf32> to vector<16x32xf32>
    %230 = arith.mulf %227, %229 : vector<16x32xf32>
    %c336 = arith.constant 336 : index
    %c0_107 = arith.constant 0 : index
    %231 = vector.load %arg7[%c336, %c0_107] : memref<1408x32xf32, #tpu.memory_space<vmem>>, vector<16x32xf32>
    tpu.vector_store %arg7[%c336, %c0_107], %230 {strides = array<i32>} : memref<1408x32xf32, #tpu.memory_space<vmem>>, vector<16x32xf32>,
    %c0_108 = arith.constant 0 : index
    %c2080 = arith.constant 2080 : index
    %232 = vector.load %arg6[%c0_108, %c2080] : memref<16x2944xf32, #tpu.memory_space<vmem>>, vector<16x32xf32>
    %233 = vector.extract_strided_slice %12 {offsets = [0, 65], sizes = [16, 1], strides = [1, 1]} : vector<16x89xf32> to vector<16x1xf32>
    %234 = vector.broadcast %233 : vector<16x1xf32> to vector<16x32xf32>
    %235 = arith.mulf %232, %234 : vector<16x32xf32>
    %c1040 = arith.constant 1040 : index
    %c0_109 = arith.constant 0 : index
    %236 = vector.load %arg7[%c1040, %c0_109] : memref<1408x32xf32, #tpu.memory_space<vmem>>, vector<16x32xf32>
    tpu.vector_store %arg7[%c1040, %c0_109], %235 {strides = array<i32>} : memref<1408x32xf32, #tpu.memory_space<vmem>>, vector<16x32xf32>,
    %c0_110 = arith.constant 0 : index
    %c704_111 = arith.constant 704 : index
    %237 = vector.load %arg6[%c0_110, %c704_111] : memref<16x2944xf32, #tpu.memory_space<vmem>>, vector<16x32xf32>
    %238 = vector.extract_strided_slice %12 {offsets = [0, 22], sizes = [16, 1], strides = [1, 1]} : vector<16x89xf32> to vector<16x1xf32>
    %239 = vector.broadcast %238 : vector<16x1xf32> to vector<16x32xf32>
    %240 = arith.mulf %237, %239 : vector<16x32xf32>
    %c352_112 = arith.constant 352 : index
    %c0_113 = arith.constant 0 : index
    %241 = vector.load %arg7[%c352_112, %c0_113] : memref<1408x32xf32, #tpu.memory_space<vmem>>, vector<16x32xf32>
    tpu.vector_store %arg7[%c352_112, %c0_113], %240 {strides = array<i32>} : memref<1408x32xf32, #tpu.memory_space<vmem>>, vector<16x32xf32>,
    %c0_114 = arith.constant 0 : index
    %c2112 = arith.constant 2112 : index
    %242 = vector.load %arg6[%c0_114, %c2112] : memref<16x2944xf32, #tpu.memory_space<vmem>>, vector<16x32xf32>
    %243 = vector.extract_strided_slice %12 {offsets = [0, 66], sizes = [16, 1], strides = [1, 1]} : vector<16x89xf32> to vector<16x1xf32>
    %244 = vector.broadcast %243 : vector<16x1xf32> to vector<16x32xf32>
    %245 = arith.mulf %242, %244 : vector<16x32xf32>
    %c1056 = arith.constant 1056 : index
    %c0_115 = arith.constant 0 : index
    %246 = vector.load %arg7[%c1056, %c0_115] : memref<1408x32xf32, #tpu.memory_space<vmem>>, vector<16x32xf32>
    tpu.vector_store %arg7[%c1056, %c0_115], %245 {strides = array<i32>} : memref<1408x32xf32, #tpu.memory_space<vmem>>, vector<16x32xf32>,
    %c0_116 = arith.constant 0 : index
    %c736_117 = arith.constant 736 : index
    %247 = vector.load %arg6[%c0_116, %c736_117] : memref<16x2944xf32, #tpu.memory_space<vmem>>, vector<16x32xf32>
    %248 = vector.extract_strided_slice %12 {offsets = [0, 23], sizes = [16, 1], strides = [1, 1]} : vector<16x89xf32> to vector<16x1xf32>
    %249 = vector.broadcast %248 : vector<16x1xf32> to vector<16x32xf32>
    %250 = arith.mulf %247, %249 : vector<16x32xf32>
    %c368 = arith.constant 368 : index
    %c0_118 = arith.constant 0 : index
    %251 = vector.load %arg7[%c368, %c0_118] : memref<1408x32xf32, #tpu.memory_space<vmem>>, vector<16x32xf32>
    tpu.vector_store %arg7[%c368, %c0_118], %250 {strides = array<i32>} : memref<1408x32xf32, #tpu.memory_space<vmem>>, vector<16x32xf32>,
    %c0_119 = arith.constant 0 : index
    %c2144 = arith.constant 2144 : index
    %252 = vector.load %arg6[%c0_119, %c2144] : memref<16x2944xf32, #tpu.memory_space<vmem>>, vector<16x32xf32>
    %253 = vector.extract_strided_slice %12 {offsets = [0, 67], sizes = [16, 1], strides = [1, 1]} : vector<16x89xf32> to vector<16x1xf32>
    %254 = vector.broadcast %253 : vector<16x1xf32> to vector<16x32xf32>
    %255 = arith.mulf %252, %254 : vector<16x32xf32>
    %c1072 = arith.constant 1072 : index
    %c0_120 = arith.constant 0 : index
    %256 = vector.load %arg7[%c1072, %c0_120] : memref<1408x32xf32, #tpu.memory_space<vmem>>, vector<16x32xf32>
    tpu.vector_store %arg7[%c1072, %c0_120], %255 {strides = array<i32>} : memref<1408x32xf32, #tpu.memory_space<vmem>>, vector<16x32xf32>,
    %c0_121 = arith.constant 0 : index
    %c768_122 = arith.constant 768 : index
    %257 = vector.load %arg6[%c0_121, %c768_122] : memref<16x2944xf32, #tpu.memory_space<vmem>>, vector<16x32xf32>
    %258 = vector.extract_strided_slice %12 {offsets = [0, 24], sizes = [16, 1], strides = [1, 1]} : vector<16x89xf32> to vector<16x1xf32>
    %259 = vector.broadcast %258 : vector<16x1xf32> to vector<16x32xf32>
    %260 = arith.mulf %257, %259 : vector<16x32xf32>
    %c384_123 = arith.constant 384 : index
    %c0_124 = arith.constant 0 : index
    %261 = vector.load %arg7[%c384_123, %c0_124] : memref<1408x32xf32, #tpu.memory_space<vmem>>, vector<16x32xf32>
    tpu.vector_store %arg7[%c384_123, %c0_124], %260 {strides = array<i32>} : memref<1408x32xf32, #tpu.memory_space<vmem>>, vector<16x32xf32>,
    %c0_125 = arith.constant 0 : index
    %c2176 = arith.constant 2176 : index
    %262 = vector.load %arg6[%c0_125, %c2176] : memref<16x2944xf32, #tpu.memory_space<vmem>>, vector<16x32xf32>
    %263 = vector.extract_strided_slice %12 {offsets = [0, 68], sizes = [16, 1], strides = [1, 1]} : vector<16x89xf32> to vector<16x1xf32>
    %264 = vector.broadcast %263 : vector<16x1xf32> to vector<16x32xf32>
    %265 = arith.mulf %262, %264 : vector<16x32xf32>
    %c1088 = arith.constant 1088 : index
    %c0_126 = arith.constant 0 : index
    %266 = vector.load %arg7[%c1088, %c0_126] : memref<1408x32xf32, #tpu.memory_space<vmem>>, vector<16x32xf32>
    tpu.vector_store %arg7[%c1088, %c0_126], %265 {strides = array<i32>} : memref<1408x32xf32, #tpu.memory_space<vmem>>, vector<16x32xf32>,
    %c0_127 = arith.constant 0 : index
    %c800_128 = arith.constant 800 : index
    %267 = vector.load %arg6[%c0_127, %c800_128] : memref<16x2944xf32, #tpu.memory_space<vmem>>, vector<16x32xf32>
    %268 = vector.extract_strided_slice %12 {offsets = [0, 25], sizes = [16, 1], strides = [1, 1]} : vector<16x89xf32> to vector<16x1xf32>
    %269 = vector.broadcast %268 : vector<16x1xf32> to vector<16x32xf32>
    %270 = arith.mulf %267, %269 : vector<16x32xf32>
    %c400 = arith.constant 400 : index
    %c0_129 = arith.constant 0 : index
    %271 = vector.load %arg7[%c400, %c0_129] : memref<1408x32xf32, #tpu.memory_space<vmem>>, vector<16x32xf32>
    tpu.vector_store %arg7[%c400, %c0_129], %270 {strides = array<i32>} : memref<1408x32xf32, #tpu.memory_space<vmem>>, vector<16x32xf32>,
    %c0_130 = arith.constant 0 : index
    %c2208 = arith.constant 2208 : index
    %272 = vector.load %arg6[%c0_130, %c2208] : memref<16x2944xf32, #tpu.memory_space<vmem>>, vector<16x32xf32>
    %273 = vector.extract_strided_slice %12 {offsets = [0, 69], sizes = [16, 1], strides = [1, 1]} : vector<16x89xf32> to vector<16x1xf32>
    %274 = vector.broadcast %273 : vector<16x1xf32> to vector<16x32xf32>
    %275 = arith.mulf %272, %274 : vector<16x32xf32>
    %c1104 = arith.constant 1104 : index
    %c0_131 = arith.constant 0 : index
    %276 = vector.load %arg7[%c1104, %c0_131] : memref<1408x32xf32, #tpu.memory_space<vmem>>, vector<16x32xf32>
    tpu.vector_store %arg7[%c1104, %c0_131], %275 {strides = array<i32>} : memref<1408x32xf32, #tpu.memory_space<vmem>>, vector<16x32xf32>,
    %c0_132 = arith.constant 0 : index
    %c832_133 = arith.constant 832 : index
    %277 = vector.load %arg6[%c0_132, %c832_133] : memref<16x2944xf32, #tpu.memory_space<vmem>>, vector<16x32xf32>
    %278 = vector.extract_strided_slice %12 {offsets = [0, 26], sizes = [16, 1], strides = [1, 1]} : vector<16x89xf32> to vector<16x1xf32>
    %279 = vector.broadcast %278 : vector<16x1xf32> to vector<16x32xf32>
    %280 = arith.mulf %277, %279 : vector<16x32xf32>
    %c416_134 = arith.constant 416 : index
    %c0_135 = arith.constant 0 : index
    %281 = vector.load %arg7[%c416_134, %c0_135] : memref<1408x32xf32, #tpu.memory_space<vmem>>, vector<16x32xf32>
    tpu.vector_store %arg7[%c416_134, %c0_135], %280 {strides = array<i32>} : memref<1408x32xf32, #tpu.memory_space<vmem>>, vector<16x32xf32>,
    %c0_136 = arith.constant 0 : index
    %c2240 = arith.constant 2240 : index
    %282 = vector.load %arg6[%c0_136, %c2240] : memref<16x2944xf32, #tpu.memory_space<vmem>>, vector<16x32xf32>
    %283 = vector.extract_strided_slice %12 {offsets = [0, 70], sizes = [16, 1], strides = [1, 1]} : vector<16x89xf32> to vector<16x1xf32>
    %284 = vector.broadcast %283 : vector<16x1xf32> to vector<16x32xf32>
    %285 = arith.mulf %282, %284 : vector<16x32xf32>
    %c1120 = arith.constant 1120 : index
    %c0_137 = arith.constant 0 : index
    %286 = vector.load %arg7[%c1120, %c0_137] : memref<1408x32xf32, #tpu.memory_space<vmem>>, vector<16x32xf32>
    tpu.vector_store %arg7[%c1120, %c0_137], %285 {strides = array<i32>} : memref<1408x32xf32, #tpu.memory_space<vmem>>, vector<16x32xf32>,
    %c0_138 = arith.constant 0 : index
    %c864_139 = arith.constant 864 : index
    %287 = vector.load %arg6[%c0_138, %c864_139] : memref<16x2944xf32, #tpu.memory_space<vmem>>, vector<16x32xf32>
    %288 = vector.extract_strided_slice %12 {offsets = [0, 27], sizes = [16, 1], strides = [1, 1]} : vector<16x89xf32> to vector<16x1xf32>
    %289 = vector.broadcast %288 : vector<16x1xf32> to vector<16x32xf32>
    %290 = arith.mulf %287, %289 : vector<16x32xf32>
    %c432 = arith.constant 432 : index
    %c0_140 = arith.constant 0 : index
    %291 = vector.load %arg7[%c432, %c0_140] : memref<1408x32xf32, #tpu.memory_space<vmem>>, vector<16x32xf32>
    tpu.vector_store %arg7[%c432, %c0_140], %290 {strides = array<i32>} : memref<1408x32xf32, #tpu.memory_space<vmem>>, vector<16x32xf32>,
    %c0_141 = arith.constant 0 : index
    %c2272 = arith.constant 2272 : index
    %292 = vector.load %arg6[%c0_141, %c2272] : memref<16x2944xf32, #tpu.memory_space<vmem>>, vector<16x32xf32>
    %293 = vector.extract_strided_slice %12 {offsets = [0, 71], sizes = [16, 1], strides = [1, 1]} : vector<16x89xf32> to vector<16x1xf32>
    %294 = vector.broadcast %293 : vector<16x1xf32> to vector<16x32xf32>
    %295 = arith.mulf %292, %294 : vector<16x32xf32>
    %c1136 = arith.constant 1136 : index
    %c0_142 = arith.constant 0 : index
    %296 = vector.load %arg7[%c1136, %c0_142] : memref<1408x32xf32, #tpu.memory_space<vmem>>, vector<16x32xf32>
    tpu.vector_store %arg7[%c1136, %c0_142], %295 {strides = array<i32>} : memref<1408x32xf32, #tpu.memory_space<vmem>>, vector<16x32xf32>,
    %c0_143 = arith.constant 0 : index
    %c896_144 = arith.constant 896 : index
    %297 = vector.load %arg6[%c0_143, %c896_144] : memref<16x2944xf32, #tpu.memory_space<vmem>>, vector<16x32xf32>
    %298 = vector.extract_strided_slice %12 {offsets = [0, 28], sizes = [16, 1], strides = [1, 1]} : vector<16x89xf32> to vector<16x1xf32>
    %299 = vector.broadcast %298 : vector<16x1xf32> to vector<16x32xf32>
    %300 = arith.mulf %297, %299 : vector<16x32xf32>
    %c448_145 = arith.constant 448 : index
    %c0_146 = arith.constant 0 : index
    %301 = vector.load %arg7[%c448_145, %c0_146] : memref<1408x32xf32, #tpu.memory_space<vmem>>, vector<16x32xf32>
    tpu.vector_store %arg7[%c448_145, %c0_146], %300 {strides = array<i32>} : memref<1408x32xf32, #tpu.memory_space<vmem>>, vector<16x32xf32>,
    %c0_147 = arith.constant 0 : index
    %c2304 = arith.constant 2304 : index
    %302 = vector.load %arg6[%c0_147, %c2304] : memref<16x2944xf32, #tpu.memory_space<vmem>>, vector<16x32xf32>
    %303 = vector.extract_strided_slice %12 {offsets = [0, 72], sizes = [16, 1], strides = [1, 1]} : vector<16x89xf32> to vector<16x1xf32>
    %304 = vector.broadcast %303 : vector<16x1xf32> to vector<16x32xf32>
    %305 = arith.mulf %302, %304 : vector<16x32xf32>
    %c1152 = arith.constant 1152 : index
    %c0_148 = arith.constant 0 : index
    %306 = vector.load %arg7[%c1152, %c0_148] : memref<1408x32xf32, #tpu.memory_space<vmem>>, vector<16x32xf32>
    tpu.vector_store %arg7[%c1152, %c0_148], %305 {strides = array<i32>} : memref<1408x32xf32, #tpu.memory_space<vmem>>, vector<16x32xf32>,
    %c0_149 = arith.constant 0 : index
    %c928_150 = arith.constant 928 : index
    %307 = vector.load %arg6[%c0_149, %c928_150] : memref<16x2944xf32, #tpu.memory_space<vmem>>, vector<16x32xf32>
    %308 = vector.extract_strided_slice %12 {offsets = [0, 29], sizes = [16, 1], strides = [1, 1]} : vector<16x89xf32> to vector<16x1xf32>
    %309 = vector.broadcast %308 : vector<16x1xf32> to vector<16x32xf32>
    %310 = arith.mulf %307, %309 : vector<16x32xf32>
    %c464 = arith.constant 464 : index
    %c0_151 = arith.constant 0 : index
    %311 = vector.load %arg7[%c464, %c0_151] : memref<1408x32xf32, #tpu.memory_space<vmem>>, vector<16x32xf32>
    tpu.vector_store %arg7[%c464, %c0_151], %310 {strides = array<i32>} : memref<1408x32xf32, #tpu.memory_space<vmem>>, vector<16x32xf32>,
    %c0_152 = arith.constant 0 : index
    %c2336 = arith.constant 2336 : index
    %312 = vector.load %arg6[%c0_152, %c2336] : memref<16x2944xf32, #tpu.memory_space<vmem>>, vector<16x32xf32>
    %313 = vector.extract_strided_slice %12 {offsets = [0, 73], sizes = [16, 1], strides = [1, 1]} : vector<16x89xf32> to vector<16x1xf32>
    %314 = vector.broadcast %313 : vector<16x1xf32> to vector<16x32xf32>
    %315 = arith.mulf %312, %314 : vector<16x32xf32>
    %c1168 = arith.constant 1168 : index
    %c0_153 = arith.constant 0 : index
    %316 = vector.load %arg7[%c1168, %c0_153] : memref<1408x32xf32, #tpu.memory_space<vmem>>, vector<16x32xf32>
    tpu.vector_store %arg7[%c1168, %c0_153], %315 {strides = array<i32>} : memref<1408x32xf32, #tpu.memory_space<vmem>>, vector<16x32xf32>,
    %c0_154 = arith.constant 0 : index
    %c960_155 = arith.constant 960 : index
    %317 = vector.load %arg6[%c0_154, %c960_155] : memref<16x2944xf32, #tpu.memory_space<vmem>>, vector<16x32xf32>
    %318 = vector.extract_strided_slice %12 {offsets = [0, 30], sizes = [16, 1], strides = [1, 1]} : vector<16x89xf32> to vector<16x1xf32>
    %319 = vector.broadcast %318 : vector<16x1xf32> to vector<16x32xf32>
    %320 = arith.mulf %317, %319 : vector<16x32xf32>
    %c480_156 = arith.constant 480 : index
    %c0_157 = arith.constant 0 : index
    %321 = vector.load %arg7[%c480_156, %c0_157] : memref<1408x32xf32, #tpu.memory_space<vmem>>, vector<16x32xf32>
    tpu.vector_store %arg7[%c480_156, %c0_157], %320 {strides = array<i32>} : memref<1408x32xf32, #tpu.memory_space<vmem>>, vector<16x32xf32>,
    %c0_158 = arith.constant 0 : index
    %c2368 = arith.constant 2368 : index
    %322 = vector.load %arg6[%c0_158, %c2368] : memref<16x2944xf32, #tpu.memory_space<vmem>>, vector<16x32xf32>
    %323 = vector.extract_strided_slice %12 {offsets = [0, 74], sizes = [16, 1], strides = [1, 1]} : vector<16x89xf32> to vector<16x1xf32>
    %324 = vector.broadcast %323 : vector<16x1xf32> to vector<16x32xf32>
    %325 = arith.mulf %322, %324 : vector<16x32xf32>
    %c1184 = arith.constant 1184 : index
    %c0_159 = arith.constant 0 : index
    %326 = vector.load %arg7[%c1184, %c0_159] : memref<1408x32xf32, #tpu.memory_space<vmem>>, vector<16x32xf32>
    tpu.vector_store %arg7[%c1184, %c0_159], %325 {strides = array<i32>} : memref<1408x32xf32, #tpu.memory_space<vmem>>, vector<16x32xf32>,
    %c0_160 = arith.constant 0 : index
    %c992_161 = arith.constant 992 : index
    %327 = vector.load %arg6[%c0_160, %c992_161] : memref<16x2944xf32, #tpu.memory_space<vmem>>, vector<16x32xf32>
    %328 = vector.extract_strided_slice %12 {offsets = [0, 31], sizes = [16, 1], strides = [1, 1]} : vector<16x89xf32> to vector<16x1xf32>
    %329 = vector.broadcast %328 : vector<16x1xf32> to vector<16x32xf32>
    %330 = arith.mulf %327, %329 : vector<16x32xf32>
    %c496 = arith.constant 496 : index
    %c0_162 = arith.constant 0 : index
    %331 = vector.load %arg7[%c496, %c0_162] : memref<1408x32xf32, #tpu.memory_space<vmem>>, vector<16x32xf32>
    tpu.vector_store %arg7[%c496, %c0_162], %330 {strides = array<i32>} : memref<1408x32xf32, #tpu.memory_space<vmem>>, vector<16x32xf32>,
    %c0_163 = arith.constant 0 : index
    %c2400 = arith.constant 2400 : index
    %332 = vector.load %arg6[%c0_163, %c2400] : memref<16x2944xf32, #tpu.memory_space<vmem>>, vector<16x32xf32>
    %333 = vector.extract_strided_slice %12 {offsets = [0, 75], sizes = [16, 1], strides = [1, 1]} : vector<16x89xf32> to vector<16x1xf32>
    %334 = vector.broadcast %333 : vector<16x1xf32> to vector<16x32xf32>
    %335 = arith.mulf %332, %334 : vector<16x32xf32>
    %c1200 = arith.constant 1200 : index
    %c0_164 = arith.constant 0 : index
    %336 = vector.load %arg7[%c1200, %c0_164] : memref<1408x32xf32, #tpu.memory_space<vmem>>, vector<16x32xf32>
    tpu.vector_store %arg7[%c1200, %c0_164], %335 {strides = array<i32>} : memref<1408x32xf32, #tpu.memory_space<vmem>>, vector<16x32xf32>,
    %c0_165 = arith.constant 0 : index
    %c1024_166 = arith.constant 1024 : index
    %337 = vector.load %arg6[%c0_165, %c1024_166] : memref<16x2944xf32, #tpu.memory_space<vmem>>, vector<16x32xf32>
    %338 = vector.extract_strided_slice %12 {offsets = [0, 32], sizes = [16, 1], strides = [1, 1]} : vector<16x89xf32> to vector<16x1xf32>
    %339 = vector.broadcast %338 : vector<16x1xf32> to vector<16x32xf32>
    %340 = arith.mulf %337, %339 : vector<16x32xf32>
    %c512_167 = arith.constant 512 : index
    %c0_168 = arith.constant 0 : index
    %341 = vector.load %arg7[%c512_167, %c0_168] : memref<1408x32xf32, #tpu.memory_space<vmem>>, vector<16x32xf32>
    tpu.vector_store %arg7[%c512_167, %c0_168], %340 {strides = array<i32>} : memref<1408x32xf32, #tpu.memory_space<vmem>>, vector<16x32xf32>,
    %c0_169 = arith.constant 0 : index
    %c2432 = arith.constant 2432 : index
    %342 = vector.load %arg6[%c0_169, %c2432] : memref<16x2944xf32, #tpu.memory_space<vmem>>, vector<16x32xf32>
    %343 = vector.extract_strided_slice %12 {offsets = [0, 76], sizes = [16, 1], strides = [1, 1]} : vector<16x89xf32> to vector<16x1xf32>
    %344 = vector.broadcast %343 : vector<16x1xf32> to vector<16x32xf32>
    %345 = arith.mulf %342, %344 : vector<16x32xf32>
    %c1216 = arith.constant 1216 : index
    %c0_170 = arith.constant 0 : index
    %346 = vector.load %arg7[%c1216, %c0_170] : memref<1408x32xf32, #tpu.memory_space<vmem>>, vector<16x32xf32>
    tpu.vector_store %arg7[%c1216, %c0_170], %345 {strides = array<i32>} : memref<1408x32xf32, #tpu.memory_space<vmem>>, vector<16x32xf32>,
    %c0_171 = arith.constant 0 : index
    %c1056_172 = arith.constant 1056 : index
    %347 = vector.load %arg6[%c0_171, %c1056_172] : memref<16x2944xf32, #tpu.memory_space<vmem>>, vector<16x32xf32>
    %348 = vector.extract_strided_slice %12 {offsets = [0, 33], sizes = [16, 1], strides = [1, 1]} : vector<16x89xf32> to vector<16x1xf32>
    %349 = vector.broadcast %348 : vector<16x1xf32> to vector<16x32xf32>
    %350 = arith.mulf %347, %349 : vector<16x32xf32>
    %c528 = arith.constant 528 : index
    %c0_173 = arith.constant 0 : index
    %351 = vector.load %arg7[%c528, %c0_173] : memref<1408x32xf32, #tpu.memory_space<vmem>>, vector<16x32xf32>
    tpu.vector_store %arg7[%c528, %c0_173], %350 {strides = array<i32>} : memref<1408x32xf32, #tpu.memory_space<vmem>>, vector<16x32xf32>,
    %c0_174 = arith.constant 0 : index
    %c2464 = arith.constant 2464 : index
    %352 = vector.load %arg6[%c0_174, %c2464] : memref<16x2944xf32, #tpu.memory_space<vmem>>, vector<16x32xf32>
    %353 = vector.extract_strided_slice %12 {offsets = [0, 77], sizes = [16, 1], strides = [1, 1]} : vector<16x89xf32> to vector<16x1xf32>
    %354 = vector.broadcast %353 : vector<16x1xf32> to vector<16x32xf32>
    %355 = arith.mulf %352, %354 : vector<16x32xf32>
    %c1232 = arith.constant 1232 : index
    %c0_175 = arith.constant 0 : index
    %356 = vector.load %arg7[%c1232, %c0_175] : memref<1408x32xf32, #tpu.memory_space<vmem>>, vector<16x32xf32>
    tpu.vector_store %arg7[%c1232, %c0_175], %355 {strides = array<i32>} : memref<1408x32xf32, #tpu.memory_space<vmem>>, vector<16x32xf32>,
    %c0_176 = arith.constant 0 : index
    %c1088_177 = arith.constant 1088 : index
    %357 = vector.load %arg6[%c0_176, %c1088_177] : memref<16x2944xf32, #tpu.memory_space<vmem>>, vector<16x32xf32>
    %358 = vector.extract_strided_slice %12 {offsets = [0, 34], sizes = [16, 1], strides = [1, 1]} : vector<16x89xf32> to vector<16x1xf32>
    %359 = vector.broadcast %358 : vector<16x1xf32> to vector<16x32xf32>
    %360 = arith.mulf %357, %359 : vector<16x32xf32>
    %c544_178 = arith.constant 544 : index
    %c0_179 = arith.constant 0 : index
    %361 = vector.load %arg7[%c544_178, %c0_179] : memref<1408x32xf32, #tpu.memory_space<vmem>>, vector<16x32xf32>
    tpu.vector_store %arg7[%c544_178, %c0_179], %360 {strides = array<i32>} : memref<1408x32xf32, #tpu.memory_space<vmem>>, vector<16x32xf32>,
    %c0_180 = arith.constant 0 : index
    %c2496 = arith.constant 2496 : index
    %362 = vector.load %arg6[%c0_180, %c2496] : memref<16x2944xf32, #tpu.memory_space<vmem>>, vector<16x32xf32>
    %363 = vector.extract_strided_slice %12 {offsets = [0, 78], sizes = [16, 1], strides = [1, 1]} : vector<16x89xf32> to vector<16x1xf32>
    %364 = vector.broadcast %363 : vector<16x1xf32> to vector<16x32xf32>
    %365 = arith.mulf %362, %364 : vector<16x32xf32>
    %c1248 = arith.constant 1248 : index
    %c0_181 = arith.constant 0 : index
    %366 = vector.load %arg7[%c1248, %c0_181] : memref<1408x32xf32, #tpu.memory_space<vmem>>, vector<16x32xf32>
    tpu.vector_store %arg7[%c1248, %c0_181], %365 {strides = array<i32>} : memref<1408x32xf32, #tpu.memory_space<vmem>>, vector<16x32xf32>,
    %c0_182 = arith.constant 0 : index
    %c1120_183 = arith.constant 1120 : index
    %367 = vector.load %arg6[%c0_182, %c1120_183] : memref<16x2944xf32, #tpu.memory_space<vmem>>, vector<16x32xf32>
    %368 = vector.extract_strided_slice %12 {offsets = [0, 35], sizes = [16, 1], strides = [1, 1]} : vector<16x89xf32> to vector<16x1xf32>
    %369 = vector.broadcast %368 : vector<16x1xf32> to vector<16x32xf32>
    %370 = arith.mulf %367, %369 : vector<16x32xf32>
    %c560 = arith.constant 560 : index
    %c0_184 = arith.constant 0 : index
    %371 = vector.load %arg7[%c560, %c0_184] : memref<1408x32xf32, #tpu.memory_space<vmem>>, vector<16x32xf32>
    tpu.vector_store %arg7[%c560, %c0_184], %370 {strides = array<i32>} : memref<1408x32xf32, #tpu.memory_space<vmem>>, vector<16x32xf32>,
    %c0_185 = arith.constant 0 : index
    %c2528 = arith.constant 2528 : index
    %372 = vector.load %arg6[%c0_185, %c2528] : memref<16x2944xf32, #tpu.memory_space<vmem>>, vector<16x32xf32>
    %373 = vector.extract_strided_slice %12 {offsets = [0, 79], sizes = [16, 1], strides = [1, 1]} : vector<16x89xf32> to vector<16x1xf32>
    %374 = vector.broadcast %373 : vector<16x1xf32> to vector<16x32xf32>
    %375 = arith.mulf %372, %374 : vector<16x32xf32>
    %c1264 = arith.constant 1264 : index
    %c0_186 = arith.constant 0 : index
    %376 = vector.load %arg7[%c1264, %c0_186] : memref<1408x32xf32, #tpu.memory_space<vmem>>, vector<16x32xf32>
    tpu.vector_store %arg7[%c1264, %c0_186], %375 {strides = array<i32>} : memref<1408x32xf32, #tpu.memory_space<vmem>>, vector<16x32xf32>,
    %c0_187 = arith.constant 0 : index
    %c1152_188 = arith.constant 1152 : index
    %377 = vector.load %arg6[%c0_187, %c1152_188] : memref<16x2944xf32, #tpu.memory_space<vmem>>, vector<16x32xf32>
    %378 = vector.extract_strided_slice %12 {offsets = [0, 36], sizes = [16, 1], strides = [1, 1]} : vector<16x89xf32> to vector<16x1xf32>
    %379 = vector.broadcast %378 : vector<16x1xf32> to vector<16x32xf32>
    %380 = arith.mulf %377, %379 : vector<16x32xf32>
    %c576_189 = arith.constant 576 : index
    %c0_190 = arith.constant 0 : index
    %381 = vector.load %arg7[%c576_189, %c0_190] : memref<1408x32xf32, #tpu.memory_space<vmem>>, vector<16x32xf32>
    tpu.vector_store %arg7[%c576_189, %c0_190], %380 {strides = array<i32>} : memref<1408x32xf32, #tpu.memory_space<vmem>>, vector<16x32xf32>,
    %c0_191 = arith.constant 0 : index
    %c2560 = arith.constant 2560 : index
    %382 = vector.load %arg6[%c0_191, %c2560] : memref<16x2944xf32, #tpu.memory_space<vmem>>, vector<16x32xf32>
    %383 = vector.extract_strided_slice %12 {offsets = [0, 80], sizes = [16, 1], strides = [1, 1]} : vector<16x89xf32> to vector<16x1xf32>
    %384 = vector.broadcast %383 : vector<16x1xf32> to vector<16x32xf32>
    %385 = arith.mulf %382, %384 : vector<16x32xf32>
    %c1280 = arith.constant 1280 : index
    %c0_192 = arith.constant 0 : index
    %386 = vector.load %arg7[%c1280, %c0_192] : memref<1408x32xf32, #tpu.memory_space<vmem>>, vector<16x32xf32>
    tpu.vector_store %arg7[%c1280, %c0_192], %385 {strides = array<i32>} : memref<1408x32xf32, #tpu.memory_space<vmem>>, vector<16x32xf32>,
    %c0_193 = arith.constant 0 : index
    %c1184_194 = arith.constant 1184 : index
    %387 = vector.load %arg6[%c0_193, %c1184_194] : memref<16x2944xf32, #tpu.memory_space<vmem>>, vector<16x32xf32>
    %388 = vector.extract_strided_slice %12 {offsets = [0, 37], sizes = [16, 1], strides = [1, 1]} : vector<16x89xf32> to vector<16x1xf32>
    %389 = vector.broadcast %388 : vector<16x1xf32> to vector<16x32xf32>
    %390 = arith.mulf %387, %389 : vector<16x32xf32>
    %c592 = arith.constant 592 : index
    %c0_195 = arith.constant 0 : index
    %391 = vector.load %arg7[%c592, %c0_195] : memref<1408x32xf32, #tpu.memory_space<vmem>>, vector<16x32xf32>
    tpu.vector_store %arg7[%c592, %c0_195], %390 {strides = array<i32>} : memref<1408x32xf32, #tpu.memory_space<vmem>>, vector<16x32xf32>,
    %c0_196 = arith.constant 0 : index
    %c2592 = arith.constant 2592 : index
    %392 = vector.load %arg6[%c0_196, %c2592] : memref<16x2944xf32, #tpu.memory_space<vmem>>, vector<16x32xf32>
    %393 = vector.extract_strided_slice %12 {offsets = [0, 81], sizes = [16, 1], strides = [1, 1]} : vector<16x89xf32> to vector<16x1xf32>
    %394 = vector.broadcast %393 : vector<16x1xf32> to vector<16x32xf32>
    %395 = arith.mulf %392, %394 : vector<16x32xf32>
    %c1296 = arith.constant 1296 : index
    %c0_197 = arith.constant 0 : index
    %396 = vector.load %arg7[%c1296, %c0_197] : memref<1408x32xf32, #tpu.memory_space<vmem>>, vector<16x32xf32>
    tpu.vector_store %arg7[%c1296, %c0_197], %395 {strides = array<i32>} : memref<1408x32xf32, #tpu.memory_space<vmem>>, vector<16x32xf32>,
    %c0_198 = arith.constant 0 : index
    %c1216_199 = arith.constant 1216 : index
    %397 = vector.load %arg6[%c0_198, %c1216_199] : memref<16x2944xf32, #tpu.memory_space<vmem>>, vector<16x32xf32>
    %398 = vector.extract_strided_slice %12 {offsets = [0, 38], sizes = [16, 1], strides = [1, 1]} : vector<16x89xf32> to vector<16x1xf32>
    %399 = vector.broadcast %398 : vector<16x1xf32> to vector<16x32xf32>
    %400 = arith.mulf %397, %399 : vector<16x32xf32>
    %c608_200 = arith.constant 608 : index
    %c0_201 = arith.constant 0 : index
    %401 = vector.load %arg7[%c608_200, %c0_201] : memref<1408x32xf32, #tpu.memory_space<vmem>>, vector<16x32xf32>
    tpu.vector_store %arg7[%c608_200, %c0_201], %400 {strides = array<i32>} : memref<1408x32xf32, #tpu.memory_space<vmem>>, vector<16x32xf32>,
    %c0_202 = arith.constant 0 : index
    %c2624 = arith.constant 2624 : index
    %402 = vector.load %arg6[%c0_202, %c2624] : memref<16x2944xf32, #tpu.memory_space<vmem>>, vector<16x32xf32>
    %403 = vector.extract_strided_slice %12 {offsets = [0, 82], sizes = [16, 1], strides = [1, 1]} : vector<16x89xf32> to vector<16x1xf32>
    %404 = vector.broadcast %403 : vector<16x1xf32> to vector<16x32xf32>
    %405 = arith.mulf %402, %404 : vector<16x32xf32>
    %c1312 = arith.constant 1312 : index
    %c0_203 = arith.constant 0 : index
    %406 = vector.load %arg7[%c1312, %c0_203] : memref<1408x32xf32, #tpu.memory_space<vmem>>, vector<16x32xf32>
    tpu.vector_store %arg7[%c1312, %c0_203], %405 {strides = array<i32>} : memref<1408x32xf32, #tpu.memory_space<vmem>>, vector<16x32xf32>,
    %c0_204 = arith.constant 0 : index
    %c1248_205 = arith.constant 1248 : index
    %407 = vector.load %arg6[%c0_204, %c1248_205] : memref<16x2944xf32, #tpu.memory_space<vmem>>, vector<16x32xf32>
    %408 = vector.extract_strided_slice %12 {offsets = [0, 39], sizes = [16, 1], strides = [1, 1]} : vector<16x89xf32> to vector<16x1xf32>
    %409 = vector.broadcast %408 : vector<16x1xf32> to vector<16x32xf32>
    %410 = arith.mulf %407, %409 : vector<16x32xf32>
    %c624 = arith.constant 624 : index
    %c0_206 = arith.constant 0 : index
    %411 = vector.load %arg7[%c624, %c0_206] : memref<1408x32xf32, #tpu.memory_space<vmem>>, vector<16x32xf32>
    tpu.vector_store %arg7[%c624, %c0_206], %410 {strides = array<i32>} : memref<1408x32xf32, #tpu.memory_space<vmem>>, vector<16x32xf32>,
    %c0_207 = arith.constant 0 : index
    %c2656 = arith.constant 2656 : index
    %412 = vector.load %arg6[%c0_207, %c2656] : memref<16x2944xf32, #tpu.memory_space<vmem>>, vector<16x32xf32>
    %413 = vector.extract_strided_slice %12 {offsets = [0, 83], sizes = [16, 1], strides = [1, 1]} : vector<16x89xf32> to vector<16x1xf32>
    %414 = vector.broadcast %413 : vector<16x1xf32> to vector<16x32xf32>
    %415 = arith.mulf %412, %414 : vector<16x32xf32>
    %c1328 = arith.constant 1328 : index
    %c0_208 = arith.constant 0 : index
    %416 = vector.load %arg7[%c1328, %c0_208] : memref<1408x32xf32, #tpu.memory_space<vmem>>, vector<16x32xf32>
    tpu.vector_store %arg7[%c1328, %c0_208], %415 {strides = array<i32>} : memref<1408x32xf32, #tpu.memory_space<vmem>>, vector<16x32xf32>,
    %c0_209 = arith.constant 0 : index
    %c1280_210 = arith.constant 1280 : index
    %417 = vector.load %arg6[%c0_209, %c1280_210] : memref<16x2944xf32, #tpu.memory_space<vmem>>, vector<16x32xf32>
    %418 = vector.extract_strided_slice %12 {offsets = [0, 40], sizes = [16, 1], strides = [1, 1]} : vector<16x89xf32> to vector<16x1xf32>
    %419 = vector.broadcast %418 : vector<16x1xf32> to vector<16x32xf32>
    %420 = arith.mulf %417, %419 : vector<16x32xf32>
    %c640_211 = arith.constant 640 : index
    %c0_212 = arith.constant 0 : index
    %421 = vector.load %arg7[%c640_211, %c0_212] : memref<1408x32xf32, #tpu.memory_space<vmem>>, vector<16x32xf32>
    tpu.vector_store %arg7[%c640_211, %c0_212], %420 {strides = array<i32>} : memref<1408x32xf32, #tpu.memory_space<vmem>>, vector<16x32xf32>,
    %c0_213 = arith.constant 0 : index
    %c2688 = arith.constant 2688 : index
    %422 = vector.load %arg6[%c0_213, %c2688] : memref<16x2944xf32, #tpu.memory_space<vmem>>, vector<16x32xf32>
    %423 = vector.extract_strided_slice %12 {offsets = [0, 84], sizes = [16, 1], strides = [1, 1]} : vector<16x89xf32> to vector<16x1xf32>
    %424 = vector.broadcast %423 : vector<16x1xf32> to vector<16x32xf32>
    %425 = arith.mulf %422, %424 : vector<16x32xf32>
    %c1344 = arith.constant 1344 : index
    %c0_214 = arith.constant 0 : index
    %426 = vector.load %arg7[%c1344, %c0_214] : memref<1408x32xf32, #tpu.memory_space<vmem>>, vector<16x32xf32>
    tpu.vector_store %arg7[%c1344, %c0_214], %425 {strides = array<i32>} : memref<1408x32xf32, #tpu.memory_space<vmem>>, vector<16x32xf32>,
    %c0_215 = arith.constant 0 : index
    %c1312_216 = arith.constant 1312 : index
    %427 = vector.load %arg6[%c0_215, %c1312_216] : memref<16x2944xf32, #tpu.memory_space<vmem>>, vector<16x32xf32>
    %428 = vector.extract_strided_slice %12 {offsets = [0, 41], sizes = [16, 1], strides = [1, 1]} : vector<16x89xf32> to vector<16x1xf32>
    %429 = vector.broadcast %428 : vector<16x1xf32> to vector<16x32xf32>
    %430 = arith.mulf %427, %429 : vector<16x32xf32>
    %c656 = arith.constant 656 : index
    %c0_217 = arith.constant 0 : index
    %431 = vector.load %arg7[%c656, %c0_217] : memref<1408x32xf32, #tpu.memory_space<vmem>>, vector<16x32xf32>
    tpu.vector_store %arg7[%c656, %c0_217], %430 {strides = array<i32>} : memref<1408x32xf32, #tpu.memory_space<vmem>>, vector<16x32xf32>,
    %c0_218 = arith.constant 0 : index
    %c2720 = arith.constant 2720 : index
    %432 = vector.load %arg6[%c0_218, %c2720] : memref<16x2944xf32, #tpu.memory_space<vmem>>, vector<16x32xf32>
    %433 = vector.extract_strided_slice %12 {offsets = [0, 85], sizes = [16, 1], strides = [1, 1]} : vector<16x89xf32> to vector<16x1xf32>
    %434 = vector.broadcast %433 : vector<16x1xf32> to vector<16x32xf32>
    %435 = arith.mulf %432, %434 : vector<16x32xf32>
    %c1360 = arith.constant 1360 : index
    %c0_219 = arith.constant 0 : index
    %436 = vector.load %arg7[%c1360, %c0_219] : memref<1408x32xf32, #tpu.memory_space<vmem>>, vector<16x32xf32>
    tpu.vector_store %arg7[%c1360, %c0_219], %435 {strides = array<i32>} : memref<1408x32xf32, #tpu.memory_space<vmem>>, vector<16x32xf32>,
    %c0_220 = arith.constant 0 : index
    %c1344_221 = arith.constant 1344 : index
    %437 = vector.load %arg6[%c0_220, %c1344_221] : memref<16x2944xf32, #tpu.memory_space<vmem>>, vector<16x32xf32>
    %438 = vector.extract_strided_slice %12 {offsets = [0, 42], sizes = [16, 1], strides = [1, 1]} : vector<16x89xf32> to vector<16x1xf32>
    %439 = vector.broadcast %438 : vector<16x1xf32> to vector<16x32xf32>
    %440 = arith.mulf %437, %439 : vector<16x32xf32>
    %c672_222 = arith.constant 672 : index
    %c0_223 = arith.constant 0 : index
    %441 = vector.load %arg7[%c672_222, %c0_223] : memref<1408x32xf32, #tpu.memory_space<vmem>>, vector<16x32xf32>
    tpu.vector_store %arg7[%c672_222, %c0_223], %440 {strides = array<i32>} : memref<1408x32xf32, #tpu.memory_space<vmem>>, vector<16x32xf32>,
    %c0_224 = arith.constant 0 : index
    %c2752 = arith.constant 2752 : index
    %442 = vector.load %arg6[%c0_224, %c2752] : memref<16x2944xf32, #tpu.memory_space<vmem>>, vector<16x32xf32>
    %443 = vector.extract_strided_slice %12 {offsets = [0, 86], sizes = [16, 1], strides = [1, 1]} : vector<16x89xf32> to vector<16x1xf32>
    %444 = vector.broadcast %443 : vector<16x1xf32> to vector<16x32xf32>
    %445 = arith.mulf %442, %444 : vector<16x32xf32>
    %c1376 = arith.constant 1376 : index
    %c0_225 = arith.constant 0 : index
    %446 = vector.load %arg7[%c1376, %c0_225] : memref<1408x32xf32, #tpu.memory_space<vmem>>, vector<16x32xf32>
    tpu.vector_store %arg7[%c1376, %c0_225], %445 {strides = array<i32>} : memref<1408x32xf32, #tpu.memory_space<vmem>>, vector<16x32xf32>,
    %c0_226 = arith.constant 0 : index
    %c1376_227 = arith.constant 1376 : index
    %447 = vector.load %arg6[%c0_226, %c1376_227] : memref<16x2944xf32, #tpu.memory_space<vmem>>, vector<16x32xf32>
    %448 = vector.extract_strided_slice %12 {offsets = [0, 43], sizes = [16, 1], strides = [1, 1]} : vector<16x89xf32> to vector<16x1xf32>
    %449 = vector.broadcast %448 : vector<16x1xf32> to vector<16x32xf32>
    %450 = arith.mulf %447, %449 : vector<16x32xf32>
    %c688 = arith.constant 688 : index
    %c0_228 = arith.constant 0 : index
    %451 = vector.load %arg7[%c688, %c0_228] : memref<1408x32xf32, #tpu.memory_space<vmem>>, vector<16x32xf32>
    tpu.vector_store %arg7[%c688, %c0_228], %450 {strides = array<i32>} : memref<1408x32xf32, #tpu.memory_space<vmem>>, vector<16x32xf32>,
    %c0_229 = arith.constant 0 : index
    %c2784 = arith.constant 2784 : index
    %452 = vector.load %arg6[%c0_229, %c2784] : memref<16x2944xf32, #tpu.memory_space<vmem>>, vector<16x32xf32>
    %453 = vector.extract_strided_slice %12 {offsets = [0, 87], sizes = [16, 1], strides = [1, 1]} : vector<16x89xf32> to vector<16x1xf32>
    %454 = vector.broadcast %453 : vector<16x1xf32> to vector<16x32xf32>
    %455 = arith.mulf %452, %454 : vector<16x32xf32>
    %c1392 = arith.constant 1392 : index
    %c0_230 = arith.constant 0 : index
    %456 = vector.load %arg7[%c1392, %c0_230] : memref<1408x32xf32, #tpu.memory_space<vmem>>, vector<16x32xf32>
    tpu.vector_store %arg7[%c1392, %c0_230], %455 {strides = array<i32>} : memref<1408x32xf32, #tpu.memory_space<vmem>>, vector<16x32xf32>,
    %c0_231 = arith.constant 0 : index
    %c0_232 = arith.constant 0 : index
    %457 = vector.load %arg4[%c0_231, %c0_232] : memref<16x1408xf32, #tpu.memory_space<vmem>>, vector<16x1408xf32>
    %c0_233 = arith.constant 0 : index
    %c0_234 = arith.constant 0 : index
    %458 = vector.load %arg7[%c0_233, %c0_234] : memref<1408x32xf32, #tpu.memory_space<vmem>>, vector<1408x32xf32>
    %cst_235 = arith.constant dense<0.000000e+00> : vector<16x32xf32>
    %459 = tpu.matmul %457, %458, %cst_235 {dimension_numbers = #tpu.dot_dimension_numbers<[1], [0], [0], [1], [0, 0, 1, 1], [], []>} : vector<16x1408xf32>, vector<1408x32xf32>, vector<16x32xf32> -> vector<16x32xf32>
    %460 = arith.addf %16, %459 : vector<16x32xf32>
    %cst_236 = arith.constant 0.000000e+00 : f32
    %461 = vector.broadcast %cst_236 : f32 to vector<16x32xf32>
    %462 = arith.maximumf %460, %461 : vector<16x32xf32>
    %c0_237 = arith.constant 0 : index
    %c0_238 = arith.constant 0 : index
    %463 = vector.load %arg5[%c0_237, %c0_238] : memref<16x32xf32, #tpu.memory_space<vmem>>, vector<16x32xf32>
    tpu.vector_store %arg5[%c0_237, %c0_238], %462 {strides = array<i32>} : memref<16x32xf32, #tpu.memory_space<vmem>>, vector<16x32xf32>,
    return
  }
  func.func @transform_0(%arg0: i32) -> (i32, i32) {
    %c0_i32 = arith.constant 0 : i32
    %c0_i32_0 = arith.constant 0 : i32
    %c0_i32_1 = arith.constant 0 : i32
    return %c0_i32, %c0_i32_0 : i32, i32
  }
  func.func @transform_1(%arg0: i32) -> (i32, i32) {
    %c0_i32 = arith.constant 0 : i32
    %c0_i32_0 = arith.constant 0 : i32
    %c0_i32_1 = arith.constant 0 : i32
    return %c0_i32, %c0_i32_0 : i32, i32
  }
  func.func @transform_2(%arg0: i32) -> (i32, i32) {
    %c0_i32 = arith.constant 0 : i32
    %c0_i32_0 = arith.constant 0 : i32
    %c0_i32_1 = arith.constant 0 : i32
    return %c0_i32, %c0_i32_0 : i32, i32
  }
  func.func @transform_3(%arg0: i32) -> (i32, i32) {
    %c0_i32 = arith.constant 0 : i32
    %c0_i32_0 = arith.constant 0 : i32
    %c0_i32_1 = arith.constant 0 : i32
    return %c0_i32, %c0_i32_0 : i32, i32
  }
  func.func @transform_4(%arg0: i32) -> (i32, i32) {
    %c0_i32 = arith.constant 0 : i32
    %c0_i32_0 = arith.constant 0 : i32
    %c0_i32_1 = arith.constant 0 : i32
    return %c0_i32, %c0_i32_0 : i32, i32
  }
}

</mosaic_0001>

<bundles_post_ra>
// kernel: graph_convolution.1
= control target key start
LH: loop header
LB: loop body
LE: loop exit
PB: predicated region body
PF: predicated region fallthrough
CT: control target
= control target key end

     0   :  { %v5939_v4 = vmov 0.0   ;;  %vm187_vm0 = vcmask 130048   ;;  %s5934_s0 = inlined_call_operand.vmem [shape: f32[16,16], index: 0, kind: input, shape index: {}]   ;;  %s5935_s1 = inlined_call_operand.vmem [shape: f32[16,2944], index: 1, kind: input, shape index: {}]   ;;  %s5936_s2 = inlined_call_operand.vmem [shape: f32[1,2944], index: 2, kind: input, shape index: {}]   ;;  %s5937_s3 = inlined_call_operand.vmem [shape: f32[16,1408], index: 3, kind: input, shape index: {}]   ;;  %s5938_s4 = inlined_call_operand.hbm [shape: f32[16,32], index: 4, kind: output, shape index: {}]  }
   0x1   :  { %v46_v0 = vld [vmem:[%s5935_s1 + $0xd0] sm:$0xff]  ;;  %v45_v1 = vld [vmem:[%s5935_s1 + $0xc8] sm:$0xff]  ;;  %v23_v2 = vld [vmem:[%s5935_s1 + $0x18] sm:$0xff]  ;;  %335 = vmatprep.mubr.f32.mxu1 %v5939_v4  ;;  %258 = vmatprep.mubr.f32.mxu0 %v5939_v4 }
   0x2   :  { %299 = vmatprep.subr.mxu1 %v46_v0  ;;  %v22_v3 = vld [vmem:[%s5935_s1 + $0x10] sm:$0xff]  ;;  %v4332_v5 = vld [vmem:[%s5934_s0] sm:$0xff]  ;;  %v49_v7 = vld [vmem:[%s5935_s1 + $0xe8] sm:$0xff] }
   0x3   :  { %300 = vmatpush1.msra.mxu1 %v45_v1  ;;  %v50_v6 = vld [vmem:[%s5935_s1 + $0xf0] sm:$0xff]  ;;  %v27_v8 = vld [vmem:[%s5935_s1 + $0x38] sm:$0xff]  ;;  %v4353_v10 = vld [vmem:[%s5934_s0 + $0x8] sm:$0xff] }
   0x4   :  { %301 = vmatprep.subr.mxu1 %v23_v2  ;;  %v26_v9 = vld [vmem:[%s5935_s1 + $0x30] sm:$0xff]  ;;  %v44_v12 = vld [vmem:[%s5935_s1 + $0xc0] sm:$0xff]  ;;  %v43_v13 = vld [vmem:[%s5935_s1 + $0xb8] sm:$0xff] }
   0x5   :  { %302 = vmatpush1.msra.mxu1 %v22_v3  ;;  %v54_v11 = vld [vmem:[%s5935_s1 + $0x110] sm:$0xff]  ;;  %v21_v14 = vld [vmem:[%s5935_s1 + $0x8] sm:$0xff] }
   0x6   :  { %3621 = vmatmul.mubr.msk.f32.vlgmr.msra.gmra.mxu1 %vm187_vm0, %v4332_v5  ;;  %453 = vmatprep.subr.mxu1 %v50_v6 }
   0x7   :  { %454 = vmatpush1.msra.mxu1 %v49_v7  ;;  %341 = vmatprep.mubr.f32.mxu1 %v5939_v4 }
   0x8   :  { %455 = vmatprep.subr.mxu1 %v27_v8 }
   0x9   :  { %456 = vmatpush1.msra.mxu1 %v26_v9 }
   0xa   :  { %3622 = vmatmul.mubr.msk.f32.gmra.mxu1 %vm187_vm0, %v4353_v10  ;;  %607 = vmatprep.subr.mxu1 %v54_v11 }
   0xb   :  { %9 = vsyncpa [#allocation5], 0  ;;  %489 = vmatprep.mubr.f32.mxu1 %v5939_v4  ;;  %222 = vmatprep.subr.mxu0 %v44_v12  ;;  %v20_v15 = vld [vmem:[%s5935_s1] sm:$0xff]  ;;  %v53_v16 = vld [vmem:[%s5935_s1 + $0x108] sm:$0xff]  ;;  %v5952_v41 = vmov 32   ;;  %v4197_v42 = vmov 120   ;;  %v72_v43 = vlaneseq }
   0xc   :  { %223 = vmatpush1.msra.mxu0 %v43_v13  ;;  %v31_v17 = vld [vmem:[%s5935_s1 + $0x58] sm:$0xff]  ;;  %v30_v18 = vld [vmem:[%s5935_s1 + $0x50] sm:$0xff]  ;;  %v57_v20 = vld [vmem:[%s5935_s1 + $0x128] sm:$0xff]  ;;  %3996 = vset.pattern.permute.xlu1 %v5952_v41  ;;  %v5955_v41 = vmov 43   ;;  %vm1200_vm1 = vcmask 261120   ;;  %s4242_s5 = smov 96  }
   0xd   :  { %224 = vmatprep.subr.mxu0 %v21_v14  ;;  %v58_v19 = vld [vmem:[%s5935_s1 + $0x130] sm:$0xff]  ;;  %v35_v21 = vld [vmem:[%s5935_s1 + $0x78] sm:$0xff]  ;;  %v61_v24 = vld [vmem:[%s5935_s1 + $0x148] sm:$0xff]  ;;  %3995 = vset.pattern.permute.xlu0 %v4197_v42  ;;  %v4501_v44 = vshrl.u32 %v72_v43, 7  ;;  %s4243_s6 = smov 64   ;;  %s4244_s7 = smov 32  }
   0xe   :  { %3625 = vmatmul.mubr.msk.f32.vlgmr.msra.gmra.mxu1 %vm187_vm0, %v4332_v5  ;;  %225 = vmatpush1.msra.mxu0 %v20_v15  ;;  %v34_v22 = vld [vmem:[%s5935_s1 + $0x70] sm:$0xff]  ;;  %v39_v25 = vld [vmem:[%s5935_s1 + $0x98] sm:$0xff]  ;;  %v65_v27 = vld [vmem:[%s5935_s1 + $0x168] sm:$0xff] }
   0xf   :  { %608 = vmatpush1.msra.mxu1 %v53_v16  ;;  %495 = vmatprep.mubr.f32.mxu1 %v5939_v4  ;;  %v62_v23 = vld [vmem:[%s5935_s1 + $0x150] sm:$0xff]  ;;  %v48_v29 = vld [vmem:[%s5935_s1 + $0xe0] sm:$0xff]  ;;  %v47_v30 = vld [vmem:[%s5935_s1 + $0xd8] sm:$0xff]  ;;  %v4504_v45 = vsub.s32 2, %v4501_v44  ;;  %v86_v47 = vsub.s32 3, %v4501_v44  ;;  %v98_v52 = vsub.s32 6, %v4501_v44 }
  0x10   :  { %609 = vmatprep.subr.mxu1 %v31_v17  ;;  %3619 = vmatmul.mubr.msk.f32.vlgmr.msra.gmra.mxu0 %vm187_vm0, %v4332_v5  ;;  %v38_v26 = vld [vmem:[%s5935_s1 + $0x90] sm:$0xff]  ;;  %v25_v31 = vld [vmem:[%s5935_s1 + $0x28] sm:$0xff]  ;;  %v24_v32 = vld [vmem:[%s5935_s1 + $0x20] sm:$0xff]  ;;  %v102_v55 = vsub.s32 7, %v4501_v44 }
  0x11   :  { %610 = vmatpush1.msra.mxu1 %v30_v18  ;;  %264 = vmatprep.mubr.f32.mxu0 %v5939_v4  ;;  %v42_v28 = vld [vmem:[%s5935_s1 + $0xb0] sm:$0xff]  ;;  %v52_v33 = vld [vmem:[%s5935_s1 + $0x100] sm:$0xff]  ;;  %v51_v34 = vld [vmem:[%s5935_s1 + $0xf8] sm:$0xff]  ;;  %5988 = vst [vmem:[#allocation7_spill] sm:$0xff] %v4504_v45 }
  0x12   :  { %3626 = vmatmul.mubr.msk.f32.gmra.mxu1 %vm187_vm0, %v4353_v10  ;;  %761 = vmatprep.subr.mxu1 %v58_v19  ;;  %v29_v35 = vld [vmem:[%s5935_s1 + $0x48] sm:$0xff]  ;;  %v28_v36 = vld [vmem:[%s5935_s1 + $0x40] sm:$0xff]  ;;  %v55_v38 = vld [vmem:[%s5935_s1 + $0x118] sm:$0xff] }
  0x13   :  { %643 = vmatprep.mubr.f32.mxu1 %v5939_v4  ;;  %376 = vmatprep.subr.mxu0 %v48_v29  ;;  %v56_v37 = vld [vmem:[%s5935_s1 + $0x120] sm:$0xff]  ;;  %v33_v39 = vld [vmem:[%s5935_s1 + $0x68] sm:$0xff] }
  0x14   :  { %3620 = vmatmul.mubr.msk.f32.gmra.mxu0 %vm187_vm0, %v4353_v10  ;;  %v32_v40 = vld [vmem:[%s5935_s1 + $0x60] sm:$0xff]  ;;  %v4542_v3 = vld [vmem:[%s5936_s2 + $0x8] sm:$0xff] }
  0x15   :  { %412 = vmatprep.mubr.f32.mxu0 %v5939_v4  ;;  %377 = vmatpush1.msra.mxu0 %v47_v30  ;;  %v4509_v46 = vld [vmem:[%s5936_s2] sm:$0xff]  ;;  %v4547_v7 = vrot.slane %v4542_v3, %v86_v47  ;;  %v131_v13 = vrot.slane %v4542_v3, %v98_v52  ;;  %v4560_v15 = vrot.slane %v4542_v3, %v102_v55  ;;  %v37_v43 = vld [vmem:[%s5935_s1 + $0x88] sm:$0xff] }
  0x16   :  { %3629 = vmatmul.mubr.msk.f32.vlgmr.msra.gmra.mxu1 %vm187_vm0, %v4332_v5  ;;  %378 = vmatprep.subr.mxu0 %v25_v31  ;;  %v4514_v48 = vrot.slane %v4509_v46, %v4504_v45  ;;  %v4517_v49 = vrot.slane %v4509_v46, %v86_v47  ;;  %v99_v57 = vrot.slane %v4509_v46, %v98_v52 }
  0x17   :  { %762 = vmatpush1.msra.mxu1 %v57_v20  ;;  %649 = vmatprep.mubr.f32.mxu1 %v5939_v4  ;;  %v103_v59 = vrot.slane %v4509_v46, %v102_v55  ;;  %v4615_v55 = vsub.s32 1, %v4501_v44 }
  0x18   :  { %763 = vmatprep.subr.mxu1 %v35_v21  ;;  %379 = vmatpush1.msra.mxu0 %v24_v32 }
  0x19   :  { %764 = vmatpush1.msra.mxu1 %v34_v22  ;;  %3623 = vmatmul.mubr.msk.f32.vlgmr.msra.gmra.mxu0 %vm187_vm0, %v4332_v5 }
  0x1a   :  { %3630 = vmatmul.mubr.msk.f32.gmra.mxu1 %vm187_vm0, %v4353_v10  ;;  %915 = vmatprep.subr.mxu1 %v62_v23  ;;  %v4574_v23 = vld [vmem:[%s5936_s2 + $0x10] sm:$0xff] }
  0x1b   :  { %797 = vmatprep.mubr.f32.mxu1 %v5939_v4  ;;  %418 = vmatprep.mubr.f32.mxu0 %v5939_v4  ;;  %v4584_v29 = vrot.slane %v4574_v23, %v98_v52 }
  0x1c   :  { %530 = vmatprep.subr.mxu0 %v52_v33 }
  0x1d   :  { %3624 = vmatmul.mubr.msk.f32.gmra.mxu0 %vm187_vm0, %v4353_v10 }
  0x1e   :  { %3633 = vmatmul.mubr.msk.f32.vlgmr.msra.gmra.mxu1 %vm187_vm0, %v4332_v5  ;;  %531 = vmatpush1.msra.mxu0 %v51_v34 }
  0x1f   :  { %916 = vmatpush1.msra.mxu1 %v61_v24  ;;  %803 = vmatprep.mubr.f32.mxu1 %v5939_v4  ;;  %v151_v24 = vrot.slane %v4574_v23, %v86_v47 }
  0x20   :  { %917 = vmatprep.subr.mxu1 %v39_v25  ;;  %566 = vmatprep.mubr.f32.mxu0 %v5939_v4 }
  0x21   :  { %918 = vmatpush1.msra.mxu1 %v38_v26  ;;  %532 = vmatprep.subr.mxu0 %v29_v35 }
  0x22   :  { %3634 = vmatmul.mubr.msk.f32.gmra.mxu1 %vm187_vm0, %v4353_v10  ;;  %3857 = vmatprep.subr.mxu1 %v65_v27 }
  0x23   :  { %951 = vmatprep.mubr.f32.mxu1 %v5939_v4  ;;  %533 = vmatpush1.msra.mxu0 %v28_v36 }
  0x24   :  { %3627 = vmatmul.mubr.msk.f32.vlgmr.msra.gmra.mxu0 %vm187_vm0, %v4332_v5  ;;  %684 = vmatprep.subr.mxu0 %v56_v37  ;;  %v60_v37 = vld [vmem:[%s5935_s1 + $0x140] sm:$0xff] }
  0x25   :  { %572 = vmatprep.mubr.f32.mxu0 %v5939_v4  ;;  %685 = vmatpush1.msra.mxu0 %v55_v38  ;;  %v59_v38 = vld [vmem:[%s5935_s1 + $0x138] sm:$0xff] }
  0x26   :  { %3637 = vmatmul.mubr.msk.f32.vlgmr.msra.gmra.mxu1 %vm187_vm0, %v4332_v5  ;;  %686 = vmatprep.subr.mxu0 %v33_v39  ;;  %v4599_v39 = vsub.s32 0, %v4501_v44 }
  0x27   :  { %3858 = vmatpush3.msra.mxu1 %v65_v27  ;;  %957 = vmatprep.mubr.f32.mxu1 %v5939_v4 }
  0x28   :  { %3859 = vmatprep.subr.mxu1 %v42_v28  ;;  %3628 = vmatmul.mubr.msk.f32.gmra.mxu0 %vm187_vm0, %v4353_v10  ;;  %v4606_v47 = vrot.slane %v4509_v46, %v4599_v39 }
  0x29   :  { %3860 = vmatpush3.msra.mxu1 %v42_v28  ;;  %720 = vmatprep.mubr.f32.mxu0 %v5939_v4 }
  0x2a   :  { %3638 = vmatmul.mubr.msk.f32.gmra.mxu1 %vm187_vm0, %v4353_v10  ;;  %687 = vmatpush1.msra.mxu0 %v32_v40 }
  0x2b   :  { %3861 = vmatprep.mubr.msk.f32.mxu1 %vm187_vm0, %v4332_v5  ;;  %838 = vmatprep.subr.mxu0 %v60_v37  ;;  %v4202_v37 = vmov 78  }
  0x2c   :  { %3631 = vmatmul.mubr.msk.f32.vlgmr.msra.gmra.mxu0 %vm187_vm0, %v4332_v5 }
  0x2d   :  { %726 = vmatprep.mubr.f32.mxu0 %v5939_v4  ;;  %839 = vmatpush1.msra.mxu0 %v59_v38  ;;  %v5940_v38 = vmov 35  }
  0x2e   :  { %3862 = vmatmul.mubr.msk.f32.vlgmr.msra.gmra.mxu1 %vm187_vm0, %v4353_v10  ;;  %840 = vmatprep.subr.mxu0 %v37_v43 }
  0x30   :  { %3632 = vmatmul.mubr.msk.f32.gmra.mxu0 %vm187_vm0, %v4353_v10 }
  0x31   :  { %874 = vmatprep.mubr.f32.mxu0 %v5939_v4 }
  0xc6   :  { %v337_v50 = vpop.f32.mrf.mxu1 }
  0xc7   :  { %v4520_v51 = vadd.f32 %v337_v50, %v4514_v48  ;;  %v36_v50 = vld [vmem:[%s5935_s1 + $0x80] sm:$0xff] }
  0xc8   :  { %v339_v53 = vpop.f32.mrf.mxu1  ;;  %841 = vmatpush1.msra.mxu0 %v36_v50 }
  0xc9   :  { %v4524_v54 = vadd.f32 %v339_v53, %v4517_v49  ;;  %3635 = vmatmul.mubr.msk.f32.vlgmr.msra.gmra.mxu0 %vm187_vm0, %v4332_v5  ;;  %v4635_v5 = vsub.s32 4, %v4501_v44 }
  0xca   :  { %v4527_v56 = vpop.f32.mrf.mxu1  ;;  %880 = vmatprep.mubr.f32.mxu0 %v5939_v4 }
  0xcb   :  { %5997 = vst [vmem:[#allocation16_spill] sm:$0xff] %v4635_v5 }
  0xcc   :  { %v4530_v58 = vpop.f32.mrf.mxu1 }
  0xcd   :  { %3636 = vmatmul.mubr.msk.f32.gmra.mxu0 %vm187_vm0, %v4353_v10 }
  0xce   :  { %v491_v60 = vpop.f32.mrf.mxu1  ;;  %1028 = vmatprep.mubr.f32.mxu0 %v5939_v4  ;;  %v5942_v4 = vmov 36  }
  0xcf   :  { %v4533_v61 = vadd.f32 %v491_v60, %v99_v57 }
  0xd0   :  { %v493_v62 = vpop.f32.mrf.mxu1  ;;  %v260_v40 = vpop.f32.mrf.mxu0 }
  0xd1   :  { %v4535_v63 = vadd.f32 %v493_v62, %v103_v59  ;;  %v4612_v52 = vadd.f32 %v260_v40, %v4606_v47  ;;  %v4677_v40 = vsub.s32 5, %v4501_v44 }
  0xd2   :  { %v497_v0 = vpop.f32.mrf.mxu1  ;;  %v262_v53 = vpop.f32.mrf.mxu0 }
  0xd3   :  { %v4537_v1 = vadd.f32 %v497_v0, %v99_v57 }
  0xd4   :  { %v499_v2 = vpop.f32.mrf.mxu1  ;;  %v4619_v57 = vpop.f32.mrf.mxu0 }
  0xd5   :  { %v4544_v6 = vadd.f32 %v499_v2, %v103_v59  ;;  %v4624_v59 = vrot.slane %v4509_v46, %v4615_v55 }
  0xd6   :  { %v4549_v8 = vpop.f32.mrf.mxu1  ;;  %v4629_v62 = vpop.f32.mrf.mxu0 }
  0xd7   :  { %5989 = vst [vmem:[#allocation8_spill] sm:$0xff] %v4544_v6  ;;  %5990 = vst [vmem:[#allocation9_spill] sm:$0xff] %v4549_v8  ;;  %v4627_v60 = vadd.f32 %v262_v53, %v4624_v59  ;;  %v4686_v53 = vrot.slane %v4542_v3, %v4677_v40  ;;  %v6033_v8 = vmov 91   ;;  %v6038_v6 = vmov 51  }
  0xd8   :  { %v647_v9 = vpop.f32.mrf.mxu1 }
  0xd9   :  { %v4552_v11 = vadd.f32 %v647_v9, %v4547_v7  ;;  %v414_v0 = vpop.f32.mrf.mxu0  ;;  %v4643_v9 = vrot.slane %v4509_v46, %v4635_v5 }
  0xda   :  { %v4554_v12 = vpop.f32.mrf.mxu1 }
  0xdb   :  { %5991 = vst [vmem:[#allocation10_spill] sm:$0xff] %v4554_v12  ;;  %v4648_v10 = vadd.f32 %v414_v0, %v4643_v9  ;;  %v4204_v0 = vmov 79   ;;  %v5984_v12 = vmov 97  }
  0xdc   :  { %v4557_v14 = vpop.f32.mrf.mxu1 }
  0xde   :  { %v799_v16 = vpop.f32.mrf.mxu1 }
  0xdf   :  { %v4562_v17 = vadd.f32 %v799_v16, %v131_v13 }
  0xe0   :  { %v801_v18 = vpop.f32.mrf.mxu1 }
  0xe1   :  { %v4565_v19 = vadd.f32 %v801_v18, %v4560_v15  ;;  %v4198_v18 = vmov 76  }
  0xe2   :  { %v805_v20 = vpop.f32.mrf.mxu1 }
  0xe3   :  { %v4567_v21 = vadd.f32 %v805_v20, %v131_v13  ;;  %v4645_v13 = vpop.f32.mrf.mxu0  ;;  %v5945_v20 = vmov 33  }
  0xe4   :  { %v4569_v22 = vpop.f32.mrf.mxu1 }
  0xe5   :  { %v4650_v16 = vpop.f32.mrf.mxu0 }
  0xe6   :  { %v4577_v25 = vpop.f32.mrf.mxu1 }
  0xe7   :  { %5992 = vst [vmem:[#allocation11_spill] sm:$0xff] %v4577_v25 }
  0xe8   :  { %v955_v26 = vpop.f32.mrf.mxu1 }
  0xe9   :  { %v4579_v27 = vadd.f32 %v955_v26, %v151_v24 }
  0xea   :  { %v4581_v28 = vpop.f32.mrf.mxu1 }
  0xeb   :  { %5993 = vst [vmem:[#allocation12_spill] sm:$0xff] %v4579_v27  ;;  %5994 = vst [vmem:[#allocation13_spill] sm:$0xff] %v4581_v28  ;;  %v6025_v28 = vmov 42   ;;  %v6030_v27 = vmov 88  }
  0xec   :  { %v961_v30 = vpop.f32.mrf.mxu1 }
  0xed   :  { %v4586_v31 = vadd.f32 %v961_v30, %v151_v24  ;;  %v4654_v24 = vpop.f32.mrf.mxu0  ;;  %v4200_v30 = vmov 77  }
  0xee   :  { %v3863_v32 = vpop.f32.mrf.mxu1 }
  0xef   :  { %5995 = vst [vmem:[#allocation14_spill] sm:$0xff] %v4586_v31  ;;  %v4589_v33 = vadd.f32 %v3863_v32, %v4584_v29  ;;  %v4658_v46 = vpop.f32.mrf.mxu0  ;;  %v5941_v32 = vmov 34   ;;  %v5979_v31 = vmov 95  }
  0xf0   :  { %5998 = vst [vmem:[#allocation17_spill] sm:$0xff] %v4658_v46 }
  0xf1   :  { %5996 = vst [vmem:[#allocation15_spill] sm:$0xff] %v4589_v33  ;;  %v3644_v34 = vmul.f32 -1.442695, %v4589_v33  ;;  %v4660_v26 = vpop.f32.mrf.mxu0  ;;  %v6019_v33 = vmov 83  }
  0xf2   :  { %5999 = vst [vmem:[#allocation18_spill] sm:$0xff] %v4660_v26  ;;  %v6034_v26 = vmov 92  }
  0xf3   :  { %4160 = vpow2.f32 %v3644_v34  ;;  %v4666_v34 = vpop.f32.mrf.mxu0 }
  0xf4   :  { %6000 = vst [vmem:[#allocation19_spill] sm:$0xff] %v4666_v34  ;;  %v6026_v34 = vmov 93  }
 0x100   :  { %v4161_v35 = vpop.eup %4160 }
 0x101   :  { %v1171_v36 = vadd.f32 1.0, %v4161_v35  ;;  %v4668_v35 = vpop.f32.mrf.mxu0 }
 0x102   :  { %6001 = vst [vmem:[#allocation20_spill] sm:$0xff] %v4668_v35 }
 0x103   :  { %4162 = vrcp.f32 %v1171_v36  ;;  %v4672_v36 = vrot.slane %v4542_v3, %v4635_v5  ;;  %v722_v43 = vpop.f32.mrf.mxu0  ;;  %v5948_v3 = vmov 37  }
 0x105   :  { %v4682_v50 = vadd.f32 %v722_v43, %v4672_v36  ;;  %v724_v44 = vpop.f32.mrf.mxu0  ;;  %v5943_v43 = vmov 80  }
 0x110   :  { %v4637_v2 = vpop.eup %4162 }
 0x111   :  { %1195 = vperm.xlu1 %3996, %v4637_v2   ;;  %1183 = vperm.xlu0 %3995, %v4637_v2  }
 0x115   :  { %3997 = vset.pattern.permute.xlu1 %v4198_v18  ;;  %3998 = vset.pattern.permute.xlu0 %v5945_v20  ;;  %v5950_v20 = vmov 84  }
 0x116   :  { %1210 = vperm.xlu1 %3997, %v4637_v2   ;;  %1224 = vperm.xlu0 %3998, %v4637_v2  }
 0x11a   :  { %3999 = vset.pattern.permute.xlu1 %v4200_v30  ;;  %4000 = vset.pattern.permute.xlu0 %v5941_v32  ;;  %v5944_v32 = vmov 81  }
 0x11b   :  { %1246 = vperm.xlu1 %3999, %v4637_v2   ;;  %1268 = vperm.xlu0 %4000, %v4637_v2  }
 0x11f   :  { %4001 = vset.pattern.permute.xlu1 %v4202_v37  ;;  %4002 = vset.pattern.permute.xlu0 %v5940_v38  ;;  %v4693_v38 = vadd.f32 %v724_v44, %v4686_v53  ;;  %v5947_v44 = vmov 38  }
 0x120   :  { %1290 = vperm.xlu1 %4001, %v4637_v2   ;;  %1312 = vperm.xlu0 %4002, %v4637_v2  }
 0x124   :  { %4003 = vset.pattern.permute.xlu1 %v4204_v0  ;;  %4004 = vset.pattern.permute.xlu0 %v5942_v4  ;;  %v5946_v4 = vmov 82  }
 0x125   :  { %1334 = vperm.xlu1 %4003, %v4637_v2   ;;  %1356 = vperm.xlu0 %4004, %v4637_v2  }
 0x129   :  { %4005 = vset.pattern.permute.xlu1 %v5943_v43  ;;  %4007 = vset.pattern.permute.xlu0 %v5944_v32  ;;  %v5949_v43 = vmov 83   ;;  %v5951_v32 = vmov 39  }
 0x12a   :  { %1370 = vperm.xlu1 %4005, %v4637_v2   ;;  %1406 = vperm.xlu0 %4007, %v4637_v2  }
 0x12e   :  { %4006 = vset.pattern.permute.xlu1 %v5948_v3  ;;  %4009 = vset.pattern.permute.xlu0 %v5946_v4  ;;  %v1107_v4 = vpop.f32.mrf.mxu1  ;;  %v4214_v3 = vmov 40  }
 0x12f   :  { %1384 = vperm.xlu1 %4006, %v4637_v2   ;;  %1450 = vperm.xlu0 %4009, %v4637_v2  }
 0x133   :  { %4008 = vset.pattern.permute.xlu1 %v5947_v44  ;;  %4011 = vset.pattern.permute.xlu0 %v5949_v43  ;;  %v4712_v44 = vadd.f32 %v1107_v4, %v4584_v29  ;;  %v5953_v43 = vmov 42   ;;  %v5956_v4 = vmov 85   ;;  %v5957_v29 = vmov 44  }
 0x134   :  { %1428 = vperm.xlu1 %4008, %v4637_v2   ;;  %1494 = vperm.xlu0 %4011, %v4637_v2  }
 0x135   :  { %6002 = vst [vmem:[#allocation21_spill] sm:$0xff] %v4712_v44 }
 0x138   :  { %4010 = vset.pattern.permute.xlu1 %v5951_v32  ;;  %4013 = vset.pattern.permute.xlu0 %v5950_v20  ;;  %v3643_v20 = vmul.f32 -1.442695, %v4712_v44  ;;  %v5954_v32 = vmov 41   ;;  %v6017_v44 = vmov 82  }
 0x139   :  { %1472 = vperm.xlu1 %4010, %v4637_v2   ;;  %1530 = vperm.xlu0 %4013, %v4637_v2  }
 0x13a   :  { %4164 = vpow2.f32 %v3643_v20 }
 0x13d   :  { %4012 = vset.pattern.permute.xlu1 %v4214_v3  ;;  %4016 = vset.pattern.permute.xlu0 %v5953_v43  ;;  %v5958_v43 = vmov 86  }
 0x13e   :  { %1516 = vperm.xlu1 %4012, %v4637_v2   ;;  %1588 = vperm.xlu0 %4016, %v4637_v2  }
 0x142   :  { %4014 = vset.pattern.permute.xlu1 %v5954_v32  ;;  %4018 = vset.pattern.permute.xlu0 %v5955_v41  ;;  %v5959_v32 = vmov 89   ;;  %v5960_v41 = vmov 87  }
 0x143   :  { %1544 = vperm.xlu1 %4014, %v4637_v2   ;;  %1632 = vperm.xlu0 %4018, %v4637_v2  }
 0x147   :  { %4015 = vset.pattern.permute.xlu1 %v5956_v4  ;;  %4020 = vset.pattern.permute.xlu0 %v5957_v29  ;;  %v4165_v20 = vpop.eup %4164  ;;  %v5961_v4 = vmov 90  }
 0x148   :  { %1566 = vperm.xlu1 %4015, %v4637_v2   ;;  %1676 = vperm.xlu0 %4020, %v4637_v2   ;;  %v1170_v29 = vadd.f32 1.0, %v4165_v20  ;;  %v5971_v20 = vmov 46  }
 0x14a   :  { %4166 = vrcp.f32 %v1170_v29 }
 0x14c   :  { %4017 = vset.pattern.permute.xlu1 %v5958_v43  ;;  %4023 = vset.pattern.permute.xlu0 %v5959_v32  ;;  %v5962_v43 = vmov 88   ;;  %v5963_v32 = vmov 91  }
 0x14d   :  { %1610 = vperm.xlu1 %4017, %v4637_v2   ;;  %1726 = vperm.xlu0 %4023, %v4637_v2  }
 0x151   :  { %4019 = vset.pattern.permute.xlu1 %v5960_v41  ;;  %4025 = vset.pattern.permute.xlu0 %v5961_v4  ;;  %v5972_v41 = vmov 45   ;;  %v5964_v4 = vmov 92  }
 0x152   :  { %1654 = vperm.xlu1 %4019, %v4637_v2   ;;  %1770 = vperm.xlu0 %4025, %v4637_v2  }
 0x156   :  { %4021 = vset.pattern.permute.xlu1 %v5962_v43  ;;  %4027 = vset.pattern.permute.xlu0 %v5963_v32  ;;  %v5965_v43 = vmov 50   ;;  %v5970_v32 = vmov 47  }
 0x157   :  { %1690 = vperm.xlu1 %4021, %v4637_v2   ;;  %1814 = vperm.xlu0 %4027, %v4637_v2   ;;  %v4747_v29 = vpop.eup %4166 }
 0x15b   :  { %4022 = vset.pattern.permute.xlu1 %v5972_v41  ;;  %4029 = vset.pattern.permute.xlu0 %v5964_v4  ;;  %v5969_v4 = vmov 48  }
 0x15c   :  { %1704 = vperm.xlu1 %4022, %v4637_v2   ;;  %1850 = vperm.xlu0 %4029, %v4637_v2  }
 0x160   :  { %4024 = vset.pattern.permute.xlu1 %v5971_v20  ;;  %4032 = vset.pattern.permute.xlu0 %v5965_v43  ;;  %v5966_v43 = vmov 49  }
 0x161   :  { %1748 = vperm.xlu1 %4024, %v4637_v2   ;;  %1908 = vperm.xlu0 %4032, %v4637_v2  }
 0x165   :  { %4026 = vset.pattern.permute.xlu1 %v5970_v32  ;;  %4034 = vset.pattern.permute.xlu0 %v4197_v42  ;;  %v5967_v42 = vmov 93   ;;  %v6016_v32 = vmov 87  }
 0x166   :  { %1792 = vperm.xlu1 %4026, %v4637_v2   ;;  %1178 = vperm.xlu0 %4034, %v4747_v29  }
 0x16a   :  { %4028 = vset.pattern.permute.xlu1 %v5969_v4  ;;  %4036 = vset.pattern.permute.xlu0 %v4198_v18  ;;  %v5968_v18 = vmov 94   ;;  %v6010_v4 = vmov 35  }
 0x16b   :  { %1836 = vperm.xlu1 %4028, %v4637_v2   ;;  %1206 = vperm.xlu0 %4036, %v4747_v29  }
 0x16f   :  { %4030 = vset.pattern.permute.xlu1 %v5966_v43  ;;  %4038 = vset.pattern.permute.xlu0 %v4200_v30  ;;  %v6003_v30 = vmov 32   ;;  %v6004_v43 = vmov 37  }
 0x170   :  { %1864 = vperm.xlu1 %4030, %v4637_v2   ;;  %1242 = vperm.xlu0 %4038, %v4747_v29  }
 0x174   :  { %4031 = vset.pattern.permute.xlu1 %v5967_v42  ;;  %4040 = vset.pattern.permute.xlu0 %v4202_v37  ;;  %v6005_v37 = vmov 33   ;;  %v6006_v42 = vmov 38  }
 0x175   :  { %1886 = vperm.xlu1 %4031, %v4637_v2   ;;  %1286 = vperm.xlu0 %4040, %v4747_v29  }
 0x179   :  { %4033 = vset.pattern.permute.xlu1 %v5968_v18  ;;  %4042 = vset.pattern.permute.xlu0 %v4204_v0  ;;  %v6007_v0 = vmov 34   ;;  %v6008_v18 = vmov 39  }
 0x17a   :  { %1930 = vperm.xlu1 %4033, %v4637_v2   ;;  %1330 = vperm.xlu0 %4042, %v4747_v29  }
 0x17e   :  { %4035 = vset.pattern.permute.xlu1 %v6003_v30  ;;  %4045 = vset.pattern.permute.xlu0 %v6004_v43  ;;  %v4783_v43 = vadd.f32 %v4619_v57, %v4606_v47  ;;  %v4795_v47 = vadd.f32 %v4557_v14, %v4547_v7  ;;  %v6013_v7 = vmov 80   ;;  %v6014_v14 = vmov 86  }
 0x17f   :  { %1191 = vperm.xlu1 %4035, %v4747_v29   ;;  %1380 = vperm.xlu0 %4045, %v4747_v29  }
 0x183   :  { %4037 = vset.pattern.permute.xlu1 %v6005_v37  ;;  %4047 = vset.pattern.permute.xlu0 %v6006_v42 }
 0x184   :  { %1220 = vperm.xlu1 %4037, %v4747_v29   ;;  %1424 = vperm.xlu0 %4047, %v4747_v29  }
 0x188   :  { %4039 = vset.pattern.permute.xlu1 %v6007_v0  ;;  %4049 = vset.pattern.permute.xlu0 %v6008_v18 }
 0x189   :  { %1264 = vperm.xlu1 %4039, %v4747_v29   ;;  %1468 = vperm.xlu0 %4049, %v4747_v29  }
 0x18c   :  { %v4785_v30 = vpop.permute.xlu0 %1183  ;;  %v1196_v42 = vpop.permute.xlu1 %1195 }
 0x18d   :  { %6009 = vst [vmem:[#allocation22_spill] sm:$0xff] %v4785_v30  ;;  %v1199_v37 = vmul.f32 %v1196_v42, %v4783_v43  ;;  %4041 = vset.pattern.permute.xlu1 %v6010_v4  ;;  %4051 = vset.pattern.permute.xlu0 %v4214_v3  ;;  %v6011_v42 = vmov 36   ;;  %v6012_v4 = vmov 85   ;;  %v6018_v30 = vmov 45  }
 0x18e   :  { %1308 = vperm.xlu1 %4041, %v4747_v29   ;;  %1512 = vperm.xlu0 %4051, %v4747_v29  }
 0x18f   :  { %1202 = vst.msk [vmem:[#allocation3 + $0x8] sm:$0xff] %vm1200_vm1, %v1199_v37 }
 0x191   :  { %v1211_v57 = vpop.permute.xlu1 %1210  ;;  %v4797_v18 = vpop.permute.xlu0 %1224 }
 0x192   :  { %v1214_v0 = vmul.f32 %v1211_v57, %v4795_v47  ;;  %4043 = vset.pattern.permute.xlu1 %v6011_v42  ;;  %4054 = vset.pattern.permute.xlu0 %v6012_v4  ;;  %v6015_v4 = vmov 81  }
 0x193   :  { %1352 = vperm.xlu1 %4043, %v4747_v29   ;;  %1562 = vperm.xlu0 %4054, %v4747_v29  }
 0x194   :  { %1216 = vst.msk [vmem:[#allocation3 + $0x2c8] sm:$0xff] %vm1200_vm1, %v1214_v0  ;;  %v4821_v0 = vadd.f32 %v4629_v62, %v4624_v59 }
 0x196   :  { %v4805_v3 = vpop.permute.xlu1 %1246  ;;  %v4807_v37 = vpop.permute.xlu0 %1268 }
 0x197   :  { %4044 = vset.pattern.permute.xlu1 %v6013_v7  ;;  %4056 = vset.pattern.permute.xlu0 %v6014_v14  ;;  %v728_v7 = vpop.f32.mrf.mxu0 }
 0x198   :  { %1366 = vperm.xlu1 %4044, %v4747_v29   ;;  %1606 = vperm.xlu0 %4056, %v4747_v29   ;;  %v4833_v59 = vadd.f32 %v728_v7, %v4672_v36 }
 0x19b   :  { %v4813_v57 = vpop.permute.xlu1 %1290  ;;  %v4815_v42 = vpop.permute.xlu0 %1312 }
 0x19c   :  { %4046 = vset.pattern.permute.xlu1 %v6015_v4  ;;  %4058 = vset.pattern.permute.xlu0 %v6016_v32 }
 0x19d   :  { %1402 = vperm.xlu1 %4046, %v4747_v29   ;;  %1650 = vperm.xlu0 %4058, %v4747_v29  }
 0x1a0   :  { %v4825_v14 = vpop.permute.xlu1 %1334  ;;  %v1357_v20 = vpop.permute.xlu0 %1356 }
 0x1a1   :  { %v1360_v41 = vmul.f32 %v1357_v20, %v4821_v0  ;;  %4048 = vset.pattern.permute.xlu1 %v6017_v44  ;;  %4061 = vset.pattern.permute.xlu0 %v6018_v30  ;;  %v6020_v20 = vmov 46   ;;  %v6022_v30 = vmov 47  }
 0x1a2   :  { %1446 = vperm.xlu1 %4048, %v4747_v29   ;;  %1700 = vperm.xlu0 %4061, %v4747_v29  }
 0x1a3   :  { %1362 = vst.msk [vmem:[#allocation3 + $0x48] sm:$0xff] %vm1200_vm1, %v1360_v41  ;;  %v6021_v41 = vmov 84  }
 0x1a5   :  { %v1371_v62 = vpop.permute.xlu1 %1370  ;;  %v4836_v32 = vpop.permute.xlu0 %1406 }
 0x1a6   :  { %v1374_v4 = vmul.f32 %v1371_v62, %v4833_v59  ;;  %4050 = vset.pattern.permute.xlu1 %v6019_v33  ;;  %4063 = vset.pattern.permute.xlu0 %v6020_v20  ;;  %v730_v33 = vpop.f32.mrf.mxu0  ;;  %v6023_v20 = vmov 41  }
 0x1a7   :  { %1490 = vperm.xlu1 %4050, %v4747_v29   ;;  %1744 = vperm.xlu0 %4063, %v4747_v29  }
 0x1a8   :  { %1376 = vst.msk [vmem:[#allocation3 + $0x308] sm:$0xff] %vm1200_vm1, %v1374_v4  ;;  %v6024_v4 = vmov 48  }
 0x1aa   :  { %v4844_v44 = vpop.permute.xlu1 %1384  ;;  %v4846_v36 = vpop.permute.xlu0 %1450 }
 0x1ab   :  { %4052 = vset.pattern.permute.xlu1 %v6021_v41  ;;  %4065 = vset.pattern.permute.xlu0 %v6022_v30  ;;  %v4861_v41 = vadd.f32 %v730_v33, %v4686_v53 }
 0x1ac   :  { %1526 = vperm.xlu1 %4052, %v4747_v29   ;;  %1788 = vperm.xlu0 %4065, %v4747_v29  }
 0x1af   :  { %v4852_v7 = vpop.permute.xlu1 %1428  ;;  %v4854_v62 = vpop.permute.xlu0 %1494 }
 0x1b0   :  { %4053 = vset.pattern.permute.xlu1 %v6023_v20  ;;  %4067 = vset.pattern.permute.xlu0 %v6024_v4  ;;  %v4873_v20 = vadd.f32 %v4527_v56, %v4514_v48  ;;  %v6029_v48 = vmov 44   ;;  %v5978_v56 = vmov 51  }
 0x1b1   :  { %1540 = vperm.xlu1 %4053, %v4747_v29   ;;  %1832 = vperm.xlu0 %4067, %v4747_v29  }
 0x1b4   :  { %v4863_v30 = vpop.permute.xlu1 %1472  ;;  %v1531_v5 = vpop.permute.xlu0 %1530 }
 0x1b5   :  { %v1534_v25 = vmul.f32 %v1531_v5, %v4861_v41  ;;  %4055 = vset.pattern.permute.xlu1 %v6025_v28  ;;  %4070 = vset.pattern.permute.xlu0 %v6026_v34  ;;  %v6027_v5 = vmov 43   ;;  %v6028_v28 = vmov 94  }
 0x1b6   :  { %1584 = vperm.xlu1 %4055, %v4747_v29   ;;  %1882 = vperm.xlu0 %4070, %v4747_v29  }
 0x1b7   :  { %1536 = vst.msk [vmem:[#allocation3 + $0x348] sm:$0xff] %vm1200_vm1, %v1534_v25 }
 0x1b9   :  { %v1517_v53 = vpop.permute.xlu1 %1516  ;;  %v4875_v33 = vpop.permute.xlu0 %1588 }
 0x1ba   :  { %v1520_v4 = vmul.f32 %v1517_v53, %v4873_v20  ;;  %4057 = vset.pattern.permute.xlu1 %v6027_v5  ;;  %4072 = vset.pattern.permute.xlu0 %v6028_v28  ;;  %v4893_v53 = vadd.f32 %v4530_v58, %v4517_v49  ;;  %v6031_v58 = vmov 89  }
 0x1bb   :  { %1628 = vperm.xlu1 %4057, %v4747_v29   ;;  %1926 = vperm.xlu0 %4072, %v4747_v29  }
 0x1bc   :  { %1522 = vst.msk [vmem:[#allocation3 + $0x88] sm:$0xff] %vm1200_vm1, %v1520_v4 }
 0x1be   :  { %v4883_v25 = vpop.permute.xlu1 %1544  ;;  %v4885_v34 = vpop.permute.xlu0 %1632 }
 0x1bf   :  { %4059 = vset.pattern.permute.xlu1 %v6029_v48  ;;  %4073 = vset.pattern.permute.xlu0 %v5978_v56  ;;  %v5980_v56 = vmov 52  }
 0x1c0   :  { %1672 = vperm.xlu1 %4059, %v4747_v29   ;;  %1952 = vperm.xlu0 %4073, %v4637_v2  }
 0x1c3   :  { %v4895_v5 = vpop.permute.xlu1 %1566  ;;  %v1677_v4 = vpop.permute.xlu0 %1676 }
 0x1c4   :  { %v1680_v28 = vmul.f32 %v1677_v4, %v4893_v53  ;;  %4060 = vset.pattern.permute.xlu1 %v6030_v27  ;;  %4075 = vset.pattern.permute.xlu0 %v5979_v31  ;;  %v6032_v31 = vmov 90  }
 0x1c5   :  { %1686 = vperm.xlu1 %4060, %v4747_v29   ;;  %1970 = vperm.xlu0 %4075, %v4747_v29  }
 0x1c6   :  { %1682 = vst.msk [vmem:[#allocation3 + $0xc8] sm:$0xff] %vm1200_vm1, %v1680_v28  ;;  %v5981_v28 = vmov 53  }
 0x1c8   :  { %v4903_v48 = vpop.permute.xlu1 %1610  ;;  %v4905_v49 = vpop.permute.xlu0 %1726 }
 0x1c9   :  { %4062 = vset.pattern.permute.xlu1 %v6031_v58  ;;  %4077 = vset.pattern.permute.xlu0 %v5980_v56 }
 0x1ca   :  { %1722 = vperm.xlu1 %4062, %v4747_v29   ;;  %1996 = vperm.xlu0 %4077, %v4637_v2  }
 0x1cd   :  { %v4911_v27 = vpop.permute.xlu1 %1654  ;;  %v4913_v4 = vpop.permute.xlu0 %1770 }
 0x1ce   :  { %4064 = vset.pattern.permute.xlu1 %v6032_v31  ;;  %4081 = vset.pattern.permute.xlu0 %v5981_v28  ;;  %v4929_v31 = vadd.f32 %v4569_v22, %v4560_v15  ;;  %v6035_v22 = vmov 49  }
 0x1cf   :  { %1766 = vperm.xlu1 %4064, %v4747_v29   ;;  %2020 = vperm.xlu0 %4081, %v4747_v29  }
 0x1d2   :  { %v1691_v58 = vpop.permute.xlu1 %1690  ;;  %v4919_v46 = vpop.permute.xlu0 %1814 }
 0x1d3   :  { %v1694_v56 = vmul.f32 %v1691_v58, %v4567_v21  ;;  %4066 = vset.pattern.permute.xlu1 %v6033_v8  ;;  %4083 = vset.pattern.permute.xlu0 %v5984_v12  ;;  %v5985_v8 = vmov 54   ;;  %v5986_v12 = vmov 98  }
 0x1d4   :  { %1810 = vperm.xlu1 %4066, %v4747_v29   ;;  %2046 = vperm.xlu0 %4083, %v4637_v2  }
 0x1d5   :  { %1696 = vst.msk [vmem:[#allocation3 + $0x388] sm:$0xff] %vm1200_vm1, %v1694_v56 }
 0x1d7   :  { %v4931_v28 = vpop.permute.xlu1 %1704  ;;  %v1851_v45 = vpop.permute.xlu0 %1850 }
 0x1d8   :  { %v1854_v58 = vmul.f32 %v1851_v45, %v4929_v31  ;;  %4068 = vset.pattern.permute.xlu1 %v6034_v26  ;;  %4085 = vset.pattern.permute.xlu0 %v5985_v8  ;;  %v1250_v45 = vmul.f32 %v4805_v3, %v4795_v47 }
 0x1d9   :  { %1846 = vperm.xlu1 %4068, %v4747_v29   ;;  %2064 = vperm.xlu0 %4085, %v4747_v29  }
 0x1da   :  { %1856 = vst.msk [vmem:[#allocation3 + $0x3c8] sm:$0xff] %vm1200_vm1, %v1854_v58  ;;  %v6037_v58 = vmov 50  }
 0x1dc   :  { %v4939_v56 = vpop.permute.xlu1 %1748  ;;  %v4941_v15 = vpop.permute.xlu0 %1908 }
 0x1dd   :  { %4069 = vset.pattern.permute.xlu1 %v6035_v22  ;;  %4087 = vset.pattern.permute.xlu0 %v5986_v12  ;;  %v1294_v22 = vmul.f32 %v4813_v57, %v4795_v47  ;;  %v4960_v12 = vadd.f32 %v4650_v16, %v4643_v9 }
 0x1de   :  { %1860 = vperm.xlu1 %4069, %v4747_v29   ;;  %2090 = vperm.xlu0 %4087, %v4637_v2  }
 0x1e1   :  { %v4949_v26 = vpop.permute.xlu1 %1792  ;;  %v4951_v8 = vpop.permute.xlu0 %1178 }
 0x1e2   :  { %6036 = vst [vmem:[#allocation23_spill] sm:$0xff] %v4951_v8  ;;  %4071 = vset.pattern.permute.xlu1 %v6037_v58  ;;  %1255 = vrot.lane.b32.xlu0 %v1250_v45, %s4242_s5  ;;  %v1338_v45 = vmul.f32 %v4825_v14, %v4795_v47  ;;  %v1432_v47 = vmul.f32 %v4852_v7, %v4821_v0 }
 0x1e3   :  { %1904 = vperm.xlu1 %4071, %v4747_v29   ;;  %v1570_v7 = vmul.f32 %v4895_v5, %v4861_v41 }
 0x1e6   :  { %v1837_v35 = vpop.permute.xlu1 %1836  ;;  %v1207_v3 = vpop.permute.xlu0 %1206  ;;  %1299 = vrot.lane.b32.xlu0 %v1294_v22, %s4243_s6 }
 0x1e7   :  { %v1840_v8 = vmul.f32 %v1837_v35, %v4960_v12  ;;  %v1213_v58 = vmul.f32 %v1207_v3, %v4552_v11  ;;  %4074 = vset.pattern.permute.xlu1 %v6038_v6  ;;  %v1388_v35 = vmul.f32 %v4844_v44, %v4821_v0  ;;  %v6039_v6 = vmov 95  }
 0x1e8   :  { %1948 = vperm.xlu1 %4074, %v4747_v29   ;;  %v1476_v44 = vmul.f32 %v4863_v30, %v4821_v0  ;;  %v1614_v0 = vmul.f32 %v4903_v48, %v4861_v41  ;;  %v1708_v48 = vmul.f32 %v4931_v28, %v4893_v53  ;;  %v1796_v28 = vmul.f32 %v4949_v26, %v4893_v53 }
 0x1e9   :  { %1842 = vst.msk [vmem:[#allocation3 + $0x108] sm:$0xff] %vm1200_vm1, %v1840_v8  ;;  %1215 = vst.msk [vmem:[#allocation3 + $0x2c0] sm:$0xff] %vm1200_vm1, %v1213_v58  ;;  %v4245_v8 = vmov 96   ;;  %v6040_v58 = vmov 52  }
 0x1ea   :  { %1343 = vrot.lane.b32.xlu0 %v1338_v45, %s4244_s7 }
 0x1eb   :  { %v4972_v9 = vpop.permute.xlu1 %1864  ;;  %v4974_v16 = vpop.permute.xlu0 %1242 }
 0x1ec   :  { %4076 = vset.pattern.permute.xlu1 %v6039_v6 }
 0x1ed   :  { %1974 = vperm.xlu1 %4076, %v4637_v2  }
 0x1ee   :  { %1393 = vrot.lane.b32.xlu0 %v1388_v35, %s4242_s5 }
 0x1f0   :  { %v1887_v57 = vpop.permute.xlu1 %1886  ;;  %v4983_v14 = vpop.permute.xlu0 %1286 }
 0x1f1   :  { %4078 = vset.pattern.permute.xlu1 %v4245_v8  ;;  %v1890_v26 = vmul.f32 %v1887_v57, %v4929_v31 }
 0x1f2   :  { %2010 = vperm.xlu1 %4078, %v4637_v2   ;;  %1437 = vrot.lane.b32.xlu0 %v1432_v47, %s4243_s6  ;;  %v1658_v47 = vmul.f32 %v4911_v27, %v4861_v41  ;;  %v1752_v41 = vmul.f32 %v4939_v56, %v4893_v53  ;;  %v64_v56 = vld [vmem:[%s5935_s1 + $0x160] sm:$0xff]  ;;  %v41_v53 = vld [vmem:[%s5935_s1 + $0xa8] sm:$0xff] }
 0x1f3   :  { %992 = vmatprep.subr.mxu0 %v64_v56  ;;  %v6045_v56 = vmov 0.0  }
 0x1f5   :  { %v1931_v22 = vpop.permute.xlu1 %1930  ;;  %v4989_v3 = vpop.permute.xlu0 %1330 }
 0x1f6   :  { %4079 = vset.pattern.permute.xlu1 %v6040_v58  ;;  %1481 = vrot.lane.b32.xlu0 %v1476_v44, %s4244_s7  ;;  %v6041_v44 = vmov 53  }
 0x1f7   :  { %1992 = vperm.xlu1 %4079, %v4747_v29  }
 0x1fa   :  { %v1192_v45 = vpop.permute.xlu1 %1191  ;;  %v4996_v35 = vpop.permute.xlu0 %1380  ;;  %1575 = vrot.lane.b32.xlu0 %v1570_v7, %s4242_s5  ;;  %v6042_v7 = vmov 97  }
 0x1fb   :  { %v1198_v6 = vmul.f32 %v1192_v45, %v4612_v52  ;;  %4080 = vset.pattern.permute.xlu1 %v4245_v8 }
 0x1fc   :  { %2006 = vperm.xlu1 %4080, %v4747_v29  }
 0x1fd   :  { %1201 = vst.msk [vmem:[#allocation3] sm:$0xff] %vm1200_vm1, %v1198_v6 }
 0x1fe   :  { %1619 = vrot.lane.b32.xlu0 %v1614_v0, %s4243_s6  ;;  %v6043_v0 = vmov 54  }
 0x1ff   :  { %v5005_v30 = vpop.permute.xlu1 %1220  ;;  %v5007_v5 = vpop.permute.xlu0 %1424 }
 0x200   :  { %4082 = vset.pattern.permute.xlu1 %v6041_v44 }
 0x201   :  { %2024 = vperm.xlu1 %4082, %v4637_v2  }
 0x202   :  { %1663 = vrot.lane.b32.xlu0 %v1658_v47, %s4244_s7 }
 0x204   :  { %v5016_v8 = vpop.permute.xlu1 %1264  ;;  %v5018_v58 = vpop.permute.xlu0 %1468 }
 0x205   :  { %4084 = vset.pattern.permute.xlu1 %v6042_v7 }
 0x206   :  { %2042 = vperm.xlu1 %4084, %v4747_v29   ;;  %1713 = vrot.lane.b32.xlu0 %v1708_v48, %s4242_s5  ;;  %v63_v48 = vld [vmem:[%s5935_s1 + $0x158] sm:$0xff] }
 0x207   :  { %993 = vmatpush1.msra.mxu0 %v63_v48 }
 0x208   :  { %994 = vmatprep.subr.mxu0 %v41_v53 }
 0x209   :  { %v5025_v27 = vpop.permute.xlu1 %1308  ;;  %v1513_v45 = vpop.permute.xlu0 %1512 }
 0x20a   :  { %v1519_v6 = vmul.f32 %v1513_v45, %v4520_v51  ;;  %4086 = vset.pattern.permute.xlu1 %v6043_v0  ;;  %1757 = vrot.lane.b32.xlu0 %v1752_v41, %s4243_s6  ;;  %v6044_v41 = vmov 98   ;;  %v40_v45 = vld [vmem:[%s5935_s1 + $0xa0] sm:$0xff] }
 0x20b   :  { %2068 = vperm.xlu1 %4086, %v4637_v2   ;;  %995 = vmatpush1.msra.mxu0 %v40_v45  ;;  %v4168_v0 = vld [vmem:[%s5934_s0] sm:$0xff] }
 0x20c   :  { %1521 = vst.msk [vmem:[#allocation3 + $0x80] sm:$0xff] %vm1200_vm1, %v1519_v6  ;;  %v1228_v6 = vmul.f32 %v4797_v18, %v4783_v43  ;;  %3639 = vmatmul.mubr.msk.f32.vlgmr.msra.gmra.mxu0 %vm187_vm0, %v4168_v0  ;;  %v4246_v18 = vmov 55   ;;  %v1454_v0 = vmul.f32 %v4846_v36, %v4833_v59 }
 0x20d   :  { %1034 = vmatprep.mubr.f32.mxu0 %v6045_v56  ;;  %4089 = vset.pattern.permute.xlu0 %v4246_v18 }
 0x20e   :  { %v1353_v47 = vpop.permute.xlu1 %1352  ;;  %v5037_v44 = vpop.permute.xlu0 %1562  ;;  %1801 = vrot.lane.b32.xlu0 %v1796_v28, %s4244_s7 }
 0x20f   :  { %v1359_v7 = vmul.f32 %v1353_v47, %v4627_v60  ;;  %4088 = vset.pattern.permute.xlu1 %v6044_v41  ;;  %v1934_v47 = vmul.f32 %v1931_v22, %v4929_v31  ;;  %v4169_v41 = vld [vmem:[%s5934_s0 + $0x8] sm:$0xff] }
 0x210   :  { %2086 = vperm.xlu1 %4088, %v4747_v29   ;;  %3640 = vmatmul.mubr.msk.f32.gmra.mxu0 %vm187_vm0, %v4169_v41 }
 0x211   :  { %1361 = vst.msk [vmem:[#allocation3 + $0x40] sm:$0xff] %vm1200_vm1, %v1359_v7  ;;  %v1272_v7 = vmul.f32 %v4807_v37, %v4783_v43 }
 0x212   :  { %1895 = vrot.lane.b32.xlu0 %v1890_v26, %s4242_s5  ;;  %v1316_v26 = vmul.f32 %v4815_v42, %v4783_v43  ;;  %v1498_v43 = vmul.f32 %v4854_v62, %v4833_v59 }
 0x213   :  { %v1367_v57 = vpop.permute.xlu1 %1366  ;;  %v5061_v28 = vpop.permute.xlu0 %1606 }
 0x214   :  { %v1373_v48 = vmul.f32 %v1367_v57, %v4682_v50  ;;  %1233 = vrot.lane.b32.xlu1 %v1228_v6, %s4242_s5  ;;  %v1410_v6 = vmul.f32 %v4836_v32, %v4833_v59  ;;  %v1548_v32 = vmul.f32 %v4883_v25, %v4873_v20  ;;  %v1592_v59 = vmul.f32 %v4875_v33, %v4873_v20 }
 0x215   :  { %4090 = vset.pattern.permute.xlu1 %v4246_v18  ;;  %v1636_v25 = vmul.f32 %v4885_v34, %v4873_v20  ;;  %v1774_v33 = vmul.f32 %v4913_v4, %v4567_v21  ;;  %v1818_v20 = vmul.f32 %v4919_v46, %v4567_v21  ;;  %v5135_v34 = vpop.f32.mrf.mxu0 }
 0x216   :  { %1375 = vst.msk [vmem:[#allocation3 + $0x300] sm:$0xff] %vm1200_vm1, %v1373_v48  ;;  %1939 = vrot.lane.b32.xlu0 %v1934_v47, %s4243_s6 }
 0x218   :  { %v5075_v22 = vpop.permute.xlu1 %1402  ;;  %v5077_v53 = vpop.permute.xlu0 %1650  ;;  %1277 = vrot.lane.b32.xlu1 %v1272_v7, %s4243_s6 }
 0x21c   :  { %1321 = vrot.lane.b32.xlu1 %v1316_v26, %s4244_s7  ;;  %v1730_v26 = vmul.f32 %v4905_v49, %v4567_v21  ;;  %v1868_v21 = vmul.f32 %v4972_v9, %v4960_v12 }
 0x21d   :  { %v5083_v37 = vpop.permute.xlu1 %1446  ;;  %v5085_v45 = vpop.permute.xlu0 %1700 }
 0x220   :  { %1415 = vrot.lane.b32.xlu1 %v1410_v6, %s4242_s5 }
 0x222   :  { %v5092_v57 = vpop.permute.xlu1 %1490  ;;  %v5094_v56 = vpop.permute.xlu0 %1744 }
 0x224   :  { %1459 = vrot.lane.b32.xlu1 %v1454_v0, %s4243_s6 }
 0x227   :  { %v1527_v42 = vpop.permute.xlu1 %1526  ;;  %v5099_v47 = vpop.permute.xlu0 %1788 }
 0x228   :  { %v1533_v48 = vmul.f32 %v1527_v42, %v4693_v38  ;;  %1503 = vrot.lane.b32.xlu1 %v1498_v43, %s4244_s7 }
 0x22a   :  { %1535 = vst.msk [vmem:[#allocation3 + $0x340] sm:$0xff] %vm1200_vm1, %v1533_v48 }
 0x22c   :  { %v5106_v36 = vpop.permute.xlu1 %1540  ;;  %v1833_v18 = vpop.permute.xlu0 %1832  ;;  %1553 = vrot.lane.b32.xlu1 %v1548_v32, %s4242_s5 }
 0x22d   :  { %v1839_v7 = vmul.f32 %v1833_v18, %v4648_v10  ;;  %v4170_v18 = vld [vmem:[%s5936_s2] sm:$0xff] }
 0x22f   :  { %1841 = vst.msk [vmem:[#allocation3 + $0x100] sm:$0xff] %vm1200_vm1, %v1839_v7  ;;  %v95_v7 = vrot.slane %v4170_v18, %v4677_v40 }
 0x230   :  { %1597 = vrot.lane.b32.xlu1 %v1592_v59, %s4243_s6  ;;  %v5152_v59 = vpop.f32.mrf.mxu0 }
 0x231   :  { %v5114_v62 = vpop.permute.xlu1 %1584  ;;  %v5116_v41 = vpop.permute.xlu0 %1882  ;;  %v5149_v46 = vadd.f32 %v4654_v24, %v95_v7  ;;  %v139_v24 = vrot.slane %v4574_v23, %v4599_v39 }
 0x232   :  { %v882_v9 = vpop.f32.mrf.mxu0 }
 0x234   :  { %1641 = vrot.lane.b32.xlu1 %v1636_v25, %s4244_s7 }
 0x236   :  { %v5123_v6 = vpop.permute.xlu1 %1628  ;;  %v5125_v0 = vpop.permute.xlu0 %1926 }
 0x238   :  { %1735 = vrot.lane.b32.xlu1 %v1730_v26, %s4242_s5 }
 0x23b   :  { %v1673_v43 = vpop.permute.xlu1 %1672  ;;  %v1953_v42 = vpop.permute.xlu0 %1952 }
 0x23c   :  { %v1679_v48 = vmul.f32 %v1673_v43, %v4524_v54  ;;  %1779 = vrot.lane.b32.xlu1 %v1774_v33, %s4243_s6  ;;  %v1912_v33 = vmul.f32 %v4941_v15, %v4960_v12 }
 0x23e   :  { %1681 = vst.msk [vmem:[#allocation3 + $0xc0] sm:$0xff] %vm1200_vm1, %v1679_v48  ;;  %v1956_v48 = vmul.f32 %v1953_v42, %v4960_v12 }
 0x240   :  { %v1687_v49 = vpop.permute.xlu1 %1686  ;;  %v5137_v32 = vpop.permute.xlu0 %1970  ;;  %1823 = vrot.lane.b32.xlu1 %v1818_v20, %s4244_s7 }
 0x241   :  { %v1693_v4 = vmul.f32 %v1687_v49, %v4562_v17 }
 0x243   :  { %1695 = vst.msk [vmem:[#allocation3 + $0x380] sm:$0xff] %vm1200_vm1, %v1693_v4  ;;  %v5169_v4 = vadd.f32 %v882_v9, %v139_v24 }
 0x244   :  { %1873 = vrot.lane.b32.xlu1 %v1868_v21, %s4242_s5 }
 0x245   :  { %v5154_v25 = vpop.permute.xlu1 %1722  ;;  %v1997_v26 = vpop.permute.xlu0 %1996 }
 0x246   :  { %v2000_v43 = vmul.f32 %v1997_v26, %v5149_v46 }
 0x248   :  { %2002 = vst.msk [vmem:[#allocation3 + $0x148] sm:$0xff] %vm1200_vm1, %v2000_v43  ;;  %1917 = vrot.lane.b32.xlu1 %v1912_v33, %s4243_s6 }
 0x24a   :  { %v5164_v20 = vpop.permute.xlu1 %1766  ;;  %v5166_v49 = vpop.permute.xlu0 %2020 }
 0x24c   :  { %1961 = vrot.lane.b32.xlu1 %v1956_v48, %s4244_s7  ;;  %v1227_v48 = vmul.f32 %v5005_v30, %v4612_v52  ;;  %v1271_v30 = vmul.f32 %v5016_v8, %v4612_v52  ;;  %v1315_v8 = vmul.f32 %v5025_v27, %v4612_v52 }
 0x24f   :  { %v5171_v15 = vpop.permute.xlu1 %1810  ;;  %v2047_v18 = vpop.permute.xlu0 %2046 }
 0x250   :  { %v2050_v21 = vmul.f32 %v2047_v18, %v5169_v4 }
 0x252   :  { %2055 = vrot.lane.b32.xlu1 %v2050_v21, %s4242_s5 }
 0x254   :  { %v1847_v26 = vpop.permute.xlu1 %1846  ;;  %v5175_v23 = vpop.permute.xlu0 %2064 }
 0x255   :  { %v1853_v12 = vmul.f32 %v1847_v26, %v4565_v19  ;;  %v1249_v26 = vmul.f32 %v4974_v16, %v4552_v11  ;;  %v1293_v16 = vmul.f32 %v4983_v14, %v4552_v11 }
 0x257   :  { %1855 = vst.msk [vmem:[#allocation3 + $0x3c0] sm:$0xff] %vm1200_vm1, %v1853_v12 }
 0x259   :  { %v5179_v42 = vpop.permute.xlu1 %1860  ;;  %v2091_v33 = vpop.permute.xlu0 %2090 }
 0x25a   :  { %v2094_v43 = vmul.f32 %v2091_v33, %v5169_v4 }
 0x25c   :  { %2099 = vrot.lane.b32.xlu1 %v2094_v43, %s4243_s6 }
 0x25d   :  { %v1256_v9 = vpop.permute.xlu0 %1255 }
 0x25e   :  { %1260 = vst.msk [vmem:[#allocation3 + $0x2d8] sm:$0xff] %vm1200_vm1, %v1256_v9  ;;  %v5186_v18 = vpop.permute.xlu1 %1904 }
 0x260   :  { %1231 = vrot.lane.b32.xlu1 %v1227_v48, %s4242_s5 }
 0x261   :  { %v1300_v21 = vpop.permute.xlu0 %1299 }
 0x262   :  { %1304 = vst.msk [vmem:[#allocation3 + $0x2e8] sm:$0xff] %vm1200_vm1, %v1300_v21 }
 0x263   :  { %v5192_v12 = vpop.permute.xlu1 %1948 }
 0x264   :  { %1253 = vrot.lane.b32.xlu1 %v1249_v26, %s4242_s5 }
 0x265   :  { %v1344_v33 = vpop.permute.xlu0 %1343 }
 0x266   :  { %1348 = vst.msk [vmem:[#allocation3 + $0x2f8] sm:$0xff] %vm1200_vm1, %v1344_v33 }
 0x268   :  { %v1975_v43 = vpop.permute.xlu1 %1974  ;;  %1275 = vrot.lane.b32.xlu1 %v1271_v30, %s4243_s6  ;;  %v1337_v30 = vmul.f32 %v4989_v3, %v4552_v11 }
 0x269   :  { %v1978_v9 = vmul.f32 %v1975_v43, %v4929_v31  ;;  %v1394_v48 = vpop.permute.xlu0 %1393  ;;  %v5212_v31 = vadd.f32 %v4645_v13, %v95_v7  ;;  %v5223_v13 = vadd.f32 %v5135_v34, %v139_v24  ;;  %v1431_v24 = vmul.f32 %v5007_v5, %v4627_v60 }
 0x26a   :  { %1398 = vst.msk [vmem:[#allocation3 + $0x58] sm:$0xff] %vm1200_vm1, %v1394_v48  ;;  %v1409_v48 = vmul.f32 %v5075_v22, %v4682_v50  ;;  %v1475_v5 = vmul.f32 %v5018_v58, %v4627_v60  ;;  %v1569_v58 = vmul.f32 %v5037_v44, %v4693_v38 }
 0x26b   :  { %1983 = vrot.lane.b32.xlu0 %v1978_v9, %s4244_s7  ;;  %v1387_v9 = vmul.f32 %v4996_v35, %v4627_v60 }
 0x26c   :  { %1297 = vrot.lane.b32.xlu1 %v1293_v16, %s4243_s6 }
 0x26d   :  { %v2011_v21 = vpop.permute.xlu1 %2010  ;;  %v1438_v26 = vpop.permute.xlu0 %1437 }
 0x26e   :  { %v2014_v33 = vmul.f32 %v2011_v21, %v5169_v4  ;;  %1442 = vst.msk [vmem:[#allocation3 + $0x68] sm:$0xff] %vm1200_vm1, %v1438_v26  ;;  %v1453_v26 = vmul.f32 %v5083_v37, %v4682_v50  ;;  %v1497_v37 = vmul.f32 %v5092_v57, %v4682_v50  ;;  %v1867_v50 = vmul.f32 %v5179_v42, %v4648_v10 }
 0x26f   :  { %v1613_v42 = vmul.f32 %v5061_v28, %v4693_v38 }
 0x270   :  { %2016 = vst.msk [vmem:[#allocation3 + $0x408] sm:$0xff] %vm1200_vm1, %v2014_v33  ;;  %1319 = vrot.lane.b32.xlu1 %v1315_v8, %s4244_s7 }
 0x271   :  { %v1482_v14 = vpop.permute.xlu0 %1481 }
 0x272   :  { %1486 = vst.msk [vmem:[#allocation3 + $0x78] sm:$0xff] %vm1200_vm1, %v1482_v14  ;;  %v1993_v43 = vpop.permute.xlu1 %1992 }
 0x273   :  { %v1999_v52 = vmul.f32 %v1993_v43, %v5212_v31  ;;  %v1547_v43 = vmul.f32 %v5106_v36, %v4520_v51 }
 0x274   :  { %1341 = vrot.lane.b32.xlu1 %v1337_v30, %s4244_s7 }
 0x275   :  { %2001 = vst.msk [vmem:[#allocation3 + $0x140] sm:$0xff] %vm1200_vm1, %v1999_v52  ;;  %v1576_v27 = vpop.permute.xlu0 %1575 }
 0x276   :  { %1580 = vst.msk [vmem:[#allocation3 + $0x358] sm:$0xff] %vm1200_vm1, %v1576_v27 }
 0x277   :  { %v2007_v7 = vpop.permute.xlu1 %2006 }
 0x278   :  { %v2013_v11 = vmul.f32 %v2007_v7, %v5223_v13  ;;  %1391 = vrot.lane.b32.xlu1 %v1387_v9, %s4242_s5  ;;  %v1591_v9 = vmul.f32 %v5114_v62, %v4520_v51  ;;  %v4247_v62 = vmov 99  }
 0x279   :  { %v1620_v3 = vpop.permute.xlu0 %1619  ;;  %v2986_v44 = vld [vmem:[#allocation3 + $0x78] sm:$0xff] }
 0x27a   :  { %2015 = vst.msk [vmem:[#allocation3 + $0x400] sm:$0xff] %vm1200_vm1, %v2013_v11  ;;  %1624 = vst.msk [vmem:[#allocation3 + $0x368] sm:$0xff] %vm1200_vm1, %v1620_v3  ;;  %v1635_v3 = vmul.f32 %v5123_v6, %v4520_v51  ;;  %v1729_v51 = vmul.f32 %v5154_v25, %v4562_v17  ;;  %v1795_v25 = vmul.f32 %v5099_v47, %v4524_v54 }
 0x27c   :  { %v2025_v16 = vpop.permute.xlu1 %2024  ;;  %1413 = vrot.lane.b32.xlu1 %v1409_v48, %s4242_s5 }
 0x27d   :  { %v2028_v35 = vmul.f32 %v2025_v16, %v5149_v46  ;;  %v1664_v34 = vpop.permute.xlu0 %1663  ;;  %v1657_v16 = vmul.f32 %v5077_v53, %v4693_v38  ;;  %v1751_v38 = vmul.f32 %v5094_v56, %v4524_v54  ;;  %v1817_v56 = vmul.f32 %v5171_v15, %v4562_v17 }
 0x27e   :  { %1668 = vst.msk [vmem:[#allocation3 + $0x378] sm:$0xff] %vm1200_vm1, %v1664_v34 }
 0x27f   :  { %2033 = vrot.lane.b32.xlu0 %v2028_v35, %s4242_s5  ;;  %v1707_v35 = vmul.f32 %v5085_v45, %v4524_v54  ;;  %v1773_v45 = vmul.f32 %v5164_v20, %v4562_v17  ;;  %v1889_v20 = vmul.f32 %v5116_v41, %v4565_v19  ;;  %v1911_v54 = vmul.f32 %v5186_v18, %v4648_v10 }
 0x280   :  { %1435 = vrot.lane.b32.xlu1 %v1431_v24, %s4243_s6  ;;  %v1933_v17 = vmul.f32 %v5125_v0, %v4565_v19  ;;  %v1955_v41 = vmul.f32 %v5192_v12, %v4648_v10  ;;  %v1977_v18 = vmul.f32 %v5137_v32, %v4565_v19  ;;  %v2027_v0 = vmul.f32 %v5166_v49, %v5212_v31 }
 0x281   :  { %v5239_v22 = vpop.permute.xlu1 %2042  ;;  %v1714_v21 = vpop.permute.xlu0 %1713  ;;  %v2071_v19 = vmul.f32 %v5175_v23, %v5212_v31 }
 0x282   :  { %1718 = vst.msk [vmem:[#allocation3 + $0xd8] sm:$0xff] %vm1200_vm1, %v1714_v21  ;;  %v2049_v10 = vmul.f32 %v5239_v22, %v5223_v13 }
 0x284   :  { %1457 = vrot.lane.b32.xlu1 %v1453_v26, %s4243_s6 }
 0x285   :  { %v1758_v8 = vpop.permute.xlu0 %1757 }
 0x286   :  { %1762 = vst.msk [vmem:[#allocation3 + $0xe8] sm:$0xff] %vm1200_vm1, %v1758_v8  ;;  %v2069_v33 = vpop.permute.xlu1 %2068 }
 0x287   :  { %v2072_v14 = vmul.f32 %v2069_v33, %v5149_v46 }
 0x288   :  { %1479 = vrot.lane.b32.xlu1 %v1475_v5, %s4244_s7 }
 0x289   :  { %2077 = vrot.lane.b32.xlu0 %v2072_v14, %s4243_s6  ;;  %v1802_v30 = vpop.permute.xlu0 %1801 }
 0x28a   :  { %1806 = vst.msk [vmem:[#allocation3 + $0xf8] sm:$0xff] %vm1200_vm1, %v1802_v30 }
 0x28b   :  { %v5256_v52 = vpop.permute.xlu1 %2086 }
 0x28c   :  { %1501 = vrot.lane.b32.xlu1 %v1497_v37, %s4244_s7  ;;  %v2093_v49 = vmul.f32 %v5256_v52, %v5223_v13 }
 0x28d   :  { %1551 = vrot.lane.b32.xlu0 %v1547_v43, %s4242_s5  ;;  %v1896_v60 = vpop.permute.xlu0 %1895 }
 0x28e   :  { %1900 = vst.msk [vmem:[#allocation3 + $0x3d8] sm:$0xff] %vm1200_vm1, %v1896_v60 }
 0x28f   :  { %v1234_v57 = vpop.permute.xlu1 %1233 }
 0x290   :  { %1238 = vst.msk [vmem:[#allocation3 + $0x18] sm:$0xff] %vm1200_vm1, %v1234_v57  ;;  %1573 = vrot.lane.b32.xlu1 %v1569_v58, %s4242_s5 }
 0x291   :  { %1871 = vrot.lane.b32.xlu0 %v1867_v50, %s4242_s5  ;;  %v1940_v36 = vpop.permute.xlu0 %1939  ;;  %v3002_v27 = vld [vmem:[#allocation3 + $0xf8] sm:$0xff] }
 0x292   :  { %1944 = vst.msk [vmem:[#allocation3 + $0x3e8] sm:$0xff] %vm1200_vm1, %v1940_v36  ;;  %3649 = vmatprep.subr.mxu0 %v3002_v27 }
 0x293   :  { %3650 = vmatpush3.msra.mxu0 %v2986_v44  ;;  %v1278_v7 = vpop.permute.xlu1 %1277 }
 0x294   :  { %1282 = vst.msk [vmem:[#allocation3 + $0x28] sm:$0xff] %vm1200_vm1, %v1278_v7  ;;  %1595 = vrot.lane.b32.xlu1 %v1591_v9, %s4243_s6 }
 0x295   :  { %2108 = vperm.xlu0 %4089, %v4747_v29  }
 0x297   :  { %v1322_v11 = vpop.permute.xlu1 %1321 }
 0x298   :  { %1326 = vst.msk [vmem:[#allocation3 + $0x38] sm:$0xff] %vm1200_vm1, %v1322_v11  ;;  %1617 = vrot.lane.b32.xlu1 %v1613_v42, %s4243_s6 }
 0x299   :  { %4092 = vset.pattern.permute.xlu0 %v4247_v62 }
 0x29b   :  { %v1416_v48 = vpop.permute.xlu1 %1415 }
 0x29c   :  { %1420 = vst.msk [vmem:[#allocation3 + $0x318] sm:$0xff] %vm1200_vm1, %v1416_v48  ;;  %1639 = vrot.lane.b32.xlu1 %v1635_v3, %s4244_s7 }
 0x29f   :  { %v1460_v28 = vpop.permute.xlu1 %1459 }
 0x2a0   :  { %1464 = vst.msk [vmem:[#allocation3 + $0x328] sm:$0xff] %vm1200_vm1, %v1460_v28  ;;  %1661 = vrot.lane.b32.xlu1 %v1657_v16, %s4244_s7 }
 0x2a3   :  { %v1504_v34 = vpop.permute.xlu1 %1503 }
 0x2a4   :  { %1508 = vst.msk [vmem:[#allocation3 + $0x338] sm:$0xff] %vm1200_vm1, %v1504_v34  ;;  %1711 = vrot.lane.b32.xlu1 %v1707_v35, %s4242_s5 }
 0x2a7   :  { %v1554_v6 = vpop.permute.xlu1 %1553 }
 0x2a8   :  { %1558 = vst.msk [vmem:[#allocation3 + $0x98] sm:$0xff] %vm1200_vm1, %v1554_v6  ;;  %1733 = vrot.lane.b32.xlu1 %v1729_v51, %s4242_s5  ;;  %v4248_v51 = vmov 56  }
 0x2ab   :  { %v1598_v53 = vpop.permute.xlu1 %1597 }
 0x2ac   :  { %1602 = vst.msk [vmem:[#allocation3 + $0xa8] sm:$0xff] %vm1200_vm1, %v1598_v53  ;;  %1755 = vrot.lane.b32.xlu1 %v1751_v38, %s4243_s6 }
 0x2af   :  { %v1642_v24 = vpop.permute.xlu1 %1641 }
 0x2b0   :  { %1646 = vst.msk [vmem:[#allocation3 + $0xb8] sm:$0xff] %vm1200_vm1, %v1642_v24  ;;  %1777 = vrot.lane.b32.xlu1 %v1773_v45, %s4243_s6 }
 0x2b3   :  { %v1736_v21 = vpop.permute.xlu1 %1735 }
 0x2b4   :  { %1740 = vst.msk [vmem:[#allocation3 + $0x398] sm:$0xff] %vm1200_vm1, %v1736_v21  ;;  %1799 = vrot.lane.b32.xlu1 %v1795_v25, %s4244_s7  ;;  %v3000_v21 = vld [vmem:[#allocation3 + $0xe8] sm:$0xff] }
 0x2b7   :  { %v1780_v26 = vpop.permute.xlu1 %1779 }
 0x2b8   :  { %1784 = vst.msk [vmem:[#allocation3 + $0x3a8] sm:$0xff] %vm1200_vm1, %v1780_v26  ;;  %1821 = vrot.lane.b32.xlu1 %v1817_v56, %s4244_s7  ;;  %v2984_v56 = vld [vmem:[#allocation3 + $0x68] sm:$0xff] }
 0x2bb   :  { %v1824_v8 = vpop.permute.xlu1 %1823 }
 0x2bc   :  { %1828 = vst.msk [vmem:[#allocation3 + $0x3b8] sm:$0xff] %vm1200_vm1, %v1824_v8  ;;  %1893 = vrot.lane.b32.xlu1 %v1889_v20, %s4242_s5 }
 0x2bf   :  { %v1874_v47 = vpop.permute.xlu1 %1873 }
 0x2c0   :  { %1878 = vst.msk [vmem:[#allocation3 + $0x118] sm:$0xff] %vm1200_vm1, %v1874_v47  ;;  %1915 = vrot.lane.b32.xlu1 %v1911_v54, %s4243_s6  ;;  %v2998_v54 = vld [vmem:[#allocation3 + $0xd8] sm:$0xff] }
 0x2c1   :  { %v2982_v47 = vld [vmem:[#allocation3 + $0x58] sm:$0xff] }
 0x2c3   :  { %v1918_v15 = vpop.permute.xlu1 %1917 }
 0x2c4   :  { %1922 = vst.msk [vmem:[#allocation3 + $0x128] sm:$0xff] %vm1200_vm1, %v1918_v15  ;;  %1937 = vrot.lane.b32.xlu1 %v1933_v17, %s4243_s6 }
 0x2c7   :  { %v1962_v5 = vpop.permute.xlu1 %1961 }
 0x2c8   :  { %1966 = vst.msk [vmem:[#allocation3 + $0x138] sm:$0xff] %vm1200_vm1, %v1962_v5  ;;  %1959 = vrot.lane.b32.xlu1 %v1955_v41, %s4244_s7  ;;  %v2996_v5 = vld [vmem:[#allocation3 + $0xc8] sm:$0xff] }
 0x2cb   :  { %v2056_v33 = vpop.permute.xlu1 %2055 }
 0x2cc   :  { %2060 = vst.msk [vmem:[#allocation3 + $0x418] sm:$0xff] %vm1200_vm1, %v2056_v33  ;;  %1981 = vrot.lane.b32.xlu1 %v1977_v18, %s4244_s7  ;;  %v2980_v18 = vld [vmem:[#allocation3 + $0x48] sm:$0xff] }
 0x2cf   :  { %v2100_v14 = vpop.permute.xlu1 %2099 }
 0x2d0   :  { %2104 = vst.msk [vmem:[#allocation3 + $0x428] sm:$0xff] %vm1200_vm1, %v2100_v14  ;;  %2031 = vrot.lane.b32.xlu1 %v2027_v0, %s4242_s5  ;;  %v2995_v0 = vld [vmem:[#allocation3 + $0xc0] sm:$0xff] }
 0x2d1   :  { %v2979_v14 = vld [vmem:[#allocation3 + $0x40] sm:$0xff] }
 0x2d3   :  { %v1232_v12 = vpop.permute.xlu1 %1231 }
 0x2d4   :  { %1237 = vst.msk [vmem:[#allocation3 + $0x10] sm:$0xff] %vm1200_vm1, %v1232_v12  ;;  %2053 = vrot.lane.b32.xlu1 %v2049_v10, %s4242_s5  ;;  %v2994_v10 = vld [vmem:[#allocation3 + $0xb8] sm:$0xff] }
 0x2d5   :  { %v2978_v12 = vld [vmem:[#allocation3 + $0x38] sm:$0xff] }
 0x2d7   :  { %v1254_v32 = vpop.permute.xlu1 %1253 }
 0x2d8   :  { %1259 = vst.msk [vmem:[#allocation3 + $0x2d0] sm:$0xff] %vm1200_vm1, %v1254_v32  ;;  %2075 = vrot.lane.b32.xlu1 %v2071_v19, %s4243_s6 }
 0x2db   :  { %v1276_v30 = vpop.permute.xlu1 %1275 }
 0x2dc   :  { %1281 = vst.msk [vmem:[#allocation3 + $0x20] sm:$0xff] %vm1200_vm1, %v1276_v30  ;;  %2097 = vrot.lane.b32.xlu1 %v2093_v49, %s4243_s6  ;;  %v2992_v30 = vld [vmem:[#allocation3 + $0xa8] sm:$0xff] }
 0x2dd   :  { %v1984_v22 = vpop.permute.xlu0 %1983 }
 0x2de   :  { %1988 = vst.msk [vmem:[#allocation3 + $0x3f8] sm:$0xff] %vm1200_vm1, %v1984_v22  ;;  %v2976_v22 = vld [vmem:[#allocation3 + $0x28] sm:$0xff] }
 0x2df   :  { %v1298_v37 = vpop.permute.xlu1 %1297 }
 0x2e0   :  { %1303 = vst.msk [vmem:[#allocation3 + $0x2e0] sm:$0xff] %vm1200_vm1, %v1298_v37  ;;  %2112 = vperm.xlu1 %4090, %v4637_v2  }
 0x2e3   :  { %v1320_v23 = vpop.permute.xlu1 %1319 }
 0x2e4   :  { %1325 = vst.msk [vmem:[#allocation3 + $0x30] sm:$0xff] %vm1200_vm1, %v1320_v23  ;;  %4091 = vset.pattern.permute.xlu1 %v4247_v62 }
 0x2e7   :  { %v1342_v43 = vpop.permute.xlu1 %1341 }
 0x2e8   :  { %1347 = vst.msk [vmem:[#allocation3 + $0x2f0] sm:$0xff] %vm1200_vm1, %v1342_v43  ;;  %v2975_v43 = vld [vmem:[#allocation3 + $0x20] sm:$0xff] }
 0x2eb   :  { %v1392_v52 = vpop.permute.xlu1 %1391  ;;  %v2977_v49 = vld [vmem:[#allocation3 + $0x30] sm:$0xff] }
 0x2ec   :  { %1397 = vst.msk [vmem:[#allocation3 + $0x50] sm:$0xff] %vm1200_vm1, %v1392_v52  ;;  %v2990_v52 = vld [vmem:[#allocation3 + $0x98] sm:$0xff] }
 0x2ef   :  { %v1414_v60 = vpop.permute.xlu1 %1413 }
 0x2f0   :  { %1419 = vst.msk [vmem:[#allocation3 + $0x310] sm:$0xff] %vm1200_vm1, %v1414_v60  ;;  %v2974_v60 = vld [vmem:[#allocation3 + $0x18] sm:$0xff] }
 0x2f1   :  { %v2034_v58 = vpop.permute.xlu0 %2033 }
 0x2f2   :  { %2038 = vst.msk [vmem:[#allocation3 + $0x158] sm:$0xff] %vm1200_vm1, %v2034_v58 }
 0x2f3   :  { %v1436_v50 = vpop.permute.xlu1 %1435  ;;  %v2981_v41 = vld [vmem:[#allocation3 + $0x50] sm:$0xff] }
 0x2f4   :  { %1441 = vst.msk [vmem:[#allocation3 + $0x60] sm:$0xff] %vm1200_vm1, %v1436_v50 }
 0x2f7   :  { %v1458_v57 = vpop.permute.xlu1 %1457 }
 0x2f8   :  { %1463 = vst.msk [vmem:[#allocation3 + $0x320] sm:$0xff] %vm1200_vm1, %v1458_v57  ;;  %v2973_v57 = vld [vmem:[#allocation3 + $0x10] sm:$0xff] }
 0x2fb   :  { %v2078_v36 = vpop.permute.xlu0 %2077  ;;  %v1480_v27 = vpop.permute.xlu1 %1479  ;;  %v2983_v8 = vld [vmem:[#allocation3 + $0x60] sm:$0xff] }
 0x2fc   :  { %2082 = vst.msk [vmem:[#allocation3 + $0x168] sm:$0xff] %vm1200_vm1, %v2078_v36  ;;  %1485 = vst.msk [vmem:[#allocation3 + $0x70] sm:$0xff] %vm1200_vm1, %v1480_v27  ;;  %v2988_v36 = vld [vmem:[#allocation3 + $0x88] sm:$0xff] }
 0x2fd   :  { %v2972_v27 = vld [vmem:[#allocation3 + $0x8] sm:$0xff] }
 0x2ff   :  { %v1552_v9 = vpop.permute.xlu0 %1551  ;;  %v1502_v44 = vpop.permute.xlu1 %1501 }
 0x300   :  { %1557 = vst.msk [vmem:[#allocation3 + $0x90] sm:$0xff] %vm1200_vm1, %v1552_v9  ;;  %1507 = vst.msk [vmem:[#allocation3 + $0x330] sm:$0xff] %vm1200_vm1, %v1502_v44  ;;  %v2987_v44 = vld [vmem:[#allocation3 + $0x80] sm:$0xff] }
 0x303   :  { %v1872_v7 = vpop.permute.xlu0 %1871  ;;  %v1574_v42 = vpop.permute.xlu1 %1573  ;;  %v2985_v25 = vld [vmem:[#allocation3 + $0x70] sm:$0xff] }
 0x304   :  { %1877 = vst.msk [vmem:[#allocation3 + $0x110] sm:$0xff] %vm1200_vm1, %v1872_v7  ;;  %1579 = vst.msk [vmem:[#allocation3 + $0x350] sm:$0xff] %vm1200_vm1, %v1574_v42  ;;  %v2971_v7 = vld [vmem:[#allocation3] sm:$0xff]  ;;  %v3066_v42 = vld [vmem:[#allocation3 + $0x2f8] sm:$0xff] }
 0x307   :  { %v1596_v11 = vpop.permute.xlu1 %1595  ;;  %v2989_v50 = vld [vmem:[#allocation3 + $0x90] sm:$0xff] }
 0x308   :  { %1601 = vst.msk [vmem:[#allocation3 + $0xa0] sm:$0xff] %vm1200_vm1, %v1596_v11 }
 0x30b   :  { %v1618_v62 = vpop.permute.xlu1 %1617 }
 0x30c   :  { %1623 = vst.msk [vmem:[#allocation3 + $0x360] sm:$0xff] %vm1200_vm1, %v1618_v62 }
 0x30f   :  { %v1640_v3 = vpop.permute.xlu1 %1639  ;;  %v2991_v23 = vld [vmem:[#allocation3 + $0xa0] sm:$0xff] }
 0x310   :  { %1645 = vst.msk [vmem:[#allocation3 + $0xb0] sm:$0xff] %vm1200_vm1, %v1640_v3  ;;  %v2109_v48 = vpop.permute.xlu0 %2108 }
 0x311   :  { %v2115_v16 = vmul.f32 %v2109_v48, %v5212_v31  ;;  %v4249_v48 = vmov 63  }
 0x313   :  { %2119 = vrot.lane.b32.xlu1 %v2115_v16, %s4244_s7  ;;  %v1662_v28 = vpop.permute.xlu1 %1661  ;;  %v4250_v16 = vmov 62  }
 0x314   :  { %1667 = vst.msk [vmem:[#allocation3 + $0x370] sm:$0xff] %vm1200_vm1, %v1662_v28  ;;  %v4251_v28 = vmov 59  }
 0x317   :  { %2130 = vperm.xlu1 %4091, %v4747_v29   ;;  %v1712_v35 = vpop.permute.xlu1 %1711  ;;  %v2993_v32 = vld [vmem:[#allocation3 + $0xb0] sm:$0xff] }
 0x318   :  { %1717 = vst.msk [vmem:[#allocation3 + $0xd0] sm:$0xff] %vm1200_vm1, %v1712_v35  ;;  %v4253_v35 = vmov 57  }
 0x31b   :  { %v1734_v34 = vpop.permute.xlu1 %1733  ;;  %4094 = vset.pattern.permute.xlu1 %v4248_v51 }
 0x31c   :  { %1739 = vst.msk [vmem:[#allocation3 + $0x390] sm:$0xff] %vm1200_vm1, %v1734_v34  ;;  %v4254_v34 = vmov 70  }
 0x31f   :  { %v1756_v6 = vpop.permute.xlu1 %1755  ;;  %v2997_v15 = vld [vmem:[#allocation3 + $0xd0] sm:$0xff] }
 0x320   :  { %1761 = vst.msk [vmem:[#allocation3 + $0xe0] sm:$0xff] %vm1200_vm1, %v1756_v6  ;;  %v4255_v6 = vmov 75  }
 0x323   :  { %v1778_v31 = vpop.permute.xlu1 %1777 }
 0x324   :  { %1783 = vst.msk [vmem:[#allocation3 + $0x3a0] sm:$0xff] %vm1200_vm1, %v1778_v31  ;;  %v4256_v31 = vmov 67  }
 0x327   :  { %v1800_v38 = vpop.permute.xlu1 %1799  ;;  %v2999_v20 = vld [vmem:[#allocation3 + $0xe0] sm:$0xff] }
 0x328   :  { %1805 = vst.msk [vmem:[#allocation3 + $0xf0] sm:$0xff] %vm1200_vm1, %v1800_v38 }
 0x32b   :  { %v1822_v53 = vpop.permute.xlu1 %1821 }
 0x32c   :  { %1827 = vst.msk [vmem:[#allocation3 + $0x3b0] sm:$0xff] %vm1200_vm1, %v1822_v53 }
 0x32f   :  { %v1894_v45 = vpop.permute.xlu1 %1893  ;;  %v3001_v24 = vld [vmem:[#allocation3 + $0xf0] sm:$0xff] }
 0x330   :  { %1899 = vst.msk [vmem:[#allocation3 + $0x3d0] sm:$0xff] %vm1200_vm1, %v1894_v45  ;;  %3651 = vmatprep.subr.mxu0 %v3001_v24  ;;  %v4257_v45 = vmov 74   ;;  %v4258_v24 = vmov 65  }
 0x331   :  { %3652 = vmatpush3.msra.mxu0 %v2985_v25  ;;  %v4259_v25 = vmov 111  }
 0x332   :  { %3653 = vmatprep.subr.mxu0 %v3000_v21  ;;  %v4260_v21 = vmov 103  }
 0x333   :  { %3654 = vmatpush3.msra.mxu0 %v2984_v56  ;;  %v1916_v26 = vpop.permute.xlu1 %1915  ;;  %v4262_v56 = vmov 119  }
 0x334   :  { %1921 = vst.msk [vmem:[#allocation3 + $0x120] sm:$0xff] %vm1200_vm1, %v1916_v26  ;;  %3655 = vmatprep.subr.mxu0 %v2999_v20  ;;  %v4263_v26 = vmov 109  }
 0x335   :  { %3656 = vmatpush3.msra.mxu0 %v2983_v8 }
 0x336   :  { %3657 = vmatprep.subr.mxu0 %v2998_v54 }
 0x337   :  { %3658 = vmatpush3.msra.mxu0 %v2982_v47  ;;  %v1938_v17 = vpop.permute.xlu1 %1937 }
 0x338   :  { %1943 = vst.msk [vmem:[#allocation3 + $0x3e0] sm:$0xff] %vm1200_vm1, %v1938_v17  ;;  %3659 = vmatprep.subr.mxu0 %v2997_v15  ;;  %v4264_v15 = vmov 100  }
 0x339   :  { %3660 = vmatpush3.msra.mxu0 %v2981_v41  ;;  %v4266_v41 = vmov 61  }
 0x33a   :  { %3661 = vmatprep.subr.mxu0 %v2996_v5 }
 0x33b   :  { %3662 = vmatpush3.msra.mxu0 %v2980_v18  ;;  %v1960_v33 = vpop.permute.xlu1 %1959  ;;  %v4267_v18 = vmov 71  }
 0x33c   :  { %1965 = vst.msk [vmem:[#allocation3 + $0x130] sm:$0xff] %vm1200_vm1, %v1960_v33  ;;  %3663 = vmatprep.subr.mxu0 %v2995_v0  ;;  %v4268_v33 = vmov 69   ;;  %v4269_v0 = vmov 66  }
 0x33d   :  { %3664 = vmatpush3.msra.mxu0 %v2979_v14  ;;  %v4270_v14 = vmov 73  }
 0x33e   :  { %3665 = vmatprep.subr.mxu0 %v2994_v10 }
 0x33f   :  { %3666 = vmatpush3.msra.mxu0 %v2978_v12  ;;  %v1982_v19 = vpop.permute.xlu1 %1981  ;;  %v4271_v12 = vmov 102  }
 0x340   :  { %1987 = vst.msk [vmem:[#allocation3 + $0x3f0] sm:$0xff] %vm1200_vm1, %v1982_v19  ;;  %3667 = vmatprep.subr.mxu0 %v2993_v32  ;;  %v5472_v19 = vld [vmem:[%s5936_s2 + $0x10] sm:$0xff] }
 0x341   :  { %3668 = vmatpush3.msra.mxu0 %v2977_v49  ;;  %v5476_v32 = vrot.slane %v5472_v19, %v4615_v55 }
 0x342   :  { %3669 = vmatprep.subr.mxu0 %v2992_v30 }
 0x343   :  { %3670 = vmatpush3.msra.mxu0 %v2976_v22  ;;  %v2032_v37 = vpop.permute.xlu1 %2031  ;;  %v5483_v22 = vadd.f32 %v5152_v59, %v5476_v32 }
 0x344   :  { %2037 = vst.msk [vmem:[#allocation3 + $0x150] sm:$0xff] %vm1200_vm1, %v2032_v37  ;;  %3671 = vmatprep.subr.mxu0 %v2991_v23 }
 0x345   :  { %3672 = vmatpush3.msra.mxu0 %v2975_v43 }
 0x346   :  { %3673 = vmatprep.subr.mxu0 %v2990_v52  ;;  %v4272_v52 = vmov 101  }
 0x347   :  { %3674 = vmatpush3.msra.mxu0 %v2974_v60  ;;  %v2054_v58 = vpop.permute.xlu1 %2053 }
 0x348   :  { %2059 = vst.msk [vmem:[#allocation3 + $0x410] sm:$0xff] %vm1200_vm1, %v2054_v58  ;;  %3675 = vmatprep.subr.mxu0 %v2989_v50  ;;  %v6046_v50 = vld [vmem:[#allocation8_spill] sm:$0xff] }
 0x349   :  { %3676 = vmatpush3.msra.mxu0 %v2973_v57 }
 0x34a   :  { %3677 = vmatprep.subr.mxu0 %v2988_v36 }
 0x34b   :  { %3678 = vmatpush3.msra.mxu0 %v2972_v27  ;;  %v2076_v9 = vpop.permute.xlu1 %2075 }
 0x34c   :  { %2081 = vst.msk [vmem:[#allocation3 + $0x160] sm:$0xff] %vm1200_vm1, %v2076_v9  ;;  %3679 = vmatprep.subr.mxu0 %v2987_v44  ;;  %v4273_v44 = vmov 107  }
 0x34d   :  { %3680 = vmatpush3.msra.mxu0 %v2971_v7 }
 0x34e   :  { %3725 = vmatprep.subr.mxu0 %v3066_v42 }
 0x34f   :  { %v2098_v11 = vpop.permute.xlu1 %2097 }
 0x350   :  { %2103 = vst.msk [vmem:[#allocation3 + $0x420] sm:$0xff] %vm1200_vm1, %v2098_v11 }
 0x35b   :  { %v2113_v62 = vpop.permute.xlu1 %2112 }
 0x35c   :  { %v2116_v3 = vmul.f32 %v2113_v62, %v5149_v46  ;;  %v4252_v46 = vmov 58   ;;  %v4274_v62 = vmov 60  }
 0x35e   :  { %2121 = vrot.lane.b32.xlu0 %v2116_v3, %s4244_s7 }
 0x362   :  { %2134 = vperm.xlu0 %4092, %v4637_v2  }
 0x366   :  { %4093 = vset.pattern.permute.xlu0 %v4248_v51 }
 0x367   :  { %2152 = vperm.xlu0 %4093, %v4747_v29  }
 0x36b   :  { %4096 = vset.pattern.permute.xlu0 %v4249_v48 }
 0x36c   :  { %2432 = vperm.xlu0 %4096, %v4637_v2  }
 0x370   :  { %4099 = vset.pattern.permute.xlu0 %v4250_v16 }
 0x371   :  { %2384 = vperm.xlu0 %4099, %v4747_v29  }
 0x375   :  { %4101 = vset.pattern.permute.xlu0 %v4251_v28 }
 0x376   :  { %2272 = vperm.xlu0 %4101, %v4637_v2  }
 0x37a   :  { %4104 = vset.pattern.permute.xlu0 %v4252_v46 }
 0x37b   :  { %2224 = vperm.xlu0 %4104, %v4747_v29  }
 0x37f   :  { %4107 = vset.pattern.permute.xlu0 %v4253_v35 }
 0x380   :  { %2180 = vperm.xlu0 %4107, %v4747_v29  }
 0x384   :  { %4109 = vset.pattern.permute.xlu0 %v4254_v34 }
 0x385   :  { %2704 = vperm.xlu0 %4109, %v4747_v29   ;;  %v2120_v51 = vpop.permute.xlu1 %2119 }
 0x386   :  { %2125 = vst.msk [vmem:[#allocation3 + $0x170] sm:$0xff] %vm1200_vm1, %v2120_v51  ;;  %v4276_v51 = vmov 115  }
 0x389   :  { %4111 = vset.pattern.permute.xlu0 %v4255_v6 }
 0x38a   :  { %2912 = vperm.xlu0 %4111, %v4637_v2  }
 0x38e   :  { %4114 = vset.pattern.permute.xlu0 %v4256_v31 }
 0x38f   :  { %2588 = vperm.xlu0 %4114, %v4747_v29  }
 0x392   :  { %v2131_v38 = vpop.permute.xlu1 %2130 }
 0x393   :  { %v2137_v53 = vmul.f32 %v2131_v38, %v5223_v13  ;;  %4117 = vset.pattern.permute.xlu0 %v4257_v45  ;;  %v4261_v13 = vmov 110  }
 0x394   :  { %2864 = vperm.xlu0 %4117, %v4747_v29  }
 0x395   :  { %2141 = vrot.lane.b32.xlu1 %v2137_v53, %s4244_s7 }
 0x398   :  { %4119 = vset.pattern.permute.xlu0 %v4258_v24 }
 0x399   :  { %2504 = vperm.xlu0 %4119, %v4637_v2  }
 0x39d   :  { %4121 = vset.pattern.permute.xlu0 %v4259_v25 }
 0x39e   :  { %2614 = vperm.xlu0 %4121, %v4637_v2  }
 0x3a2   :  { %4124 = vset.pattern.permute.xlu0 %v4260_v21 }
 0x3a3   :  { %2290 = vperm.xlu0 %4124, %v4747_v29  }
 0x3a7   :  { %4127 = vset.pattern.permute.xlu0 %v4261_v13 }
 0x3a8   :  { %2566 = vperm.xlu0 %4127, %v4747_v29  }
 0x3ac   :  { %4129 = vset.pattern.permute.xlu0 %v4262_v56 }
 0x3ad   :  { %2934 = vperm.xlu0 %4129, %v4637_v2  }
 0x3b1   :  { %4131 = vset.pattern.permute.xlu0 %v4263_v26 }
 0x3b2   :  { %2522 = vperm.xlu0 %4131, %v4747_v29  }
 0x3d0   :  { %v2122_v20 = vpop.permute.xlu0 %2121 }
 0x3d1   :  { %2126 = vst.msk [vmem:[#allocation3 + $0x178] sm:$0xff] %vm1200_vm1, %v2122_v20 }
 0x3dd   :  { %v2135_v8 = vpop.permute.xlu0 %2134 }
 0x3de   :  { %v2138_v54 = vmul.f32 %v2135_v8, %v5169_v4  ;;  %v4265_v4 = vmov 118  }
 0x3df   :  { %4136 = vset.pattern.permute.xlu0 %v4265_v4 }
 0x3e0   :  { %2143 = vrot.lane.b32.xlu1 %v2138_v54, %s4244_s7  ;;  %v6047_v54 = vld [vmem:[#allocation20_spill] sm:$0xff] }
 0x3e2   :  { %v2153_v47 = vpop.permute.xlu0 %2152 }
 0x3e3   :  { %v2159_v17 = vmul.f32 %v2153_v47, %v4533_v61 }
 0x3e4   :  { %2156 = vperm.xlu1 %4094, %v4637_v2  }
 0x3e5   :  { %2161 = vst.msk [vmem:[#allocation3 + $0x180] sm:$0xff] %vm1200_vm1, %v2159_v17 }
 0x3e7   :  { %v2433_v43 = vpop.permute.xlu0 %2432 }
 0x3e8   :  { %4095 = vset.pattern.permute.xlu1 %v4264_v15  ;;  %v2436_v59 = vmul.f32 %v2433_v43, %v6046_v50  ;;  %v6050_v43 = vld [vmem:[#allocation10_spill] sm:$0xff] }
 0x3e9   :  { %2166 = vperm.xlu1 %4095, %v4747_v29  }
 0x3ec   :  { %v2385_v42 = vpop.permute.xlu0 %2384 }
 0x3ed   :  { %4097 = vset.pattern.permute.xlu1 %v4249_v48  ;;  %v2391_v48 = vmul.f32 %v2385_v42, %v4535_v63 }
 0x3ee   :  { %2428 = vperm.xlu1 %4097, %v4747_v29  }
 0x3f2   :  { %4098 = vset.pattern.permute.xlu1 %v4250_v16  ;;  %v4275_v16 = vmov 106  }
 0x3f3   :  { %2388 = vperm.xlu1 %4098, %v4637_v2  }
 0x3f7   :  { %4100 = vset.pattern.permute.xlu1 %v4266_v41 }
 0x3f8   :  { %2344 = vperm.xlu1 %4100, %v4637_v2  }
 0x3fc   :  { %2340 = vperm.xlu1 %4100, %v4747_v29  }
 0x400   :  { %4102 = vset.pattern.permute.xlu1 %v4251_v28  ;;  %v2273_v28 = vpop.permute.xlu0 %2272 }
 0x401   :  { %2268 = vperm.xlu1 %4102, %v4747_v29  }
 0x405   :  { %4103 = vset.pattern.permute.xlu1 %v4252_v46 }
 0x406   :  { %2228 = vperm.xlu1 %4103, %v4637_v2  }
 0x407   :  { %v2142_v5 = vpop.permute.xlu1 %2141 }
 0x408   :  { %2147 = vst.msk [vmem:[#allocation3 + $0x430] sm:$0xff] %vm1200_vm1, %v2142_v5  ;;  %v6048_v5 = vld [vmem:[#allocation18_spill] sm:$0xff] }
 0x40a   :  { %4105 = vset.pattern.permute.xlu1 %v4253_v35  ;;  %v2276_v35 = vmul.f32 %v2273_v28, %v4537_v1 }
 0x40b   :  { %2184 = vperm.xlu1 %4105, %v4637_v2  }
 0x40f   :  { %4106 = vset.pattern.permute.xlu1 %v4267_v18 }
 0x410   :  { %2752 = vperm.xlu1 %4106, %v4637_v2  }
 0x414   :  { %2748 = vperm.xlu1 %4106, %v4747_v29  }
 0x418   :  { %4108 = vset.pattern.permute.xlu1 %v4254_v34 }
 0x419   :  { %2708 = vperm.xlu1 %4108, %v4637_v2  }
 0x41d   :  { %4110 = vset.pattern.permute.xlu1 %v4268_v33  ;;  %v2950_v33 = vld [vmem:[%s5937_s3 + $0x8] sm:$0xff] }
 0x41e   :  { %2664 = vperm.xlu1 %4110, %v4637_v2   ;;  %3211 = vmatprep.mubr.f32.mxu0 %v2950_v33  ;;  %v6055_v33 = vld [vmem:[#allocation19_spill] sm:$0xff] }
 0x422   :  { %2660 = vperm.xlu1 %4110, %v4747_v29  }
 0x426   :  { %4112 = vset.pattern.permute.xlu1 %v4256_v31 }
 0x427   :  { %2592 = vperm.xlu1 %4112, %v4637_v2  }
 0x42b   :  { %4113 = vset.pattern.permute.xlu1 %v4255_v6  ;;  %v4277_v6 = vmov 117  }
 0x42c   :  { %2908 = vperm.xlu1 %4113, %v4747_v29  }
 0x430   :  { %4115 = vset.pattern.permute.xlu1 %v4257_v45  ;;  %v2225_v45 = vpop.permute.xlu0 %2224 }
 0x431   :  { %2868 = vperm.xlu1 %4115, %v4637_v2  }
 0x435   :  { %4116 = vset.pattern.permute.xlu1 %v4269_v0  ;;  %v2949_v0 = vld [vmem:[%s5937_s3] sm:$0xff] }
 0x436   :  { %2548 = vperm.xlu1 %4116, %v4637_v2   ;;  %3212 = vmatmul.mubr.f32.vlgmr.msra.gmra.mxu0 %v2949_v0 }
 0x43a   :  { %2544 = vperm.xlu1 %4116, %v4747_v29  }
 0x43e   :  { %4118 = vset.pattern.permute.xlu1 %v4270_v14 }
 0x43f   :  { %2824 = vperm.xlu1 %4118, %v4637_v2  }
 0x443   :  { %2820 = vperm.xlu1 %4118, %v4747_v29  }
 0x447   :  { %4120 = vset.pattern.permute.xlu1 %v4258_v24  ;;  %v4278_v24 = vmov 68  }
 0x448   :  { %2500 = vperm.xlu1 %4120, %v4747_v29  }
 0x44c   :  { %4122 = vset.pattern.permute.xlu1 %v4260_v21 }
 0x44d   :  { %2294 = vperm.xlu1 %4122, %v4637_v2  }
 0x451   :  { %4123 = vset.pattern.permute.xlu1 %v4259_v25  ;;  %v2231_v25 = vmul.f32 %v2225_v45, %v4533_v61 }
 0x452   :  { %2610 = vperm.xlu1 %4123, %v4747_v29   ;;  %v2144_v10 = vpop.permute.xlu1 %2143 }
 0x453   :  { %2148 = vst.msk [vmem:[#allocation3 + $0x438] sm:$0xff] %vm1200_vm1, %v2144_v10 }
 0x456   :  { %4125 = vset.pattern.permute.xlu1 %v4261_v13  ;;  %v4172_v13 = vld [vmem:[%s5936_s2 + $0x8] sm:$0xff] }
 0x457   :  { %2570 = vperm.xlu1 %4125, %v4637_v2  }
 0x45b   :  { %4126 = vset.pattern.permute.xlu1 %v4271_v12 }
 0x45c   :  { %2250 = vperm.xlu1 %4126, %v4637_v2  }
 0x45f   :  { %v2157_v49 = vpop.permute.xlu1 %2156 }
 0x460   :  { %v2160_v30 = vmul.f32 %v2157_v49, %v4537_v1  ;;  %2246 = vperm.xlu1 %4126, %v4747_v29   ;;  %v6049_v49 = vld [vmem:[#allocation7_spill] sm:$0xff] }
 0x462   :  { %2162 = vst.msk [vmem:[#allocation3 + $0x188] sm:$0xff] %vm1200_vm1, %v2160_v30  ;;  %v115_v30 = vrot.slane %v4172_v13, %v6049_v49 }
 0x464   :  { %4128 = vset.pattern.permute.xlu1 %v4263_v26  ;;  %v2167_v37 = vpop.permute.xlu1 %2166  ;;  %v111_v26 = vrot.slane %v4172_v13, %v4615_v55 }
 0x465   :  { %v2173_v23 = vmul.f32 %v2167_v37, %v5483_v22  ;;  %2526 = vperm.xlu1 %4128, %v4637_v2  }
 0x466   :  { %v5533_v47 = vadd.f32 %v6047_v54, %v111_v26  ;;  %v5541_v18 = vadd.f32 %v6048_v5, %v111_v26 }
 0x467   :  { %2175 = vst.msk [vmem:[#allocation3 + $0x440] sm:$0xff] %vm1200_vm1, %v2173_v23 }
 0x469   :  { %4130 = vset.pattern.permute.xlu1 %v4272_v52  ;;  %v2429_v60 = vpop.permute.xlu1 %2428 }
 0x46a   :  { %v2435_v58 = vmul.f32 %v2429_v60, %v4535_v63  ;;  %2206 = vperm.xlu1 %4130, %v4637_v2   ;;  %v4280_v60 = vmov 72  }
 0x46c   :  { %2439 = vrot.lane.b32.xlu0 %v2435_v58, %s4244_s7 }
 0x46e   :  { %2441 = vrot.lane.b32.xlu1 %v2436_v59, %s4244_s7  ;;  %v2389_v57 = vpop.permute.xlu1 %2388 }
 0x46f   :  { %v2392_v36 = vmul.f32 %v2389_v57, %v6046_v50  ;;  %4132 = vset.pattern.permute.xlu1 %v4262_v56 }
 0x471   :  { %2397 = vrot.lane.b32.xlu0 %v2392_v36, %s4243_s6  ;;  %v6051_v36 = vld [vmem:[#allocation9_spill] sm:$0xff] }
 0x472   :  { %2930 = vperm.xlu1 %4132, %v4747_v29  }
 0x473   :  { %v2345_v27 = vpop.permute.xlu1 %2344 }
 0x474   :  { %v2348_v38 = vmul.f32 %v2345_v27, %v6046_v50  ;;  %v5569_v27 = vadd.f32 %v6051_v36, %v115_v30  ;;  %v884_v36 = vpop.f32.mrf.mxu0 }
 0x475   :  { %2886 = vperm.xlu0 %4136, %v4747_v29  }
 0x476   :  { %4133 = vset.pattern.permute.xlu1 %v4272_v52  ;;  %v5560_v52 = vadd.f32 %v6050_v43, %v115_v30 }
 0x477   :  { %2202 = vperm.xlu1 %4133, %v4747_v29   ;;  %v2341_v9 = vpop.permute.xlu1 %2340 }
 0x478   :  { %v2347_v11 = vmul.f32 %v2341_v9, %v4535_v63  ;;  %v4281_v9 = vmov 114  }
 0x479   :  { %4137 = vset.pattern.permute.xlu0 %v4273_v44 }
 0x47a   :  { %2454 = vperm.xlu0 %4137, %v4637_v2  }
 0x47b   :  { %4134 = vset.pattern.permute.xlu1 %v4265_v4  ;;  %v2181_v4 = vpop.permute.xlu0 %2180 }
 0x47c   :  { %2890 = vperm.xlu1 %4134, %v4637_v2   ;;  %v5503_v7 = vpop.permute.xlu1 %2268 }
 0x47d   :  { %v2275_v59 = vmul.f32 %v5503_v7, %v4533_v61 }
 0x47e   :  { %2450 = vperm.xlu0 %4137, %v4747_v29  }
 0x47f   :  { %v2705_v10 = vpop.permute.xlu0 %2704 }
 0x480   :  { %4135 = vset.pattern.permute.xlu1 %v4274_v62  ;;  %v2711_v54 = vmul.f32 %v2705_v10, %v5541_v18 }
 0x481   :  { %2316 = vperm.xlu1 %4135, %v4637_v2   ;;  %v2229_v3 = vpop.permute.xlu1 %2228 }
 0x482   :  { %2351 = vrot.lane.b32.xlu0 %v2347_v11, %s4242_s5  ;;  %v2232_v53 = vmul.f32 %v2229_v3, %v4537_v1  ;;  %v107_v3 = vrot.slane %v4172_v13, %v4599_v39  ;;  %v4284_v13 = vmov 108  }
 0x483   :  { %4140 = vset.pattern.permute.xlu0 %v4275_v16  ;;  %v2913_v23 = vpop.permute.xlu0 %2912 }
 0x484   :  { %v2916_v58 = vmul.f32 %v2913_v23, %v5560_v52  ;;  %v5627_v0 = vadd.f32 %v6055_v33, %v107_v3 }
 0x485   :  { %2395 = vrot.lane.b32.xlu1 %v2391_v48, %s4243_s6 }
 0x486   :  { %2406 = vperm.xlu0 %4140, %v4747_v29   ;;  %v2185_v46 = vpop.permute.xlu1 %2184 }
 0x487   :  { %v2188_v20 = vmul.f32 %v2185_v46, %v4537_v1  ;;  %v4279_v1 = vmov 105   ;;  %v2589_v44 = vpop.permute.xlu0 %2588  ;;  %v4282_v46 = vmov 113  }
 0x489   :  { %2312 = vperm.xlu1 %4135, %v4747_v29  }
 0x48a   :  { %2281 = vrot.lane.b32.xlu0 %v2276_v35, %s4244_s7 }
 0x48b   :  { %v2753_v34 = vpop.permute.xlu1 %2752  ;;  %4144 = vset.pattern.permute.xlu0 %v4276_v51  ;;  %v5580_v48 = vpop.permute.xlu0 %2864 }
 0x48c   :  { %v2756_v17 = vmul.f32 %v2753_v34, %v5533_v47 }
 0x48d   :  { %4138 = vset.pattern.permute.xlu1 %v4277_v6  ;;  %v4283_v6 = vmov 64  }
 0x48e   :  { %2846 = vperm.xlu1 %4138, %v4637_v2   ;;  %2770 = vperm.xlu0 %4144, %v4747_v29  }
 0x48f   :  { %v2749_v31 = vpop.permute.xlu1 %2748  ;;  %v5591_v34 = vpop.permute.xlu0 %2504 }
 0x490   :  { %v2755_v55 = vmul.f32 %v2749_v31, %v5541_v18  ;;  %v2187_v31 = vmul.f32 %v2181_v4, %v4533_v61  ;;  %v6053_v61 = vld [vmem:[#allocation14_spill] sm:$0xff]  ;;  %v6054_v4 = vld [vmem:[#allocation12_spill] sm:$0xff] }
 0x492   :  { %2353 = vrot.lane.b32.xlu1 %v2348_v38, %s4242_s5  ;;  %2237 = vrot.lane.b32.xlu0 %v2232_v53, %s4243_s6 }
 0x493   :  { %4147 = vset.pattern.permute.xlu0 %v4278_v24  ;;  %v2615_v38 = vpop.permute.xlu0 %2614 }
 0x494   :  { %v5523_v21 = vpop.permute.xlu1 %2708  ;;  %v2618_v26 = vmul.f32 %v2615_v38, %v6053_v61 }
 0x496   :  { %2842 = vperm.xlu1 %4138, %v4747_v29   ;;  %2235 = vrot.lane.b32.xlu0 %v2231_v25, %s4243_s6  ;;  %v2712_v25 = vmul.f32 %v5523_v21, %v5533_v47 }
 0x499   :  { %v2665_v8 = vpop.permute.xlu1 %2664 }
 0x49a   :  { %4139 = vset.pattern.permute.xlu1 %v4275_v16  ;;  %2193 = vrot.lane.b32.xlu0 %v2188_v20, %s4242_s5  ;;  %v2668_v37 = vmul.f32 %v2665_v8, %v5533_v47  ;;  %v6052_v16 = vld [vmem:[#allocation17_spill] sm:$0xff]  ;;  %v5609_v20 = vpop.permute.xlu0 %2290 }
 0x49b   :  { %2410 = vperm.xlu1 %4139, %v4637_v2   ;;  %v5585_v28 = vadd.f32 %v6052_v16, %v107_v3  ;;  %v159_v3 = vrot.slane %v5472_v19, %v4677_v40 }
 0x49d   :  { %v5538_v41 = vpop.permute.xlu1 %2660 }
 0x49e   :  { %2761 = vrot.lane.b32.xlu0 %v2756_v17, %s4244_s7  ;;  %v5619_v17 = vpop.permute.xlu0 %2566 }
 0x49f   :  { %4141 = vset.pattern.permute.xlu1 %v4279_v1 }
 0x4a0   :  { %2366 = vperm.xlu1 %4141, %v4637_v2  }
 0x4a2   :  { %2759 = vrot.lane.b32.xlu0 %v2755_v55, %s4244_s7  ;;  %v5553_v14 = vpop.permute.xlu1 %2592 }
 0x4a3   :  { %v2596_v30 = vmul.f32 %v5553_v14, %v5627_v0 }
 0x4a4   :  { %4142 = vset.pattern.permute.xlu1 %v4276_v51 }
 0x4a5   :  { %2774 = vperm.xlu1 %4142, %v4637_v2  }
 0x4a6   :  { %2636 = vperm.xlu0 %4147, %v4637_v2  }
 0x4a7   :  { %v2909_v12 = vpop.permute.xlu1 %2908 }
 0x4a8   :  { %v2915_v42 = vmul.f32 %v2909_v12, %v5569_v27  ;;  %v5631_v12 = vpop.permute.xlu0 %2934 }
 0x4a9   :  { %4143 = vset.pattern.permute.xlu1 %v4279_v1  ;;  %v2667_v1 = vmul.f32 %v5538_v41, %v5541_v18  ;;  %v2595_v41 = vmul.f32 %v2589_v44, %v5585_v28 }
 0x4aa   :  { %2362 = vperm.xlu1 %4143, %v4747_v29   ;;  %2673 = vrot.lane.b32.xlu0 %v2668_v37, %s4242_s5 }
 0x4ab   :  { %4149 = vset.pattern.permute.xlu0 %v4280_v60 }
 0x4ac   :  { %v2869_v57 = vpop.permute.xlu1 %2868  ;;  %v5641_v23 = vpop.permute.xlu0 %2522 }
 0x4ad   :  { %v2872_v7 = vmul.f32 %v2869_v57, %v5560_v52 }
 0x4ae   :  { %2279 = vrot.lane.b32.xlu1 %v2275_v59, %s4244_s7  ;;  %2921 = vrot.lane.b32.xlu0 %v2916_v58, %s4244_s7 }
 0x4af   :  { %4145 = vset.pattern.permute.xlu1 %v4281_v9 }
 0x4b1   :  { %v5574_v11 = vpop.permute.xlu1 %2548 }
 0x4b2   :  { %2730 = vperm.xlu1 %4145, %v4637_v2   ;;  %2919 = vrot.lane.b32.xlu0 %v2915_v42, %s4244_s7  ;;  %v2552_v14 = vmul.f32 %v5574_v11, %v5627_v0  ;;  %v5655_v42 = vadd.f32 %v884_v36, %v5476_v32  ;;  %v5660_v11 = vpop.f32.mrf.mxu0 }
 0x4b4   :  { %v1032_v32 = vpop.f32.mrf.mxu0 }
 0x4b5   :  { %v2545_v62 = vpop.permute.xlu1 %2544 }
 0x4b6   :  { %2726 = vperm.xlu1 %4145, %v4747_v29   ;;  %2877 = vrot.lane.b32.xlu0 %v2872_v7, %s4243_s6  ;;  %v2551_v39 = vmul.f32 %v2545_v62, %v5585_v28 }
 0x4ba   :  { %4146 = vset.pattern.permute.xlu1 %v4282_v46  ;;  %2796 = vperm.xlu0 %4149, %v4637_v2   ;;  %v5588_v35 = vpop.permute.xlu1 %2824  ;;  %v5668_v46 = vadd.f32 %v1032_v32, %v159_v3 }
 0x4bb   :  { %2686 = vperm.xlu1 %4146, %v4637_v2  }
 0x4be   :  { %2555 = vrot.lane.b32.xlu0 %v2551_v39, %s4243_s6  ;;  %v2821_v51 = vpop.permute.xlu1 %2820 }
 0x4bf   :  { %2682 = vperm.xlu1 %4146, %v4747_v29   ;;  %4152 = vset.pattern.permute.xlu0 %v4283_v6  ;;  %v2827_v45 = vmul.f32 %v2821_v51, %v5569_v27 }
 0x4c2   :  { %2472 = vperm.xlu0 %4152, %v4747_v29  }
 0x4c3   :  { %2191 = vrot.lane.b32.xlu1 %v2187_v31, %s4242_s5  ;;  %v5599_v53 = vpop.permute.xlu1 %2500 }
 0x4c4   :  { %4148 = vset.pattern.permute.xlu1 %v4278_v24  ;;  %v2952_v24 = vld [vmem:[%s5937_s3 + $0x18] sm:$0xff] }
 0x4c5   :  { %3286 = vmatprep.mubr.f32.mxu1 %v2952_v24 }
 0x4c6   :  { %2831 = vrot.lane.b32.xlu0 %v2827_v45, %s4242_s5 }
 0x4c7   :  { %2717 = vrot.lane.b32.xlu1 %v2712_v25, %s4243_s6  ;;  %4153 = vset.pattern.permute.xlu0 %v4284_v13 }
 0x4c8   :  { %v5611_v8 = vpop.permute.xlu1 %2294 }
 0x4ca   :  { %2623 = vrot.lane.b32.xlu0 %v2618_v26, %s4244_s7  ;;  %v3017_v26 = vld [vmem:[#allocation3 + $0x170] sm:$0xff] }
 0x4cb   :  { %2715 = vrot.lane.b32.xlu1 %v2711_v54, %s4243_s6  ;;  %v2507_v54 = vmul.f32 %v5599_v53, %v5585_v28  ;;  %v2961_v53 = vld [vmem:[%s5937_s3 + $0x60] sm:$0xff] }
 0x4cc   :  { %3216 = vmatprep.mubr.f32.mxu0 %v2961_v53 }
 0x4cd   :  { %v2611_v21 = vpop.permute.xlu1 %2610 }
 0x4ce   :  { %v2617_v5 = vmul.f32 %v2611_v21, %v6054_v4 }
 0x4cf   :  { %2632 = vperm.xlu1 %4148, %v4747_v29  }
 0x4d0   :  { %2621 = vrot.lane.b32.xlu0 %v2617_v5, %s4244_s7 }
 0x4d2   :  { %v2571_v55 = vpop.permute.xlu1 %2570 }
 0x4d3   :  { %v2574_v10 = vmul.f32 %v2571_v55, %v6053_v61  ;;  %2671 = vrot.lane.b32.xlu1 %v2667_v1, %s4242_s5  ;;  %v2298_v55 = vmul.f32 %v5611_v8, %v5655_v42  ;;  %v2960_v8 = vld [vmem:[%s5937_s3 + $0x58] sm:$0xff] }
 0x4d4   :  { %4150 = vset.pattern.permute.xlu1 %v4283_v6  ;;  %v5675_v6 = vpop.f32.mrf.mxu0  ;;  %3217 = vmatmul.mubr.f32.gmra.mxu0 %v2960_v8 }
 0x4d5   :  { %2579 = vrot.lane.b32.xlu0 %v2574_v10, %s4243_s6  ;;  %v147_v10 = vrot.slane %v5472_v19, %v6049_v49  ;;  %v2954_v49 = vld [vmem:[%s5937_s3 + $0x28] sm:$0xff] }
 0x4d6   :  { %v1038_v45 = vpop.f32.mrf.mxu0  ;;  %3361 = vmatprep.mubr.f32.mxu0 %v2954_v49 }
 0x4d7   :  { %2601 = vrot.lane.b32.xlu1 %v2596_v30, %s4244_s7  ;;  %v5637_v37 = vpop.permute.xlu1 %2250  ;;  %v5687_v21 = vadd.f32 %v1038_v45, %v159_v3 }
 0x4d8   :  { %v2254_v36 = vmul.f32 %v5637_v37, %v5655_v42 }
 0x4d9   :  { %2490 = vperm.xlu0 %4153, %v4637_v2  }
 0x4db   :  { %2599 = vrot.lane.b32.xlu1 %v2595_v41, %s4244_s7  ;;  %v2247_v43 = vpop.permute.xlu1 %2246 }
 0x4dc   :  { %v2253_v58 = vmul.f32 %v2247_v43, %v5483_v22  ;;  %v2297_v43 = vmul.f32 %v5609_v20, %v5483_v22 }
 0x4dd   :  { %4159 = vset.pattern.permute.xlu0 %v4262_v56  ;;  %v2871_v56 = vmul.f32 %v5580_v48, %v5569_v27  ;;  %v2828_v48 = vmul.f32 %v5588_v35, %v5560_v52  ;;  %v3018_v35 = vld [vmem:[#allocation3 + $0x178] sm:$0xff] }
 0x4de   :  { %v2440_v59 = vpop.permute.xlu0 %2439  ;;  %2257 = vrot.lane.b32.xlu0 %v2253_v58, %s4243_s6 }
 0x4df   :  { %2445 = vst.msk [vmem:[#allocation3 + $0x1f0] sm:$0xff] %vm1200_vm1, %v2440_v59  ;;  %2557 = vrot.lane.b32.xlu1 %v2552_v14, %s4243_s6  ;;  %v6056_v59 = vld [vmem:[#allocation13_spill] sm:$0xff] }
 0x4e0   :  { %v2527_v57 = vpop.permute.xlu1 %2526 }
 0x4e1   :  { %v2530_v9 = vmul.f32 %v2527_v57, %v6053_v61  ;;  %v5708_v57 = vadd.f32 %v6056_v59, %v147_v10  ;;  %v3065_v59 = vld [vmem:[#allocation3 + $0x2f0] sm:$0xff] }
 0x4e3   :  { %v2398_v44 = vpop.permute.xlu0 %2397  ;;  %2476 = vperm.xlu1 %4150, %v4637_v2   ;;  %2535 = vrot.lane.b32.xlu0 %v2530_v9, %s4242_s5 }
 0x4e4   :  { %2402 = vst.msk [vmem:[#allocation3 + $0x1e8] sm:$0xff] %vm1200_vm1, %v2398_v44  ;;  %v6057_v44 = vld [vmem:[#allocation11_spill] sm:$0xff] }
 0x4e5   :  { %v2207_v7 = vpop.permute.xlu1 %2206 }
 0x4e6   :  { %v2210_v62 = vmul.f32 %v2207_v7, %v5655_v42  ;;  %v3033_v25 = vld [vmem:[#allocation3 + $0x1f0] sm:$0xff] }
 0x4e7   :  { %2875 = vrot.lane.b32.xlu1 %v2871_v56, %s4243_s6  ;;  %v5722_v56 = vadd.f32 %v6057_v44, %v147_v10  ;;  %v3011_v10 = vld [vmem:[#allocation3 + $0x140] sm:$0xff]  ;;  %v3064_v44 = vld [vmem:[#allocation3 + $0x2e8] sm:$0xff] }
 0x4e8   :  { %2215 = vrot.lane.b32.xlu0 %v2210_v62, %s4242_s5  ;;  %4151 = vset.pattern.permute.xlu1 %v4280_v60  ;;  %v2508_v60 = vmul.f32 %v5591_v34, %v5627_v0  ;;  %v3016_v34 = vld [vmem:[#allocation3 + $0x168] sm:$0xff] }
 0x4e9   :  { %v2442_v16 = vpop.permute.xlu1 %2441 }
 0x4ea   :  { %2446 = vst.msk [vmem:[#allocation3 + $0x1f8] sm:$0xff] %vm1200_vm1, %v2442_v16  ;;  %v2573_v16 = vmul.f32 %v5619_v17, %v6054_v4  ;;  %v2938_v17 = vmul.f32 %v5631_v12, %v5687_v21 }
 0x4eb   :  { %2792 = vperm.xlu1 %4151, %v4747_v29  }
 0x4ed   :  { %v2931_v39 = vpop.permute.xlu1 %2930 }
 0x4ee   :  { %v2937_v51 = vmul.f32 %v2931_v39, %v5668_v46 }
 0x4ef   :  { %2833 = vrot.lane.b32.xlu1 %v2828_v48, %s4242_s5 }
 0x4f0   :  { %v2887_v40 = vpop.permute.xlu0 %2886  ;;  %2941 = vrot.lane.b32.xlu0 %v2937_v51, %s4244_s7  ;;  %4154 = vset.pattern.permute.xlu1 %v4264_v15  ;;  %v3032_v15 = vld [vmem:[#allocation3 + $0x1e8] sm:$0xff]  ;;  %v3015_v51 = vld [vmem:[#allocation3 + $0x160] sm:$0xff] }
 0x4f1   :  { %v3034_v31 = vld [vmem:[#allocation3 + $0x1f8] sm:$0xff]  ;;  %v2893_v30 = vmul.f32 %v2887_v40, %v5668_v46 }
 0x4f2   :  { %3687 = vmatprep.subr.mxu1 %v3034_v31  ;;  %v5682_v38 = vpop.permute.xlu1 %2202 }
 0x4f3   :  { %2513 = vrot.lane.b32.xlu1 %v2508_v60, %s4242_s5  ;;  %3688 = vmatpush3.msra.mxu1 %v3018_v35  ;;  %v4285_v35 = vmov 116  }
 0x4f4   :  { %3689 = vmatprep.subr.mxu1 %v3033_v25 }
 0x4f5   :  { %v2455_v24 = vpop.permute.xlu0 %2454  ;;  %3690 = vmatpush3.msra.mxu1 %v3017_v26 }
 0x4f6   :  { %3691 = vmatprep.subr.mxu1 %v3032_v15  ;;  %v2458_v20 = vmul.f32 %v2455_v24, %v5708_v57  ;;  %v3013_v15 = vld [vmem:[#allocation3 + $0x150] sm:$0xff] }
 0x4f7   :  { %2511 = vrot.lane.b32.xlu1 %v2507_v54, %s4242_s5  ;;  %3692 = vmatpush3.msra.mxu1 %v3016_v34  ;;  %v2891_v5 = vpop.permute.xlu1 %2890  ;;  %v3014_v54 = vld [vmem:[#allocation3 + $0x158] sm:$0xff]  ;;  %v2209_v34 = vmul.f32 %v5682_v38, %v5483_v22 }
 0x4f8   :  { %v2894_v1 = vmul.f32 %v2891_v5, %v5687_v21  ;;  %v3010_v38 = vld [vmem:[#allocation3 + $0x138] sm:$0xff] }
 0x4f9   :  { %v2451_v33 = vpop.permute.xlu0 %2450 }
 0x4fa   :  { %2899 = vrot.lane.b32.xlu0 %v2894_v1, %s4243_s6  ;;  %v2457_v7 = vmul.f32 %v2451_v33, %v5722_v56  ;;  %v3012_v1 = vld [vmem:[#allocation3 + $0x148] sm:$0xff] }
 0x4fb   :  { %2303 = vrot.lane.b32.xlu1 %v2298_v55, %s4244_s7 }
 0x4fc   :  { %v2317_v41 = vpop.permute.xlu1 %2316 }
 0x4fd   :  { %v2320_v58 = vmul.f32 %v2317_v41, %v6046_v50  ;;  %v2352_v14 = vpop.permute.xlu0 %2351 }
 0x4fe   :  { %2357 = vst.msk [vmem:[#allocation3 + $0x1d0] sm:$0xff] %vm1200_vm1, %v2352_v14  ;;  %2897 = vrot.lane.b32.xlu0 %v2893_v30, %s4243_s6 }
 0x4ff   :  { %2322 = vst.msk [vmem:[#allocation3 + $0x1c8] sm:$0xff] %vm1200_vm1, %v2320_v58  ;;  %2301 = vrot.lane.b32.xlu1 %v2297_v43, %s4244_s7 }
 0x500   :  { %v2396_v50 = vpop.permute.xlu1 %2395 }
 0x501   :  { %2401 = vst.msk [vmem:[#allocation3 + $0x1e0] sm:$0xff] %vm1200_vm1, %v2396_v50  ;;  %v2407_v9 = vpop.permute.xlu0 %2406 }
 0x502   :  { %2463 = vrot.lane.b32.xlu0 %v2458_v20, %s4244_s7  ;;  %v2413_v55 = vmul.f32 %v2407_v9, %v5722_v56 }
 0x503   :  { %2259 = vrot.lane.b32.xlu1 %v2254_v36, %s4243_s6 }
 0x504   :  { %v2313_v62 = vpop.permute.xlu1 %2312 }
 0x505   :  { %v2319_v3 = vmul.f32 %v2313_v62, %v4535_v63  ;;  %v2282_v32 = vpop.permute.xlu0 %2281  ;;  %v3029_v24 = vld [vmem:[#allocation3 + $0x1d0] sm:$0xff] }
 0x506   :  { %2286 = vst.msk [vmem:[#allocation3 + $0x1b8] sm:$0xff] %vm1200_vm1, %v2282_v32  ;;  %2461 = vrot.lane.b32.xlu0 %v2457_v7, %s4244_s7  ;;  %v6058_v32 = vld [vmem:[#allocation16_spill] sm:$0xff] }
 0x507   :  { %2321 = vst.msk [vmem:[#allocation3 + $0x1c0] sm:$0xff] %vm1200_vm1, %v2319_v3  ;;  %2170 = vperm.xlu1 %4154, %v4637_v2  }
 0x508   :  { %v3031_v37 = vld [vmem:[#allocation3 + $0x1e0] sm:$0xff] }
 0x509   :  { %v5734_v48 = vpop.permute.xlu0 %2770  ;;  %3693 = vmatprep.subr.mxu1 %v3031_v37  ;;  %v5736_v39 = vpop.permute.xlu1 %2846  ;;  %v155_v37 = vrot.slane %v5472_v19, %v6058_v32  ;;  %v3081_v32 = vld [vmem:[#allocation3 + $0x370] sm:$0xff] }
 0x50a   :  { %3694 = vmatpush3.msra.mxu1 %v3015_v51  ;;  %v2850_v49 = vmul.f32 %v5736_v39, %v5687_v21 }
 0x50b   :  { %2577 = vrot.lane.b32.xlu1 %v2573_v16, %s4243_s6  ;;  %v5782_v16 = vadd.f32 %v5675_v6, %v155_v37 }
 0x50c   :  { %4155 = vset.pattern.permute.xlu1 %v4284_v13  ;;  %v2529_v13 = vmul.f32 %v5641_v23, %v6054_v4  ;;  %v3028_v23 = vld [vmem:[#allocation3 + $0x1c8] sm:$0xff] }
 0x50d   :  { %v2238_v63 = vpop.permute.xlu0 %2237  ;;  %v2354_v40 = vpop.permute.xlu1 %2353  ;;  %v3026_v22 = vld [vmem:[#allocation3 + $0x1b8] sm:$0xff] }
 0x50e   :  { %2242 = vst.msk [vmem:[#allocation3 + $0x1a8] sm:$0xff] %vm1200_vm1, %v2238_v63  ;;  %2358 = vst.msk [vmem:[#allocation3 + $0x1d8] sm:$0xff] %vm1200_vm1, %v2354_v40  ;;  %v3027_v53 = vld [vmem:[#allocation3 + $0x1c0] sm:$0xff]  ;;  %v5788_v40 = vadd.f32 %v5660_v11, %v155_v37  ;;  %v3008_v11 = vld [vmem:[#allocation3 + $0x128] sm:$0xff] }
 0x50f   :  { %2486 = vperm.xlu1 %4155, %v4747_v29  }
 0x511   :  { %v2236_v60 = vpop.permute.xlu0 %2235  ;;  %v5745_v31 = vpop.permute.xlu1 %2842 }
 0x512   :  { %2241 = vst.msk [vmem:[#allocation3 + $0x1a0] sm:$0xff] %vm1200_vm1, %v2236_v60  ;;  %v2849_v7 = vmul.f32 %v5745_v31, %v5668_v46  ;;  %v3009_v31 = vld [vmem:[#allocation3 + $0x130] sm:$0xff] }
 0x513   :  { %2943 = vrot.lane.b32.xlu1 %v2938_v17, %s4244_s7 }
 0x514   :  { %4156 = vset.pattern.permute.xlu1 %v4285_v35 }
 0x515   :  { %v2194_v45 = vpop.permute.xlu0 %2193  ;;  %v3030_v25 = vld [vmem:[#allocation3 + $0x1d8] sm:$0xff]  ;;  %v3024_v35 = vld [vmem:[#allocation3 + $0x1a8] sm:$0xff] }
 0x516   :  { %2198 = vst.msk [vmem:[#allocation3 + $0x198] sm:$0xff] %vm1200_vm1, %v2194_v45  ;;  %3695 = vmatprep.subr.mxu1 %v3030_v25  ;;  %v2411_v26 = vpop.permute.xlu1 %2410 }
 0x517   :  { %v2414_v12 = vmul.f32 %v2411_v26, %v5708_v57  ;;  %2533 = vrot.lane.b32.xlu1 %v2529_v13, %s4242_s5  ;;  %3696 = vmatpush3.msra.mxu1 %v3014_v54 }
 0x518   :  { %3697 = vmatprep.subr.mxu1 %v3029_v24 }
 0x519   :  { %v2762_v5 = vpop.permute.xlu0 %2761  ;;  %3698 = vmatpush3.msra.mxu1 %v3013_v15  ;;  %2419 = vrot.lane.b32.xlu0 %v2414_v12, %s4243_s6  ;;  %v3023_v25 = vld [vmem:[#allocation3 + $0x1a0] sm:$0xff] }
 0x51a   :  { %2766 = vst.msk [vmem:[#allocation3 + $0x278] sm:$0xff] %vm1200_vm1, %v2762_v5  ;;  %3699 = vmatprep.subr.mxu1 %v3028_v23  ;;  %v3007_v12 = vld [vmem:[#allocation3 + $0x120] sm:$0xff]  ;;  %v4287_v5 = vmov 112   ;;  %v2777_v23 = vmul.f32 %v5734_v48, %v5788_v40 }
 0x51b   :  { %2213 = vrot.lane.b32.xlu1 %v2209_v34, %s4242_s5  ;;  %3700 = vmatpush3.msra.mxu1 %v3012_v1  ;;  %v2367_v33 = vpop.permute.xlu1 %2366  ;;  %v3006_v34 = vld [vmem:[#allocation3 + $0x118] sm:$0xff] }
 0x51c   :  { %3701 = vmatprep.subr.mxu1 %v3027_v53  ;;  %v2370_v41 = vmul.f32 %v2367_v33, %v5708_v57 }
 0x51d   :  { %v2760_v30 = vpop.permute.xlu0 %2759  ;;  %3702 = vmatpush3.msra.mxu1 %v3011_v10  ;;  %2417 = vrot.lane.b32.xlu0 %v2413_v55, %s4243_s6  ;;  %v3022_v15 = vld [vmem:[#allocation3 + $0x198] sm:$0xff] }
 0x51e   :  { %2765 = vst.msk [vmem:[#allocation3 + $0x270] sm:$0xff] %vm1200_vm1, %v2760_v30  ;;  %3703 = vmatprep.subr.mxu1 %v3026_v22 }
 0x51f   :  { %2810 = vperm.xlu1 %4156, %v4637_v2   ;;  %3704 = vmatpush3.msra.mxu1 %v3010_v38 }
 0x520   :  { %v2775_v8 = vpop.permute.xlu1 %2774 }
 0x521   :  { %v2637_v43 = vpop.permute.xlu0 %2636  ;;  %2375 = vrot.lane.b32.xlu0 %v2370_v41, %s4242_s5  ;;  %v3050_v58 = vld [vmem:[#allocation3 + $0x278] sm:$0xff]  ;;  %v2778_v13 = vmul.f32 %v2775_v8, %v5782_v16  ;;  %v3020_v41 = vld [vmem:[#allocation3 + $0x188] sm:$0xff] }
 0x522   :  { %v2640_v14 = vmul.f32 %v2637_v43, %v5533_v47  ;;  %3726 = vmatpush3.msra.mxu0 %v3050_v58  ;;  %v4286_v47 = vmov 104   ;;  %v3004_v43 = vld [vmem:[#allocation3 + $0x108] sm:$0xff]  ;;  %v3019_v58 = vld [vmem:[#allocation3 + $0x180] sm:$0xff] }
 0x523   :  { %2806 = vperm.xlu1 %4156, %v4747_v29   ;;  %3727 = vmatprep.subr.mxu0 %v3065_v59  ;;  %v2951_v59 = vld [vmem:[%s5937_s3 + $0x10] sm:$0xff] }
 0x524   :  { %2642 = vst.msk [vmem:[#allocation3 + $0x248] sm:$0xff] %vm1200_vm1, %v2640_v14 }
 0x525   :  { %v2674_v20 = vpop.permute.xlu0 %2673  ;;  %v2363_v50 = vpop.permute.xlu1 %2362  ;;  %v3049_v36 = vld [vmem:[#allocation3 + $0x270] sm:$0xff] }
 0x526   :  { %2678 = vst.msk [vmem:[#allocation3 + $0x258] sm:$0xff] %vm1200_vm1, %v2674_v20  ;;  %v2369_v9 = vmul.f32 %v2363_v50, %v5722_v56  ;;  %3728 = vmatpush3.msra.mxu0 %v3049_v36  ;;  %v3003_v20 = vld [vmem:[#allocation3 + $0x100] sm:$0xff]  ;;  %v2963_v36 = vld [vmem:[%s5937_s3 + $0x70] sm:$0xff] }
 0x527   :  { %2855 = vrot.lane.b32.xlu1 %v2850_v49, %s4242_s5  ;;  %3729 = vmatprep.subr.mxu0 %v3064_v44  ;;  %v3063_v50 = vld [vmem:[#allocation3 + $0x2e0] sm:$0xff] }
 0x528   :  { %2373 = vrot.lane.b32.xlu0 %v2369_v9, %s4242_s5  ;;  %4157 = vset.pattern.permute.xlu1 %v4286_v47  ;;  %v3098_v9 = vld [vmem:[#allocation3 + $0x3f8] sm:$0xff] }
 0x529   :  { %v2922_v62 = vpop.permute.xlu0 %2921  ;;  %v2280_v3 = vpop.permute.xlu1 %2279  ;;  %v3082_v47 = vld [vmem:[#allocation3 + $0x378] sm:$0xff] }
 0x52a   :  { %2926 = vst.msk [vmem:[#allocation3 + $0x2b8] sm:$0xff] %vm1200_vm1, %v2922_v62  ;;  %2285 = vst.msk [vmem:[#allocation3 + $0x1b0] sm:$0xff] %vm1200_vm1, %v2280_v3  ;;  %v3097_v62 = vld [vmem:[#allocation3 + $0x3f0] sm:$0xff]  ;;  %v3062_v3 = vld [vmem:[#allocation3 + $0x2d8] sm:$0xff] }
 0x52b   :  { %2853 = vrot.lane.b32.xlu1 %v2849_v7, %s4242_s5 }
 0x52d   :  { %v2920_v39 = vpop.permute.xlu0 %2919  ;;  %v2731_v51 = vpop.permute.xlu1 %2730  ;;  %v3046_v37 = vld [vmem:[#allocation3 + $0x258] sm:$0xff] }
 0x52e   :  { %2925 = vst.msk [vmem:[#allocation3 + $0x2b0] sm:$0xff] %vm1200_vm1, %v2920_v39  ;;  %v2734_v63 = vmul.f32 %v2731_v51, %v5782_v16  ;;  %v3096_v39 = vld [vmem:[#allocation3 + $0x3e8] sm:$0xff] }
 0x52f   :  { %2330 = vperm.xlu1 %4157, %v4637_v2   ;;  %v2962_v51 = vld [vmem:[%s5937_s3 + $0x68] sm:$0xff] }
 0x530   :  { %2739 = vrot.lane.b32.xlu0 %v2734_v63, %s4243_s6  ;;  %v3080_v63 = vld [vmem:[#allocation3 + $0x368] sm:$0xff] }
 0x531   :  { %v2878_v19 = vpop.permute.xlu0 %2877  ;;  %v2727_v17 = vpop.permute.xlu1 %2726  ;;  %v3025_v60 = vld [vmem:[#allocation3 + $0x1b0] sm:$0xff] }
 0x532   :  { %2882 = vst.msk [vmem:[#allocation3 + $0x2a8] sm:$0xff] %vm1200_vm1, %v2878_v19  ;;  %v2733_v6 = vmul.f32 %v2727_v17, %v5788_v40  ;;  %3705 = vmatprep.subr.mxu1 %v3025_v60  ;;  %v3061_v19 = vld [vmem:[#allocation3 + $0x2d0] sm:$0xff]  ;;  %v2956_v17 = vld [vmem:[%s5937_s3 + $0x38] sm:$0xff] }
 0x533   :  { %2326 = vperm.xlu1 %4157, %v4747_v29   ;;  %3706 = vmatpush3.msra.mxu1 %v3009_v31  ;;  %v3079_v31 = vld [vmem:[#allocation3 + $0x360] sm:$0xff] }
 0x534   :  { %3707 = vmatprep.subr.mxu1 %v3024_v35  ;;  %2737 = vrot.lane.b32.xlu0 %v2733_v6, %s4243_s6  ;;  %v3095_v6 = vld [vmem:[#allocation3 + $0x3e0] sm:$0xff] }
 0x535   :  { %v2797_v45 = vpop.permute.xlu0 %2796  ;;  %3708 = vmatpush3.msra.mxu1 %v3008_v11  ;;  %v3094_v11 = vld [vmem:[#allocation3 + $0x3d8] sm:$0xff] }
 0x536   :  { %v2800_v26 = vmul.f32 %v2797_v45, %v5560_v52  ;;  %3709 = vmatprep.subr.mxu1 %v3023_v25  ;;  %v2687_v54 = vpop.permute.xlu1 %2686  ;;  %v3078_v45 = vld [vmem:[#allocation3 + $0x358] sm:$0xff] }
 0x537   :  { %v2690_v24 = vmul.f32 %v2687_v54, %v5782_v16  ;;  %2783 = vrot.lane.b32.xlu1 %v2778_v13, %s4244_s7  ;;  %3710 = vmatpush3.msra.mxu1 %v3007_v12  ;;  %v3093_v54 = vld [vmem:[#allocation3 + $0x3d0] sm:$0xff]  ;;  %v3060_v12 = vld [vmem:[#allocation3 + $0x2c8] sm:$0xff] }
 0x538   :  { %2802 = vst.msk [vmem:[#allocation3 + $0x288] sm:$0xff] %vm1200_vm1, %v2800_v26  ;;  %3711 = vmatprep.subr.mxu1 %v3022_v15  ;;  %4158 = vset.pattern.permute.xlu1 %v4287_v5  ;;  %v3092_v5 = vld [vmem:[#allocation3 + $0x3c8] sm:$0xff] }
 0x539   :  { %v2556_v1 = vpop.permute.xlu0 %2555  ;;  %3712 = vmatpush3.msra.mxu1 %v3006_v34  ;;  %2695 = vrot.lane.b32.xlu0 %v2690_v24, %s4242_s5  ;;  %v3077_v24 = vld [vmem:[#allocation3 + $0x350] sm:$0xff]  ;;  %v3044_v34 = vld [vmem:[#allocation3 + $0x248] sm:$0xff] }
 0x53a   :  { %2561 = vst.msk [vmem:[#allocation3 + $0x220] sm:$0xff] %vm1200_vm1, %v2556_v1  ;;  %v2683_v52 = vpop.permute.xlu1 %2682 }
 0x53b   :  { %2781 = vrot.lane.b32.xlu1 %v2777_v23, %s4244_s7  ;;  %v2689_v30 = vmul.f32 %v2683_v52, %v5788_v40  ;;  %v3059_v23 = vld [vmem:[#allocation3 + $0x2c0] sm:$0xff] }
 0x53d   :  { %v2473_v55 = vpop.permute.xlu0 %2472 }
 0x53e   :  { %v2479_v33 = vmul.f32 %v2473_v55, %v5585_v28  ;;  %v2192_v53 = vpop.permute.xlu1 %2191  ;;  %v3091_v55 = vld [vmem:[#allocation3 + $0x3c0] sm:$0xff] }
 0x53f   :  { %2197 = vst.msk [vmem:[#allocation3 + $0x190] sm:$0xff] %vm1200_vm1, %v2192_v53  ;;  %2650 = vperm.xlu1 %4158, %v4637_v2   ;;  %v3005_v2 = vld [vmem:[#allocation3 + $0x110] sm:$0xff]  ;;  %v3075_v53 = vld [vmem:[#allocation3 + $0x340] sm:$0xff] }
 0x540   :  { %2481 = vst.msk [vmem:[#allocation3 + $0x200] sm:$0xff] %vm1200_vm1, %v2479_v33  ;;  %v3058_v33 = vld [vmem:[#allocation3 + $0x2b8] sm:$0xff] }
 0x541   :  { %v2832_v48 = vpop.permute.xlu0 %2831 }
 0x542   :  { %2837 = vst.msk [vmem:[#allocation3 + $0x290] sm:$0xff] %vm1200_vm1, %v2832_v48  ;;  %v2718_v10 = vpop.permute.xlu1 %2717 }
 0x543   :  { %2722 = vst.msk [vmem:[#allocation3 + $0x268] sm:$0xff] %vm1200_vm1, %v2718_v10  ;;  %2646 = vperm.xlu1 %4158, %v4747_v29  }
 0x545   :  { %v2624_v22 = vpop.permute.xlu0 %2623 }
 0x546   :  { %2628 = vst.msk [vmem:[#allocation3 + $0x4f8] sm:$0xff] %vm1200_vm1, %v2624_v22  ;;  %v2716_v28 = vpop.permute.xlu1 %2715  ;;  %v3021_v38 = vld [vmem:[#allocation3 + $0x190] sm:$0xff]  ;;  %v3074_v22 = vld [vmem:[#allocation3 + $0x338] sm:$0xff] }
 0x547   :  { %2721 = vst.msk [vmem:[#allocation3 + $0x260] sm:$0xff] %vm1200_vm1, %v2716_v28  ;;  %2693 = vrot.lane.b32.xlu1 %v2689_v30, %s4242_s5  ;;  %3713 = vmatprep.subr.mxu1 %v3021_v38  ;;  %v3090_v30 = vld [vmem:[#allocation3 + $0x3b8] sm:$0xff]  ;;  %v3057_v28 = vld [vmem:[#allocation3 + $0x2b0] sm:$0xff] }
 0x548   :  { %3714 = vmatpush3.msra.mxu1 %v3005_v2 }
 0x549   :  { %v2622_v8 = vpop.permute.xlu0 %2621  ;;  %3715 = vmatprep.subr.mxu1 %v3020_v41  ;;  %v3089_v41 = vld [vmem:[#allocation3 + $0x3b0] sm:$0xff] }
 0x54a   :  { %2627 = vst.msk [vmem:[#allocation3 + $0x4f0] sm:$0xff] %vm1200_vm1, %v2622_v8  ;;  %3716 = vmatpush3.msra.mxu1 %v3004_v43  ;;  %v2633_v29 = vpop.permute.xlu1 %2632  ;;  %v3048_v14 = vld [vmem:[#allocation3 + $0x268] sm:$0xff] }
 0x54b   :  { %v2639_v49 = vmul.f32 %v2633_v29, %v5541_v18  ;;  %3717 = vmatprep.subr.mxu1 %v3019_v58  ;;  %3730 = vmatpush3.msra.mxu0 %v3048_v14  ;;  %v3056_v43 = vld [vmem:[#allocation3 + $0x2a8] sm:$0xff]  ;;  %v3073_v29 = vld [vmem:[#allocation3 + $0x330] sm:$0xff] }
 0x54c   :  { %3718 = vmatpush3.msra.mxu1 %v3003_v20  ;;  %3731 = vmatprep.subr.mxu0 %v3063_v50  ;;  %v3088_v14 = vld [vmem:[#allocation3 + $0x3a8] sm:$0xff]  ;;  %v3087_v50 = vld [vmem:[#allocation3 + $0x3a0] sm:$0xff] }
 0x54d   :  { %2641 = vst.msk [vmem:[#allocation3 + $0x240] sm:$0xff] %vm1200_vm1, %v2639_v49  ;;  %v2580_v44 = vpop.permute.xlu0 %2579  ;;  %3763 = vmatprep.subr.mxu1 %v3098_v9  ;;  %3287 = vmatmul.mubr.f32.vlgmr.msra.gmra.mxu1 %v2951_v59  ;;  %v3072_v59 = vld [vmem:[#allocation3 + $0x328] sm:$0xff]  ;;  %v3086_v9 = vld [vmem:[#allocation3 + $0x398] sm:$0xff] }
 0x54e   :  { %2584 = vst.msk [vmem:[#allocation3 + $0x4e8] sm:$0xff] %vm1200_vm1, %v2580_v44  ;;  %3764 = vmatpush3.msra.mxu1 %v3082_v47  ;;  %v2672_v18 = vpop.permute.xlu1 %2671  ;;  %v3047_v7 = vld [vmem:[#allocation3 + $0x260] sm:$0xff]  ;;  %3291 = vmatprep.mubr.f32.mxu1 %v2963_v36  ;;  %v3070_v44 = vld [vmem:[#allocation3 + $0x318] sm:$0xff] }
 0x54f   :  { %2677 = vst.msk [vmem:[#allocation3 + $0x250] sm:$0xff] %vm1200_vm1, %v2672_v18  ;;  %3732 = vmatpush3.msra.mxu0 %v3047_v7  ;;  %3765 = vmatprep.subr.mxu1 %v3097_v62  ;;  %v3085_v18 = vld [vmem:[#allocation3 + $0x390] sm:$0xff] }
 0x550   :  { %3733 = vmatprep.subr.mxu0 %v3062_v3  ;;  %3766 = vmatpush3.msra.mxu1 %v3081_v32  ;;  %v3069_v62 = vld [vmem:[#allocation3 + $0x310] sm:$0xff]  ;;  %v3084_v3 = vld [vmem:[#allocation3 + $0x388] sm:$0xff] }
 0x551   :  { %3734 = vmatpush3.msra.mxu0 %v3046_v37  ;;  %3767 = vmatprep.subr.mxu1 %v3096_v39  ;;  %v3068_v32 = vld [vmem:[#allocation3 + $0x308] sm:$0xff] }
 0x552   :  { %3768 = vmatpush3.msra.mxu1 %v3080_v63  ;;  %v2602_v60 = vpop.permute.xlu1 %2601  ;;  %3735 = vmatprep.subr.mxu0 %v3061_v19  ;;  %v2955_v63 = vld [vmem:[%s5937_s3 + $0x30] sm:$0xff]  ;;  %v3067_v19 = vld [vmem:[#allocation3 + $0x300] sm:$0xff] }
 0x553   :  { %2606 = vst.msk [vmem:[#allocation3 + $0x238] sm:$0xff] %vm1200_vm1, %v2602_v60  ;;  %3769 = vmatprep.subr.mxu1 %v3095_v6  ;;  %3292 = vmatmul.mubr.f32.gmra.mxu1 %v2962_v51  ;;  %v3083_v51 = vld [vmem:[#allocation3 + $0x380] sm:$0xff] }
 0x554   :  { %v2491_v35 = vpop.permute.xlu0 %2490  ;;  %3770 = vmatpush3.msra.mxu1 %v3079_v31  ;;  %3436 = vmatprep.mubr.f32.mxu1 %v2956_v17  ;;  %v3043_v52 = vld [vmem:[#allocation3 + $0x240] sm:$0xff]  ;;  %v2967_v17 = vld [vmem:[%s5937_s3 + $0x90] sm:$0xff]  ;;  %v2966_v31 = vld [vmem:[%s5937_s3 + $0x88] sm:$0xff] }
 0x555   :  { %v2494_v13 = vmul.f32 %v2491_v35, %v6053_v61  ;;  %3771 = vmatprep.subr.mxu1 %v3094_v11  ;;  %v3076_v61 = vld [vmem:[#allocation3 + $0x348] sm:$0xff]  ;;  %v2959_v35 = vld [vmem:[%s5937_s3 + $0x50] sm:$0xff] }
 0x556   :  { %3772 = vmatpush3.msra.mxu1 %v3078_v45  ;;  %v2600_v25 = vpop.permute.xlu1 %2599  ;;  %v3045_v26 = vld [vmem:[#allocation3 + $0x250] sm:$0xff] }
 0x557   :  { %2496 = vst.msk [vmem:[#allocation3 + $0x4c8] sm:$0xff] %vm1200_vm1, %v2494_v13  ;;  %2605 = vst.msk [vmem:[#allocation3 + $0x230] sm:$0xff] %vm1200_vm1, %v2600_v25  ;;  %3736 = vmatpush3.msra.mxu0 %v3045_v26  ;;  %3773 = vmatprep.subr.mxu1 %v3093_v54 }
 0x558   :  { %v2258_v15 = vpop.permute.xlu0 %2257  ;;  %3737 = vmatprep.subr.mxu0 %v3060_v12  ;;  %3774 = vmatpush3.msra.mxu1 %v3077_v24  ;;  %v3053_v12 = vld [vmem:[#allocation3 + $0x290] sm:$0xff] }
 0x559   :  { %2263 = vst.msk [vmem:[#allocation3 + $0x460] sm:$0xff] %vm1200_vm1, %v2258_v15  ;;  %3738 = vmatpush3.msra.mxu0 %v3044_v34  ;;  %3775 = vmatprep.subr.mxu1 %v3092_v5  ;;  %v3052_v5 = vld [vmem:[#allocation3 + $0x288] sm:$0xff] }
 0x55a   :  { %3776 = vmatpush3.msra.mxu1 %v3076_v61  ;;  %v2558_v1 = vpop.permute.xlu1 %2557  ;;  %3739 = vmatprep.subr.mxu0 %v3059_v23  ;;  %v3042_v10 = vld [vmem:[#allocation3 + $0x238] sm:$0xff] }
 0x55b   :  { %2562 = vst.msk [vmem:[#allocation3 + $0x228] sm:$0xff] %vm1200_vm1, %v2558_v1  ;;  %3740 = vmatpush3.msra.mxu0 %v3043_v52  ;;  %3777 = vmatprep.subr.mxu1 %v3091_v55  ;;  %v2953_v1 = vld [vmem:[%s5937_s3 + $0x20] sm:$0xff] }
 0x55c   :  { %v2536_v48 = vpop.permute.xlu0 %2535  ;;  %3741 = vmatprep.subr.mxu0 %v3058_v33  ;;  %3778 = vmatpush3.msra.mxu1 %v3075_v53  ;;  %v3035_v55 = vld [vmem:[#allocation3 + $0x200] sm:$0xff]  ;;  %v3130_v53 = vld [vmem:[#allocation3 + $0x4f8] sm:$0xff] }
 0x55d   :  { %2540 = vst.msk [vmem:[#allocation3 + $0x4d8] sm:$0xff] %vm1200_vm1, %v2536_v48  ;;  %3742 = vmatpush3.msra.mxu0 %v3042_v10  ;;  %3779 = vmatprep.subr.mxu1 %v3090_v30  ;;  %v2965_v33 = vld [vmem:[%s5937_s3 + $0x80] sm:$0xff]  ;;  %v3129_v10 = vld [vmem:[#allocation3 + $0x4f0] sm:$0xff]  ;;  %v2964_v30 = vld [vmem:[%s5937_s3 + $0x78] sm:$0xff] }
 0x55e   :  { %3780 = vmatpush3.msra.mxu1 %v3074_v22  ;;  %v2477_v38 = vpop.permute.xlu1 %2476  ;;  %3743 = vmatprep.subr.mxu0 %v3057_v28  ;;  %v3041_v2 = vld [vmem:[#allocation3 + $0x230] sm:$0xff] }
 0x55f   :  { %v2480_v8 = vmul.f32 %v2477_v38, %v5627_v0  ;;  %3744 = vmatpush3.msra.mxu0 %v3041_v2  ;;  %3781 = vmatprep.subr.mxu1 %v3089_v41  ;;  %v3071_v0 = vld [vmem:[#allocation3 + $0x320] sm:$0xff]  ;;  %v2958_v38 = vld [vmem:[%s5937_s3 + $0x48] sm:$0xff] }
 0x560   :  { %v2216_v58 = vpop.permute.xlu0 %2215  ;;  %3745 = vmatprep.subr.mxu0 %v3056_v43  ;;  %3782 = vmatpush3.msra.mxu1 %v3073_v29  ;;  %v3128_v41 = vld [vmem:[#allocation3 + $0x4e8] sm:$0xff] }
 0x561   :  { %2482 = vst.msk [vmem:[#allocation3 + $0x208] sm:$0xff] %vm1200_vm1, %v2480_v8  ;;  %2220 = vst.msk [vmem:[#allocation3 + $0x458] sm:$0xff] %vm1200_vm1, %v2216_v58  ;;  %3783 = vmatprep.subr.mxu1 %v3088_v14 }
 0x562   :  { %3784 = vmatpush3.msra.mxu1 %v3072_v59  ;;  %v2876_v49 = vpop.permute.xlu1 %2875  ;;  %v3040_v20 = vld [vmem:[#allocation3 + $0x228] sm:$0xff] }
 0x563   :  { %2881 = vst.msk [vmem:[#allocation3 + $0x2a0] sm:$0xff] %vm1200_vm1, %v2876_v49  ;;  %3746 = vmatpush3.msra.mxu0 %v3040_v20  ;;  %3785 = vmatprep.subr.mxu1 %v3087_v50  ;;  %v3111_v20 = vld [vmem:[#allocation3 + $0x460] sm:$0xff] }
 0x564   :  { %v2942_v36 = vpop.permute.xlu0 %2941  ;;  %3786 = vmatpush3.msra.mxu1 %v3071_v0  ;;  %v3126_v50 = vld [vmem:[#allocation3 + $0x4d8] sm:$0xff] }
 0x565   :  { %2947 = vst.msk [vmem:[#allocation3 + $0x570] sm:$0xff] %vm1200_vm1, %v2942_v36  ;;  %3787 = vmatprep.subr.mxu1 %v3086_v9 }
 0x566   :  { %3788 = vmatpush3.msra.mxu1 %v3070_v44  ;;  %v2793_v47 = vpop.permute.xlu1 %2792 }
 0x567   :  { %v2799_v7 = vmul.f32 %v2793_v47, %v5569_v27  ;;  %3789 = vmatprep.subr.mxu1 %v3085_v18  ;;  %v3039_v27 = vld [vmem:[#allocation3 + $0x220] sm:$0xff] }
 0x568   :  { %3790 = vmatpush3.msra.mxu1 %v3069_v62  ;;  %v3036_v61 = vld [vmem:[#allocation3 + $0x208] sm:$0xff]  ;;  %v3110_v0 = vld [vmem:[#allocation3 + $0x458] sm:$0xff] }
 0x569   :  { %2801 = vst.msk [vmem:[#allocation3 + $0x280] sm:$0xff] %vm1200_vm1, %v2799_v7  ;;  %3791 = vmatprep.subr.mxu1 %v3084_v3 }
 0x56a   :  { %3792 = vmatpush3.msra.mxu1 %v3068_v32  ;;  %v2834_v37 = vpop.permute.xlu1 %2833  ;;  %v3055_v39 = vld [vmem:[#allocation3 + $0x2a0] sm:$0xff] }
 0x56b   :  { %2838 = vst.msk [vmem:[#allocation3 + $0x298] sm:$0xff] %vm1200_vm1, %v2834_v37  ;;  %3747 = vmatprep.subr.mxu0 %v3055_v39  ;;  %3793 = vmatprep.subr.mxu1 %v3083_v51 }
 0x56c   :  { %v2900_v60 = vpop.permute.xlu0 %2899  ;;  %3748 = vmatpush3.msra.mxu0 %v3039_v27  ;;  %3794 = vmatpush3.msra.mxu1 %v3067_v19  ;;  %v3145_v47 = vld [vmem:[#allocation3 + $0x570] sm:$0xff]  ;;  %v3124_v27 = vld [vmem:[#allocation3 + $0x4c8] sm:$0xff] }
 0x56d   :  { %2904 = vst.msk [vmem:[#allocation3 + $0x568] sm:$0xff] %vm1200_vm1, %v2900_v60  ;;  %3437 = vmatmul.mubr.f32.vlgmr.msra.gmra.mxu1 %v2955_v63 }
 0x56e   :  { %v2514_v6 = vpop.permute.xlu1 %2513  ;;  %3441 = vmatprep.mubr.f32.mxu1 %v2967_v17 }
 0x56f   :  { %2518 = vst.msk [vmem:[#allocation3 + $0x218] sm:$0xff] %vm1200_vm1, %v2514_v6  ;;  %v3107_v6 = vld [vmem:[#allocation3 + $0x440] sm:$0xff] }
 0x570   :  { %v2898_v11 = vpop.permute.xlu0 %2897  ;;  %v3051_v23 = vld [vmem:[#allocation3 + $0x280] sm:$0xff] }
 0x571   :  { %2903 = vst.msk [vmem:[#allocation3 + $0x560] sm:$0xff] %vm1200_vm1, %v2898_v11  ;;  %3442 = vmatmul.mubr.f32.gmra.mxu1 %v2966_v31 }
 0x572   :  { %v2512_v13 = vpop.permute.xlu1 %2511  ;;  %v3054_v45 = vld [vmem:[#allocation3 + $0x298] sm:$0xff]  ;;  %3896 = vmatprep.mubr.f32.mxu1 %v2959_v35 }
 0x573   :  { %2517 = vst.msk [vmem:[#allocation3 + $0x210] sm:$0xff] %vm1200_vm1, %v2512_v13  ;;  %3749 = vmatprep.subr.mxu0 %v3054_v45  ;;  %v3105_v45 = vld [vmem:[#allocation3 + $0x430] sm:$0xff] }
 0x574   :  { %v2464_v25 = vpop.permute.xlu0 %2463  ;;  %v3144_v3 = vld [vmem:[#allocation3 + $0x568] sm:$0xff] }
 0x575   :  { %2468 = vst.msk [vmem:[#allocation3 + $0x4b8] sm:$0xff] %vm1200_vm1, %v2464_v25 }
 0x576   :  { %v2304_v26 = vpop.permute.xlu1 %2303  ;;  %v3038_v54 = vld [vmem:[#allocation3 + $0x218] sm:$0xff] }
 0x577   :  { %2308 = vst.msk [vmem:[#allocation3 + $0x478] sm:$0xff] %vm1200_vm1, %v2304_v26  ;;  %3750 = vmatpush3.msra.mxu0 %v3038_v54  ;;  %v3104_v26 = vld [vmem:[#allocation3 + $0x428] sm:$0xff] }
 0x578   :  { %v2462_v24 = vpop.permute.xlu0 %2461  ;;  %3751 = vmatprep.subr.mxu0 %v3053_v12  ;;  %v3143_v37 = vld [vmem:[#allocation3 + $0x560] sm:$0xff] }
 0x579   :  { %2467 = vst.msk [vmem:[#allocation3 + $0x4b0] sm:$0xff] %vm1200_vm1, %v2462_v24  ;;  %v3103_v24 = vld [vmem:[#allocation3 + $0x420] sm:$0xff] }
 0x57a   :  { %v2302_v15 = vpop.permute.xlu1 %2301  ;;  %v3037_v34 = vld [vmem:[#allocation3 + $0x210] sm:$0xff] }
 0x57b   :  { %2307 = vst.msk [vmem:[#allocation3 + $0x470] sm:$0xff] %vm1200_vm1, %v2302_v15  ;;  %3752 = vmatpush3.msra.mxu0 %v3037_v34 }
 0x57c   :  { %3753 = vmatprep.subr.mxu0 %v3052_v5  ;;  %v3122_v31 = vld [vmem:[#allocation3 + $0x4b8] sm:$0xff] }
 0x57d   :  { %3754 = vmatpush3.msra.mxu0 %v3036_v61 }
 0x57e   :  { %v2260_v52 = vpop.permute.xlu1 %2259  ;;  %3755 = vmatprep.subr.mxu0 %v3051_v23  ;;  %v3114_v48 = vld [vmem:[#allocation3 + $0x478] sm:$0xff] }
 0x57f   :  { %2264 = vst.msk [vmem:[#allocation3 + $0x468] sm:$0xff] %vm1200_vm1, %v2260_v52  ;;  %3756 = vmatpush3.msra.mxu0 %v3035_v55  ;;  %v3102_v23 = vld [vmem:[#allocation3 + $0x418] sm:$0xff]  ;;  %v3101_v55 = vld [vmem:[#allocation3 + $0x410] sm:$0xff] }
 0x580   :  { %3801 = vmatprep.subr.mxu0 %v3130_v53  ;;  %3362 = vmatmul.mubr.f32.vlgmr.msra.gmra.mxu0 %v2953_v1  ;;  %v3121_v35 = vld [vmem:[#allocation3 + $0x4b0] sm:$0xff] }
 0x581   :  { %3802 = vmatpush3.msra.mxu0 %v3114_v48  ;;  %3366 = vmatprep.mubr.f32.mxu0 %v2965_v33 }
 0x582   :  { %v2171_v22 = vpop.permute.xlu1 %2170  ;;  %3803 = vmatprep.subr.mxu0 %v3129_v10  ;;  %v3113_v28 = vld [vmem:[#allocation3 + $0x470] sm:$0xff] }
 0x583   :  { %v2174_v2 = vmul.f32 %v2171_v22, %v5655_v42  ;;  %3804 = vmatpush3.msra.mxu0 %v3113_v28  ;;  %v3100_v22 = vld [vmem:[#allocation3 + $0x408] sm:$0xff] }
 0x584   :  { %3805 = vmatprep.subr.mxu0 %v3128_v41  ;;  %3367 = vmatmul.mubr.f32.gmra.mxu0 %v2964_v30  ;;  %v2969_v41 = vld [vmem:[%s5937_s3 + $0xa0] sm:$0xff] }
 0x585   :  { %2176 = vst.msk [vmem:[#allocation3 + $0x448] sm:$0xff] %vm1200_vm1, %v2174_v2  ;;  %3511 = vmatprep.mubr.f32.mxu0 %v2958_v38  ;;  %v2957_v38 = vld [vmem:[%s5937_s3 + $0x40] sm:$0xff] }
 0x586   :  { %v2578_v8 = vpop.permute.xlu1 %2577  ;;  %v3112_v43 = vld [vmem:[#allocation3 + $0x468] sm:$0xff]  ;;  %v3099_v2 = vld [vmem:[#allocation3 + $0x400] sm:$0xff] }
 0x587   :  { %2583 = vst.msk [vmem:[#allocation3 + $0x4e0] sm:$0xff] %vm1200_vm1, %v2578_v8  ;;  %3806 = vmatpush3.msra.mxu0 %v3112_v43 }
 0x58a   :  { %v2487_v29 = vpop.permute.xlu1 %2486 }
 0x58b   :  { %v2493_v58 = vmul.f32 %v2487_v29, %v6054_v4  ;;  %v2420_v14 = vpop.permute.xlu0 %2419 }
 0x58c   :  { %2424 = vst.msk [vmem:[#allocation3 + $0x4a8] sm:$0xff] %vm1200_vm1, %v2420_v14  ;;  %v3108_v19 = vld [vmem:[#allocation3 + $0x448] sm:$0xff] }
 0x58d   :  { %2495 = vst.msk [vmem:[#allocation3 + $0x4c0] sm:$0xff] %vm1200_vm1, %v2493_v58  ;;  %v2968_v58 = vld [vmem:[%s5937_s3 + $0x98] sm:$0xff] }
 0x58e   :  { %v2944_v42 = vpop.permute.xlu1 %2943  ;;  %v3127_v59 = vld [vmem:[#allocation3 + $0x4e0] sm:$0xff] }
 0x58f   :  { %2948 = vst.msk [vmem:[#allocation3 + $0x578] sm:$0xff] %vm1200_vm1, %v2944_v42  ;;  %v2418_v49 = vpop.permute.xlu0 %2417  ;;  %3807 = vmatprep.subr.mxu0 %v3127_v59 }
 0x590   :  { %2423 = vst.msk [vmem:[#allocation3 + $0x4a0] sm:$0xff] %vm1200_vm1, %v2418_v49  ;;  %3808 = vmatpush3.msra.mxu0 %v3111_v20 }
 0x591   :  { %3809 = vmatprep.subr.mxu0 %v3126_v50 }
 0x592   :  { %v2534_v36 = vpop.permute.xlu1 %2533  ;;  %3810 = vmatpush3.msra.mxu0 %v3110_v0 }
 0x593   :  { %2539 = vst.msk [vmem:[#allocation3 + $0x4d0] sm:$0xff] %vm1200_vm1, %v2534_v36  ;;  %v2376_v4 = vpop.permute.xlu0 %2375  ;;  %v3120_v25 = vld [vmem:[#allocation3 + $0x4a8] sm:$0xff] }
 0x594   :  { %2380 = vst.msk [vmem:[#allocation3 + $0x498] sm:$0xff] %vm1200_vm1, %v2376_v4  ;;  %v2970_v4 = vld [vmem:[%s5937_s3 + $0xa8] sm:$0xff]  ;;  %s4288_s3 = smov [#allocation4]  }
 0x595   :  { %s3608_s12 = sshll.u32 %s4288_s3, 4  ;;  %s3609_s12 = int_to_ptr.vmem [resolvable:$true] %s3608_s12 }
 0x596   :  { %v2214_v9 = vpop.permute.xlu1 %2213  ;;  %v3146_v44 = vld [vmem:[#allocation3 + $0x578] sm:$0xff]  ;;  %s4173_s13 = scalar_lea.vmem %s3609_s12, 256  ;;  %p4178_p1 = scmp.lt.s32.totalorder %s3609_s12, %s3609_s12 }
 0x597   :  { %2219 = vst.msk [vmem:[#allocation3 + $0x450] sm:$0xff] %vm1200_vm1, %v2214_v9  ;;  %3864 = vmatprep.subr.mxu1 %v3146_v44  ;;  %v3119_v54 = vld [vmem:[#allocation3 + $0x4a0] sm:$0xff]  ;;  %v3681_v9 = vpop.f32.mrf.mxu0  ;;  %p4174_p0 = scmp.ne.s32.totalorder %s3609_s12, %s4173_s13  ;;  %p4179_p2 = scmp.lt.s32.totalorder %s4173_s13, %s4173_s13 }
 0x598   :  { %3865 = vmatpush3.msra.mxu1 %v3146_v44 }
 0x599   :  { %3866 = vmatprep.subr.mxu1 %v3145_v47  ;;  %v3682_v44 = vpop.f32.mrf.mxu0  ;;  %p4180_p3 = por %p4179_p2, %p4178_p1 }
 0x59a   :  { %v2374_v18 = vpop.permute.xlu0 %2373  ;;  %3867 = vmatpush3.msra.mxu1 %v3145_v47  ;;  %v2811_v7 = vpop.permute.xlu1 %2810  ;;  %v3125_v62 = vld [vmem:[#allocation3 + $0x4d0] sm:$0xff] }
 0x59b   :  { %2379 = vst.msk [vmem:[#allocation3 + $0x490] sm:$0xff] %vm1200_vm1, %v2374_v18  ;;  %v2814_v32 = vmul.f32 %v2811_v7, %v5687_v21  ;;  %3811 = vmatprep.subr.mxu0 %v3125_v62  ;;  %3868 = vmatprep.subr.mxu1 %v3144_v3  ;;  %v3123_v21 = vld [vmem:[#allocation3 + $0x4c0] sm:$0xff]  ;;  %v3118_v61 = vld [vmem:[#allocation3 + $0x498] sm:$0xff]  ;;  %v3684_v47 = vpop.f32.mrf.mxu0  ;;  %p4181_p4 = pnand %p4180_p3, %p4174_p0 }
 0x59c   :  { %3869 = vmatpush3.msra.mxu1 %v3144_v3 }
 0x59d   :  { %2816 = vst.msk [vmem:[#allocation3 + $0x548] sm:$0xff] %vm1200_vm1, %v2814_v32  ;;  %3870 = vmatprep.subr.mxu1 %v3143_v37  ;;  %v3685_v7 = vpop.f32.mrf.mxu0 }
 0x59e   :  { %3871 = vmatpush3.msra.mxu1 %v3143_v37  ;;  %v2807_v39 = vpop.permute.xlu1 %2806  ;;  %v3109_v51 = vld [vmem:[#allocation3 + $0x450] sm:$0xff] }
 0x59f   :  { %v2813_v63 = vmul.f32 %v2807_v39, %v5668_v46  ;;  %3812 = vmatpush3.msra.mxu0 %v3109_v51  ;;  %v3106_v46 = vld [vmem:[#allocation3 + $0x438] sm:$0xff] }
 0x5a0   :  { %3813 = vmatprep.subr.mxu0 %v3124_v27 }
 0x5a1   :  { %2815 = vst.msk [vmem:[#allocation3 + $0x540] sm:$0xff] %vm1200_vm1, %v2813_v63  ;;  %3814 = vmatpush3.msra.mxu0 %v3108_v19 }
 0x5a2   :  { %v2740_v17 = vpop.permute.xlu0 %2739  ;;  %v2856_v60 = vpop.permute.xlu1 %2855  ;;  %3815 = vmatprep.subr.mxu0 %v3123_v21  ;;  %v3117_v1 = vld [vmem:[#allocation3 + $0x490] sm:$0xff] }
 0x5a3   :  { %2744 = vst.msk [vmem:[#allocation3 + $0x528] sm:$0xff] %vm1200_vm1, %v2740_v17  ;;  %2860 = vst.msk [vmem:[#allocation3 + $0x558] sm:$0xff] %vm1200_vm1, %v2856_v60  ;;  %3816 = vmatpush3.msra.mxu0 %v3107_v6  ;;  %v3686_v60 = vadd.f32 %v3685_v7, %v3684_v47 }
 0x5a4   :  { %3817 = vmatprep.subr.mxu0 %v3122_v31 }
 0x5a5   :  { %3818 = vmatpush3.msra.mxu0 %v3106_v46  ;;  %v3683_v46 = vadd.f32 %v3682_v44, %v3681_v9 }
 0x5a6   :  { %v2738_v11 = vpop.permute.xlu0 %2737  ;;  %v2854_v13 = vpop.permute.xlu1 %2853  ;;  %3819 = vmatprep.subr.mxu0 %v3121_v35 }
 0x5a7   :  { %2743 = vst.msk [vmem:[#allocation3 + $0x520] sm:$0xff] %vm1200_vm1, %v2738_v11  ;;  %2859 = vst.msk [vmem:[#allocation3 + $0x550] sm:$0xff] %vm1200_vm1, %v2854_v13  ;;  %3820 = vmatpush3.msra.mxu0 %v3105_v45 }
 0x5a8   :  { %3821 = vmatprep.subr.mxu0 %v3120_v25  ;;  %v3139_v10 = vld [vmem:[#allocation3 + $0x540] sm:$0xff] }
 0x5a9   :  { %3822 = vmatpush3.msra.mxu0 %v3104_v26 }
 0x5aa   :  { %v2331_v12 = vpop.permute.xlu1 %2330  ;;  %3823 = vmatprep.subr.mxu0 %v3119_v54  ;;  %v3142_v15 = vld [vmem:[#allocation3 + $0x558] sm:$0xff]  ;;  %v3136_v49 = vld [vmem:[#allocation3 + $0x528] sm:$0xff] }
 0x5ab   :  { %v2334_v34 = vmul.f32 %v2331_v12, %v5708_v57  ;;  %v2696_v5 = vpop.permute.xlu0 %2695  ;;  %3824 = vmatpush3.msra.mxu0 %v3103_v24  ;;  %3872 = vmatprep.subr.mxu1 %v3142_v15  ;;  %v3140_v57 = vld [vmem:[#allocation3 + $0x548] sm:$0xff] }
 0x5ac   :  { %2700 = vst.msk [vmem:[#allocation3 + $0x518] sm:$0xff] %vm1200_vm1, %v2696_v5  ;;  %3825 = vmatprep.subr.mxu0 %v3118_v61  ;;  %3873 = vmatpush3.msra.mxu1 %v3142_v15 }
 0x5ad   :  { %2336 = vst.msk [vmem:[#allocation3 + $0x488] sm:$0xff] %vm1200_vm1, %v2334_v34  ;;  %3826 = vmatpush3.msra.mxu0 %v3102_v23 }
 0x5ae   :  { %v2327_v52 = vpop.permute.xlu1 %2326  ;;  %3827 = vmatprep.subr.mxu0 %v3117_v1  ;;  %v3141_v33 = vld [vmem:[#allocation3 + $0x550] sm:$0xff]  ;;  %v3135_v20 = vld [vmem:[#allocation3 + $0x520] sm:$0xff] }
 0x5af   :  { %v2333_v53 = vmul.f32 %v2327_v52, %v5722_v56  ;;  %3828 = vmatpush3.msra.mxu0 %v3101_v55  ;;  %3874 = vmatprep.subr.mxu1 %v3141_v33 }
 0x5b0   :  { %3875 = vmatpush3.msra.mxu1 %v3141_v33 }
 0x5b1   :  { %2335 = vst.msk [vmem:[#allocation3 + $0x480] sm:$0xff] %vm1200_vm1, %v2333_v53  ;;  %3876 = vmatprep.subr.mxu1 %v3140_v57  ;;  %v6059_v53 = vld [vmem:[#allocation15_spill] sm:$0xff] }
 0x5b2   :  { %3877 = vmatpush3.msra.mxu1 %v3140_v57  ;;  %v2784_v48 = vpop.permute.xlu1 %2783  ;;  %v6060_v57 = vld [vmem:[#allocation22_spill] sm:$0xff] }
 0x5b3   :  { %2788 = vst.msk [vmem:[#allocation3 + $0x538] sm:$0xff] %vm1200_vm1, %v2784_v48  ;;  %3878 = vmatprep.subr.mxu1 %v3139_v10  ;;  %v3134_v50 = vld [vmem:[#allocation3 + $0x518] sm:$0xff]  ;;  %v1187_v48 = vmul.f32 %v6060_v57, %v6059_v53 }
 0x5b4   :  { %3879 = vmatpush3.msra.mxu1 %v3139_v10  ;;  %v3116_v30 = vld [vmem:[#allocation3 + $0x488] sm:$0xff] }
 0x5b5   :  { %3829 = vmatprep.subr.mxu0 %v3116_v30 }
 0x5b6   :  { %v2782_v28 = vpop.permute.xlu1 %2781  ;;  %3830 = vmatpush3.msra.mxu0 %v3100_v22 }
 0x5b7   :  { %2787 = vst.msk [vmem:[#allocation3 + $0x530] sm:$0xff] %vm1200_vm1, %v2782_v28  ;;  %v6061_v28 = vld [vmem:[#allocation21_spill] sm:$0xff] }
 0x5b8   :  { %v3115_v56 = vld [vmem:[#allocation3 + $0x480] sm:$0xff] }
 0x5b9   :  { %3831 = vmatprep.subr.mxu0 %v3115_v56  ;;  %v6062_v56 = vld [vmem:[#allocation23_spill] sm:$0xff] }
 0x5ba   :  { %v2651_v8 = vpop.permute.xlu1 %2650  ;;  %3832 = vmatpush3.msra.mxu0 %v3099_v2  ;;  %v3138_v43 = vld [vmem:[#allocation3 + $0x538] sm:$0xff] }
 0x5bb   :  { %v2654_v29 = vmul.f32 %v2651_v8, %v5782_v16  ;;  %3512 = vmatmul.mubr.f32.vlgmr.msra.gmra.mxu0 %v2957_v38  ;;  %3880 = vmatprep.subr.mxu1 %v3138_v43  ;;  %v1186_v38 = vmul.f32 %v6062_v56, %v6061_v28 }
 0x5bc   :  { %3881 = vmatpush3.msra.mxu1 %v3138_v43  ;;  %3516 = vmatprep.mubr.f32.mxu0 %v2969_v41 }
 0x5bd   :  { %2656 = vst.msk [vmem:[#allocation3 + $0x508] sm:$0xff] %vm1200_vm1, %v2654_v29 }
 0x5be   :  { %v2647_v14 = vpop.permute.xlu1 %2646  ;;  %v3137_v42 = vld [vmem:[#allocation3 + $0x530] sm:$0xff] }
 0x5bf   :  { %v2653_v59 = vmul.f32 %v2647_v14, %v5788_v40  ;;  %3517 = vmatmul.mubr.f32.gmra.mxu0 %v2968_v58  ;;  %3882 = vmatprep.subr.mxu1 %v3137_v42 }
 0x5c0   :  { %3883 = vmatpush3.msra.mxu1 %v3137_v42 }
 0x5c1   :  { %2655 = vst.msk [vmem:[#allocation3 + $0x500] sm:$0xff] %vm1200_vm1, %v2653_v59  ;;  %3884 = vmatprep.subr.mxu1 %v3136_v49 }
 0x5c2   :  { %3885 = vmatpush3.msra.mxu1 %v3136_v49  ;;  %v2694_v16 = vpop.permute.xlu1 %2693 }
 0x5c3   :  { %2699 = vst.msk [vmem:[#allocation3 + $0x510] sm:$0xff] %vm1200_vm1, %v2694_v16  ;;  %3886 = vmatprep.subr.mxu1 %v3135_v20 }
 0x5c4   :  { %3887 = vmatpush3.msra.mxu1 %v3135_v20  ;;  %v3132_v40 = vld [vmem:[#allocation3 + $0x508] sm:$0xff] }
 0x5c5   :  { %3888 = vmatprep.subr.mxu1 %v3134_v50 }
 0x5c6   :  { %3889 = vmatpush3.msra.mxu1 %v3134_v50 }
 0x5c8   :  { %v3131_v36 = vld [vmem:[#allocation3 + $0x500] sm:$0xff] }
 0x5ca   :  { %v3133_v0 = vld [vmem:[#allocation3 + $0x510] sm:$0xff] }
 0x5cb   :  { %3890 = vmatprep.subr.mxu1 %v3133_v0 }
 0x5cc   :  { %3891 = vmatpush3.msra.mxu1 %v3133_v0 }
 0x5cd   :  { %3892 = vmatprep.subr.mxu1 %v3132_v40 }
 0x5ce   :  { %3893 = vmatpush3.msra.mxu1 %v3132_v40 }
 0x5cf   :  { %3894 = vmatprep.subr.mxu1 %v3131_v36 }
 0x5d0   :  { %3895 = vmatpush3.msra.mxu1 %v3131_v36 }
 0x5d1   :  { %3897 = vmatmul.mubr.f32.vlgmr.msra.gmra.mxu1 %v2970_v4 }
 0x60d   :  { %v3719_v18 = vpop.f32.mrf.mxu1 }
 0x60f   :  { %v3720_v62 = vpop.f32.mrf.mxu1 }
 0x610   :  { %v3721_v35 = vadd.f32 %v3720_v62, %v3719_v18 }
 0x612   :  { %v3289_v26 = vadd.f32 %v3721_v35, %v3683_v46 }
 0x613   :  { %v3722_v32 = vpop.f32.mrf.mxu1 }
 0x615   :  { %v3723_v51 = vpop.f32.mrf.mxu1 }
 0x616   :  { %v3724_v6 = vadd.f32 %v3723_v51, %v3722_v32 }
 0x618   :  { %v3294_v13 = vadd.f32 %v3724_v6, %v3686_v60 }
 0x62d   :  { %v3795_v27 = vpop.f32.mrf.mxu1 }
 0x62f   :  { %v3796_v21 = vpop.f32.mrf.mxu1 }
 0x630   :  { %v3797_v5 = vadd.f32 %v3796_v21, %v3795_v27 }
 0x631   :  { %v3798_v31 = vpop.f32.mrf.mxu1 }
 0x633   :  { %v3799_v25 = vpop.f32.mrf.mxu1 }
 0x634   :  { %v3800_v15 = vadd.f32 %v3799_v25, %v3798_v31 }
 0x640   :  { %v3757_v3 = vpop.f32.mrf.mxu0 }
 0x642   :  { %v3758_v37 = vpop.f32.mrf.mxu0 }
 0x643   :  { %v3759_v54 = vadd.f32 %v3758_v37, %v3757_v3 }
 0x644   :  { %v3760_v39 = vpop.f32.mrf.mxu0 }
 0x645   :  { %v3364_v34 = vadd.f32 %v3759_v54, %v3289_v26 }
 0x646   :  { %v3761_v63 = vpop.f32.mrf.mxu0 }
 0x647   :  { %v3762_v45 = vadd.f32 %v3761_v63, %v3760_v39  ;;  %v3439_v52 = vadd.f32 %v3797_v5, %v3364_v34 }
 0x649   :  { %v3369_v24 = vadd.f32 %v3762_v45, %v3294_v13 }
 0x64b   :  { %v3444_v23 = vadd.f32 %v3800_v15, %v3369_v24 }
 0x67b   :  { %v3833_v19 = vpop.f32.mrf.mxu0 }
 0x67d   :  { %v3834_v17 = vpop.f32.mrf.mxu0 }
 0x67e   :  { %v3835_v1 = vadd.f32 %v3834_v17, %v3833_v19 }
 0x67f   :  { %v3836_v11 = vpop.f32.mrf.mxu0 }
 0x680   :  { %v3514_v30 = vadd.f32 %v3835_v1, %v3439_v52 }
 0x681   :  { %v3837_v12 = vpop.f32.mrf.mxu0 }
 0x682   :  { %v3838_v61 = vadd.f32 %v3837_v12, %v3836_v11 }
 0x684   :  { %v3519_v55 = vadd.f32 %v3838_v61, %v3444_v23 }
 0x691   :  { %v3898_v33 = vpop.f32.mrf.mxu1 }
 0x692   :  { %v3594_v10 = vadd.f32 %v3898_v33, %v3519_v55 }
 0x693   :  { %v3588_v22 = vpop.f32.mrf.mxu1 }
 0x694   :  { %v3598_v2 = vadd.f32 %v3594_v10, %v1187_v48  ;;  %v3589_v41 = vadd.f32 %v3588_v22, %v3514_v30 }
 0x696   :  { %v3600_v8 = vmax.f32 %v3598_v2, 0.0  ;;  %v3597_v43 = vadd.f32 %v3589_v41, %v1186_v38 }
 0x698   :  { %3602 = vst.msk [vmem:[#allocation4 + $0x8] sm:$0xff] %vm1200_vm1, %v3600_v8  ;;  %v3599_v29 = vmax.f32 %v3597_v43, 0.0 }
 0x69a   :  { %3601 = vst.msk [vmem:[#allocation4] sm:$0xff] %vm1200_vm1, %v3599_v29 }
 0x69b   :  { %4184 = shalt.err (!%p4181_p4)
}
 0x69c   :  { %s4289_s14 = smov 128   ;;  %s4290_s15 = smov 8  }
 0x69d   :  { %3614 = dma.vmem_to_hbm [thread:$0]  %s3609_s12, 256, %s5938_s4, [#allocation5], %s4289_s14, %s4289_s14, %s4290_s15  }
 0x69e   :  { %4193 = dma.done.wait [#allocation5], 256  }
 0x69f   :  { %4194 = vsyncadd [#allocation5], 4294967040 }
 0x6a0   :  { %3618 = vsyncpa [#allocation5], 1 }

</bundles_post_ra>
